<compile_context>
chip_gen: v7x
topology: tpu7x:2x2x1
jax: 0.10.0
libtpu: 0.0.40
codegen_flags: <defaults>
</compile_context>

<pallas_src>
import jax
import jax.numpy as jnp
from jax.experimental import pallas as pl
from jax.experimental.pallas import tpu as pltpu


# ---------------------------------------------------------------------------
# Kernel 1: conv-as-matmul with fused bias + BN1 + ELU + BN2 epilogue
# ---------------------------------------------------------------------------
def _conv_bn_elu_bn_kernel(a_ref, w_ref, sh_ref, s2_ref, t2_ref, o_ref):
    # MXU: bf16 x bf16 -> f32 accumulate; single full-K block so no scratch acc.
    acc = jnp.dot(a_ref[...], w_ref[...], preferred_element_type=jnp.float32)
    x = acc + sh_ref[...]                        # conv bias + BN1 (scale folded into w)
    x = jnp.where(x > 0, x, jnp.exp(x) - 1.0)    # ELU(alpha=1); exp uses the EUP slot
    o_ref[...] = x * s2_ref[...] + t2_ref[...]   # BN2


def _pick_tm(M, cap=512):
    """Largest M-tile <= cap that divides M (our M's are 2048 / 128 / 8)."""
    if M <= cap:
        return M
    tm = cap
    while M % tm:
        tm //= 2
    return max(tm, 8)


def _bn_scale_shift(gamma, beta, mean, var, eps=1e-5):
    scale = gamma * jax.lax.rsqrt(var + eps)
    shift = beta - mean * scale
    return scale, shift


def _im2col(x_nhwc, kh, kw, stride):
    N, H, W, Cin = x_nhwc.shape
    Ho = (H - kh) // stride + 1
    Wo = (W - kw) // stride + 1
    patches = []
    for ky in range(kh):
        for kx in range(kw):
            patches.append(
                x_nhwc[:, ky:ky + stride * Ho:stride, kx:kx + stride * Wo:stride, :])
    pm = jnp.concatenate(patches, axis=-1)          # (N, Ho, Wo, kh*kw*Cin)
    return pm.reshape(N * Ho * Wo, kh * kw * Cin), (N, Ho, Wo)


def conv_bn_elu_bn(x_nhwc, w_oihw, bias, bn1, bn2, *, stride, pad):
    """Conv2d(bias=True) -> BN(eval) -> ELU -> Dropout(id) -> BN(eval), NHWC in/out."""
    Cout, Cin, kh, kw = w_oihw.shape
    x_bf = x_nhwc.astype(jnp.bfloat16)              # bf16 before im2col: half the HBM
    if pad:
        x_bf = jnp.pad(x_bf, ((0, 0), (pad, pad), (pad, pad), (0, 0)))
    a, (N, Ho, Wo) = _im2col(x_bf, kh, kw, stride)  # (M, K) bf16
    M, K = a.shape

    s1, t1 = _bn_scale_shift(*bn1)
    s2, t2 = _bn_scale_shift(*bn2)
    wm = jnp.transpose(w_oihw, (2, 3, 1, 0)).reshape(K, Cout)
    wm = (wm * s1[None, :]).astype(jnp.bfloat16)    # fold BN1 scale into the weights
    shift = (bias * s1 + t1).reshape(1, Cout)       # conv bias folded with BN1 shift

    tm = _pick_tm(M)
    out = pl.pallas_call(
        _conv_bn_elu_bn_kernel,
        out_shape=jax.ShapeDtypeStruct((M, Cout), jnp.float32),
        grid=(M // tm,),
        in_specs=[pl.BlockSpec((tm, K), lambda i: (i, 0)),       # patches (full K)
                  pl.BlockSpec((K, Cout), lambda i: (0, 0)),      # weights (resident)
                  pl.BlockSpec((1, Cout), lambda i: (0, 0)),      # fused bias+BN1 shift
                  pl.BlockSpec((1, Cout), lambda i: (0, 0)),      # BN2 scale
                  pl.BlockSpec((1, Cout), lambda i: (0, 0))],     # BN2 shift
        out_specs=pl.BlockSpec((tm, Cout), lambda i: (i, 0)),
        compiler_params=pltpu.CompilerParams(
            dimension_semantics=("parallel",)),
    )(a, wm, shift, s2.reshape(1, Cout), t2.reshape(1, Cout))
    return out.reshape(N, Ho, Wo, Cout)


# ---------------------------------------------------------------------------
# Kernel 2: fused MLP head  Linear(256->64) + ELU + Linear(64->2) + Softmax
# ---------------------------------------------------------------------------
def _mlp_softmax_kernel(x_ref, w1_ref, b1_ref, w2_ref, b2_ref, o_ref):
    h = jnp.dot(x_ref[...], w1_ref[...], preferred_element_type=jnp.float32) + b1_ref[...]
    h = jnp.where(h > 0, h, jnp.exp(h) - 1.0)                     # ELU
    logits = jnp.dot(h, w2_ref[...], preferred_element_type=jnp.float32) + b2_ref[...]
    m = jnp.max(logits, axis=-1, keepdims=True)                   # Softmax(dim=1)
    e = jnp.exp(logits - m)
    o_ref[...] = e / jnp.sum(e, axis=-1, keepdims=True)


def mlp_head(x, w1, b1, w2, b2):
    N, K = x.shape
    H = w1.shape[1]
    C = w2.shape[1]
    return pl.pallas_call(
        _mlp_softmax_kernel,
        out_shape=jax.ShapeDtypeStruct((N, C), jnp.float32),
        grid=(1,),
        in_specs=[pl.BlockSpec((N, K), lambda i: (0, 0)),
                  pl.BlockSpec((K, H), lambda i: (0, 0)),
                  pl.BlockSpec((1, H), lambda i: (0, 0)),
                  pl.BlockSpec((H, C), lambda i: (0, 0)),
                  pl.BlockSpec((1, C), lambda i: (0, 0))],
        out_specs=pl.BlockSpec((N, C), lambda i: (0, 0)),
    )(x.astype(jnp.bfloat16), w1.astype(jnp.bfloat16),
      b1.reshape(1, H), w2, b2.reshape(1, C))


# ---------------------------------------------------------------------------
# Parameters + forward
# ---------------------------------------------------------------------------
def init_params(key):
    ks = jax.random.split(key, 16)

    def conv_w(k, cout, cin):
        return (0.05 * jax.random.normal(k, (cout, cin, 4, 4))).astype(jnp.float32)

    def bn(k, c):
        k1, k2, k3, k4 = jax.random.split(k, 4)
        gamma = 1.0 + 0.1 * jax.random.normal(k1, (c,), jnp.float32)
        beta = 0.1 * jax.random.normal(k2, (c,), jnp.float32)
        mean = 0.1 * jax.random.normal(k3, (c,), jnp.float32)
        var = 0.5 + jax.random.uniform(k4, (c,), jnp.float32)
        return (gamma, beta, mean, var)

    return {
        # conv weights in torch layout (Cout, Cin, kh, kw), with bias
        "cw1": conv_w(ks[0], 64, 60), "cb1": (0.02 * jax.random.normal(ks[1], (64,))).astype(jnp.float32),
        "bn1a": bn(ks[2], 64), "bn1b": bn(ks[3], 64),
        "cw2": conv_w(ks[4], 64, 64), "cb2": (0.02 * jax.random.normal(ks[5], (64,))).astype(jnp.float32),
        "bn2a": bn(ks[6], 64), "bn2b": bn(ks[7], 64),
        "cw3": conv_w(ks[8], 64, 64), "cb3": (0.02 * jax.random.normal(ks[9], (64,))).astype(jnp.float32),
        "bn3a": bn(ks[10], 64), "bn3b": bn(ks[11], 64),
        # linear weights stored as (in, out) for the matmul
        "lw1": (0.05 * jax.random.normal(ks[12], (256, 64))).astype(jnp.float32),
        "lb1": (0.02 * jax.random.normal(ks[13], (64,))).astype(jnp.float32),
        "lw2": (0.05 * jax.random.normal(ks[14], (64, 2))).astype(jnp.float32),
        "lb2": (0.02 * jax.random.normal(ks[15], (2,))).astype(jnp.float32),
    }


def cnn_forward(params, img_nchw):
    x = jnp.transpose(img_nchw, (0, 2, 3, 1)).astype(jnp.float32)   # NCHW -> NHWC

    x1 = conv_bn_elu_bn(x, params["cw1"], params["cb1"], params["bn1a"], params["bn1b"],
                        stride=2, pad=1)                            # (N, 32, 32, 64)
    x2 = conv_bn_elu_bn(x1, params["cw2"], params["cb2"], params["bn2a"], params["bn2b"],
                        stride=4, pad=0)                            # (N, 8, 8, 64)
    xb = conv_bn_elu_bn(x2, params["cw3"], params["cb3"], params["bn3a"], params["bn3b"],
                        stride=4, pad=0)                            # (N, 2, 2, 64)

    x1_nchw = jnp.transpose(x1, (0, 3, 1, 2))
    x2_nchw = jnp.transpose(x2, (0, 3, 1, 2))
    xb_nchw = jnp.transpose(xb, (0, 3, 1, 2))

    x3 = xb_nchw.reshape(xb_nchw.shape[0], -1)                      # torch .view(-1, 4*64)
    x4 = mlp_head(x3, params["lw1"], params["lb1"], params["lw2"], params["lb2"])

    return x4, xb_nchw, x2_nchw, x1_nchw                            # (x4, xb, x2, x1)


if __name__ == "__main__":
    key = jax.random.PRNGKey(0)
    pkey, xkey = jax.random.split(key)
    params = init_params(pkey)
    # 60 input channels is fixed by the module; 64x64 spatial is what the
    # view(-1, 4*64) after the three convs implies (final feature map is 2x2).
    x = jax.random.normal(xkey, (2, 60, 64, 64), jnp.float32)

    fwd = jax.jit(cnn_forward)
    x4, xb, x2, x1 = jax.block_until_ready(fwd(params, x))

    assert x4.shape == (2, 2), x4.shape
    assert xb.shape == (2, 64, 2, 2), xb.shape
    assert x2.shape == (2, 64, 8, 8), x2.shape
    assert x1.shape == (2, 64, 32, 32), x1.shape
    for t in (x4, xb, x2, x1):
        assert bool(jnp.all(jnp.isfinite(t)))
    assert bool(jnp.allclose(jnp.sum(x4, axis=-1), 1.0, atol=1e-5))
    print("KERNEL_OK")
</pallas_src>

<mosaic_0001>
module attributes {stable_mosaic.version = 11 : i64} {
  func.func @_conv_bn_elu_bn_kernel(%arg0: i32, %arg1: memref<512x960xbf16, #tpu.memory_space<vmem>>, %arg2: memref<960x64xbf16, #tpu.memory_space<vmem>>, %arg3: memref<1x64xf32, #tpu.memory_space<vmem>>, %arg4: memref<1x64xf32, #tpu.memory_space<vmem>>, %arg5: memref<1x64xf32, #tpu.memory_space<vmem>>, %arg6: memref<512x64xf32, #tpu.memory_space<vmem>>) attributes {dimension_semantics = [#tpu.dimension_semantics<parallel>], iteration_bounds = array<i64: 4>, scalar_prefetch = 0 : i64, scratch_operands = 0 : i64, tpu.core_type = #tpu.core_type<tc>, window_params = [{transform_indices = @transform_0, window_bounds = array<i64: 512, 960>}, {pipeline_mode = #tpu.pipeline_mode<synchronous>, transform_indices = @transform_1, window_bounds = array<i64: 960, 64>}, {pipeline_mode = #tpu.pipeline_mode<synchronous>, transform_indices = @transform_2, window_bounds = array<i64: 1, 64>}, {pipeline_mode = #tpu.pipeline_mode<synchronous>, transform_indices = @transform_3, window_bounds = array<i64: 1, 64>}, {pipeline_mode = #tpu.pipeline_mode<synchronous>, transform_indices = @transform_4, window_bounds = array<i64: 1, 64>}, {transform_indices = @transform_5, window_bounds = array<i64: 512, 64>}]} {
    %c0 = arith.constant 0 : index
    %c0_0 = arith.constant 0 : index
    %0 = vector.load %arg1[%c0, %c0_0] : memref<512x960xbf16, #tpu.memory_space<vmem>>, vector<512x960xbf16>
    %c0_1 = arith.constant 0 : index
    %c0_2 = arith.constant 0 : index
    %1 = vector.load %arg2[%c0_1, %c0_2] : memref<960x64xbf16, #tpu.memory_space<vmem>>, vector<960x64xbf16>
    %cst = arith.constant dense<0.000000e+00> : vector<512x64xf32>
    %2 = tpu.matmul %0, %1, %cst {dimension_numbers = #tpu.dot_dimension_numbers<[1], [0], [0], [1], [0, 0, 1, 1], [], []>} : vector<512x960xbf16>, vector<960x64xbf16>, vector<512x64xf32> -> vector<512x64xf32>
    %c0_3 = arith.constant 0 : index
    %c0_4 = arith.constant 0 : index
    %3 = vector.load %arg3[%c0_3, %c0_4] : memref<1x64xf32, #tpu.memory_space<vmem>>, vector<1x64xf32>
    %4 = vector.broadcast %3 : vector<1x64xf32> to vector<512x64xf32>
    %5 = arith.addf %2, %4 : vector<512x64xf32>
    %cst_5 = arith.constant 0.000000e+00 : f32
    %6 = vector.broadcast %cst_5 : f32 to vector<512x64xf32>
    %7 = arith.cmpf ogt, %5, %6 : vector<512x64xf32>
    %8 = math.exp %5 : vector<512x64xf32>
    %cst_6 = arith.constant 1.000000e+00 : f32
    %9 = vector.broadcast %cst_6 : f32 to vector<512x64xf32>
    %10 = arith.subf %8, %9 : vector<512x64xf32>
    %11 = arith.select %7, %5, %10 : vector<512x64xi1>, vector<512x64xf32>
    %c0_7 = arith.constant 0 : index
    %c0_8 = arith.constant 0 : index
    %12 = vector.load %arg4[%c0_7, %c0_8] : memref<1x64xf32, #tpu.memory_space<vmem>>, vector<1x64xf32>
    %13 = vector.broadcast %12 : vector<1x64xf32> to vector<512x64xf32>
    %14 = arith.mulf %11, %13 : vector<512x64xf32>
    %c0_9 = arith.constant 0 : index
    %c0_10 = arith.constant 0 : index
    %15 = vector.load %arg5[%c0_9, %c0_10] : memref<1x64xf32, #tpu.memory_space<vmem>>, vector<1x64xf32>
    %16 = vector.broadcast %15 : vector<1x64xf32> to vector<512x64xf32>
    %17 = arith.addf %14, %16 : vector<512x64xf32>
    %c0_11 = arith.constant 0 : index
    %c0_12 = arith.constant 0 : index
    %18 = vector.load %arg6[%c0_11, %c0_12] : memref<512x64xf32, #tpu.memory_space<vmem>>, vector<512x64xf32>
    tpu.vector_store %arg6[%c0_11, %c0_12], %17 {strides = array<i32>} : memref<512x64xf32, #tpu.memory_space<vmem>>, vector<512x64xf32>,
    return
  }
  func.func @transform_0(%arg0: i32) -> (i32, i32) {
    %c0_i32 = arith.constant 0 : i32
    %c0_i32_0 = arith.constant 0 : i32
    return %arg0, %c0_i32 : i32, i32
  }
  func.func @transform_1(%arg0: i32) -> (i32, i32) {
    %c0_i32 = arith.constant 0 : i32
    %c0_i32_0 = arith.constant 0 : i32
    %c0_i32_1 = arith.constant 0 : i32
    return %c0_i32, %c0_i32_0 : i32, i32
  }
  func.func @transform_2(%arg0: i32) -> (i32, i32) {
    %c0_i32 = arith.constant 0 : i32
    %c0_i32_0 = arith.constant 0 : i32
    %c0_i32_1 = arith.constant 0 : i32
    return %c0_i32, %c0_i32_0 : i32, i32
  }
  func.func @transform_3(%arg0: i32) -> (i32, i32) {
    %c0_i32 = arith.constant 0 : i32
    %c0_i32_0 = arith.constant 0 : i32
    %c0_i32_1 = arith.constant 0 : i32
    return %c0_i32, %c0_i32_0 : i32, i32
  }
  func.func @transform_4(%arg0: i32) -> (i32, i32) {
    %c0_i32 = arith.constant 0 : i32
    %c0_i32_0 = arith.constant 0 : i32
    %c0_i32_1 = arith.constant 0 : i32
    return %c0_i32, %c0_i32_0 : i32, i32
  }
  func.func @transform_5(%arg0: i32) -> (i32, i32) {
    %c0_i32 = arith.constant 0 : i32
    %c0_i32_0 = arith.constant 0 : i32
    return %arg0, %c0_i32 : i32, i32
  }
}

module attributes {stable_mosaic.version = 11 : i64} {
  func.func @_conv_bn_elu_bn_kernel(%arg0: i32, %arg1: memref<128x1024xbf16, #tpu.memory_space<vmem>>, %arg2: memref<1024x64xbf16, #tpu.memory_space<vmem>>, %arg3: memref<1x64xf32, #tpu.memory_space<vmem>>, %arg4: memref<1x64xf32, #tpu.memory_space<vmem>>, %arg5: memref<1x64xf32, #tpu.memory_space<vmem>>, %arg6: memref<128x64xf32, #tpu.memory_space<vmem>>) attributes {dimension_semantics = [#tpu.dimension_semantics<parallel>], iteration_bounds = array<i64: 1>, scalar_prefetch = 0 : i64, scratch_operands = 0 : i64, tpu.core_type = #tpu.core_type<tc>, window_params = [{transform_indices = @transform_0, window_bounds = array<i64: 128, 1024>}, {pipeline_mode = #tpu.pipeline_mode<synchronous>, transform_indices = @transform_1, window_bounds = array<i64: 1024, 64>}, {pipeline_mode = #tpu.pipeline_mode<synchronous>, transform_indices = @transform_2, window_bounds = array<i64: 1, 64>}, {pipeline_mode = #tpu.pipeline_mode<synchronous>, transform_indices = @transform_3, window_bounds = array<i64: 1, 64>}, {pipeline_mode = #tpu.pipeline_mode<synchronous>, transform_indices = @transform_4, window_bounds = array<i64: 1, 64>}, {transform_indices = @transform_5, window_bounds = array<i64: 128, 64>}]} {
    %c0 = arith.constant 0 : index
    %c0_0 = arith.constant 0 : index
    %0 = vector.load %arg1[%c0, %c0_0] : memref<128x1024xbf16, #tpu.memory_space<vmem>>, vector<128x1024xbf16>
    %c0_1 = arith.constant 0 : index
    %c0_2 = arith.constant 0 : index
    %1 = vector.load %arg2[%c0_1, %c0_2] : memref<1024x64xbf16, #tpu.memory_space<vmem>>, vector<1024x64xbf16>
    %cst = arith.constant dense<0.000000e+00> : vector<128x64xf32>
    %2 = tpu.matmul %0, %1, %cst {dimension_numbers = #tpu.dot_dimension_numbers<[1], [0], [0], [1], [0, 0, 1, 1], [], []>} : vector<128x1024xbf16>, vector<1024x64xbf16>, vector<128x64xf32> -> vector<128x64xf32>
    %c0_3 = arith.constant 0 : index
    %c0_4 = arith.constant 0 : index
    %3 = vector.load %arg3[%c0_3, %c0_4] : memref<1x64xf32, #tpu.memory_space<vmem>>, vector<1x64xf32>
    %4 = vector.broadcast %3 : vector<1x64xf32> to vector<128x64xf32>
    %5 = arith.addf %2, %4 : vector<128x64xf32>
    %cst_5 = arith.constant 0.000000e+00 : f32
    %6 = vector.broadcast %cst_5 : f32 to vector<128x64xf32>
    %7 = arith.cmpf ogt, %5, %6 : vector<128x64xf32>
    %8 = math.exp %5 : vector<128x64xf32>
    %cst_6 = arith.constant 1.000000e+00 : f32
    %9 = vector.broadcast %cst_6 : f32 to vector<128x64xf32>
    %10 = arith.subf %8, %9 : vector<128x64xf32>
    %11 = arith.select %7, %5, %10 : vector<128x64xi1>, vector<128x64xf32>
    %c0_7 = arith.constant 0 : index
    %c0_8 = arith.constant 0 : index
    %12 = vector.load %arg4[%c0_7, %c0_8] : memref<1x64xf32, #tpu.memory_space<vmem>>, vector<1x64xf32>
    %13 = vector.broadcast %12 : vector<1x64xf32> to vector<128x64xf32>
    %14 = arith.mulf %11, %13 : vector<128x64xf32>
    %c0_9 = arith.constant 0 : index
    %c0_10 = arith.constant 0 : index
    %15 = vector.load %arg5[%c0_9, %c0_10] : memref<1x64xf32, #tpu.memory_space<vmem>>, vector<1x64xf32>
    %16 = vector.broadcast %15 : vector<1x64xf32> to vector<128x64xf32>
    %17 = arith.addf %14, %16 : vector<128x64xf32>
    %c0_11 = arith.constant 0 : index
    %c0_12 = arith.constant 0 : index
    %18 = vector.load %arg6[%c0_11, %c0_12] : memref<128x64xf32, #tpu.memory_space<vmem>>, vector<128x64xf32>
    tpu.vector_store %arg6[%c0_11, %c0_12], %17 {strides = array<i32>} : memref<128x64xf32, #tpu.memory_space<vmem>>, vector<128x64xf32>,
    return
  }
  func.func @transform_0(%arg0: i32) -> (i32, i32) {
    %c0_i32 = arith.constant 0 : i32
    %c0_i32_0 = arith.constant 0 : i32
    return %arg0, %c0_i32 : i32, i32
  }
  func.func @transform_1(%arg0: i32) -> (i32, i32) {
    %c0_i32 = arith.constant 0 : i32
    %c0_i32_0 = arith.constant 0 : i32
    %c0_i32_1 = arith.constant 0 : i32
    return %c0_i32, %c0_i32_0 : i32, i32
  }
  func.func @transform_2(%arg0: i32) -> (i32, i32) {
    %c0_i32 = arith.constant 0 : i32
    %c0_i32_0 = arith.constant 0 : i32
    %c0_i32_1 = arith.constant 0 : i32
    return %c0_i32, %c0_i32_0 : i32, i32
  }
  func.func @transform_3(%arg0: i32) -> (i32, i32) {
    %c0_i32 = arith.constant 0 : i32
    %c0_i32_0 = arith.constant 0 : i32
    %c0_i32_1 = arith.constant 0 : i32
    return %c0_i32, %c0_i32_0 : i32, i32
  }
  func.func @transform_4(%arg0: i32) -> (i32, i32) {
    %c0_i32 = arith.constant 0 : i32
    %c0_i32_0 = arith.constant 0 : i32
    %c0_i32_1 = arith.constant 0 : i32
    return %c0_i32, %c0_i32_0 : i32, i32
  }
  func.func @transform_5(%arg0: i32) -> (i32, i32) {
    %c0_i32 = arith.constant 0 : i32
    %c0_i32_0 = arith.constant 0 : i32
    return %arg0, %c0_i32 : i32, i32
  }
}

module attributes {stable_mosaic.version = 11 : i64} {
  func.func @_conv_bn_elu_bn_kernel(%arg0: i32, %arg1: memref<8x1024xbf16, #tpu.memory_space<vmem>>, %arg2: memref<1024x64xbf16, #tpu.memory_space<vmem>>, %arg3: memref<1x64xf32, #tpu.memory_space<vmem>>, %arg4: memref<1x64xf32, #tpu.memory_space<vmem>>, %arg5: memref<1x64xf32, #tpu.memory_space<vmem>>, %arg6: memref<8x64xf32, #tpu.memory_space<vmem>>) attributes {dimension_semantics = [#tpu.dimension_semantics<parallel>], iteration_bounds = array<i64: 1>, scalar_prefetch = 0 : i64, scratch_operands = 0 : i64, tpu.core_type = #tpu.core_type<tc>, window_params = [{transform_indices = @transform_0, window_bounds = array<i64: 8, 1024>}, {pipeline_mode = #tpu.pipeline_mode<synchronous>, transform_indices = @transform_1, window_bounds = array<i64: 1024, 64>}, {pipeline_mode = #tpu.pipeline_mode<synchronous>, transform_indices = @transform_2, window_bounds = array<i64: 1, 64>}, {pipeline_mode = #tpu.pipeline_mode<synchronous>, transform_indices = @transform_3, window_bounds = array<i64: 1, 64>}, {pipeline_mode = #tpu.pipeline_mode<synchronous>, transform_indices = @transform_4, window_bounds = array<i64: 1, 64>}, {transform_indices = @transform_5, window_bounds = array<i64: 8, 64>}]} {
    %c0 = arith.constant 0 : index
    %c0_0 = arith.constant 0 : index
    %0 = vector.load %arg1[%c0, %c0_0] : memref<8x1024xbf16, #tpu.memory_space<vmem>>, vector<8x1024xbf16>
    %c0_1 = arith.constant 0 : index
    %c0_2 = arith.constant 0 : index
    %1 = vector.load %arg2[%c0_1, %c0_2] : memref<1024x64xbf16, #tpu.memory_space<vmem>>, vector<1024x64xbf16>
    %cst = arith.constant dense<0.000000e+00> : vector<8x64xf32>
    %2 = tpu.matmul %0, %1, %cst {dimension_numbers = #tpu.dot_dimension_numbers<[1], [0], [0], [1], [0, 0, 1, 1], [], []>} : vector<8x1024xbf16>, vector<1024x64xbf16>, vector<8x64xf32> -> vector<8x64xf32>
    %c0_3 = arith.constant 0 : index
    %c0_4 = arith.constant 0 : index
    %3 = vector.load %arg3[%c0_3, %c0_4] : memref<1x64xf32, #tpu.memory_space<vmem>>, vector<1x64xf32>
    %4 = vector.broadcast %3 : vector<1x64xf32> to vector<8x64xf32>
    %5 = arith.addf %2, %4 : vector<8x64xf32>
    %cst_5 = arith.constant 0.000000e+00 : f32
    %6 = vector.broadcast %cst_5 : f32 to vector<8x64xf32>
    %7 = arith.cmpf ogt, %5, %6 : vector<8x64xf32>
    %8 = math.exp %5 : vector<8x64xf32>
    %cst_6 = arith.constant 1.000000e+00 : f32
    %9 = vector.broadcast %cst_6 : f32 to vector<8x64xf32>
    %10 = arith.subf %8, %9 : vector<8x64xf32>
    %11 = arith.select %7, %5, %10 : vector<8x64xi1>, vector<8x64xf32>
    %c0_7 = arith.constant 0 : index
    %c0_8 = arith.constant 0 : index
    %12 = vector.load %arg4[%c0_7, %c0_8] : memref<1x64xf32, #tpu.memory_space<vmem>>, vector<1x64xf32>
    %13 = vector.broadcast %12 : vector<1x64xf32> to vector<8x64xf32>
    %14 = arith.mulf %11, %13 : vector<8x64xf32>
    %c0_9 = arith.constant 0 : index
    %c0_10 = arith.constant 0 : index
    %15 = vector.load %arg5[%c0_9, %c0_10] : memref<1x64xf32, #tpu.memory_space<vmem>>, vector<1x64xf32>
    %16 = vector.broadcast %15 : vector<1x64xf32> to vector<8x64xf32>
    %17 = arith.addf %14, %16 : vector<8x64xf32>
    %c0_11 = arith.constant 0 : index
    %c0_12 = arith.constant 0 : index
    %18 = vector.load %arg6[%c0_11, %c0_12] : memref<8x64xf32, #tpu.memory_space<vmem>>, vector<8x64xf32>
    tpu.vector_store %arg6[%c0_11, %c0_12], %17 {strides = array<i32>} : memref<8x64xf32, #tpu.memory_space<vmem>>, vector<8x64xf32>,
    return
  }
  func.func @transform_0(%arg0: i32) -> (i32, i32) {
    %c0_i32 = arith.constant 0 : i32
    %c0_i32_0 = arith.constant 0 : i32
    return %arg0, %c0_i32 : i32, i32
  }
  func.func @transform_1(%arg0: i32) -> (i32, i32) {
    %c0_i32 = arith.constant 0 : i32
    %c0_i32_0 = arith.constant 0 : i32
    %c0_i32_1 = arith.constant 0 : i32
    return %c0_i32, %c0_i32_0 : i32, i32
  }
  func.func @transform_2(%arg0: i32) -> (i32, i32) {
    %c0_i32 = arith.constant 0 : i32
    %c0_i32_0 = arith.constant 0 : i32
    %c0_i32_1 = arith.constant 0 : i32
    return %c0_i32, %c0_i32_0 : i32, i32
  }
  func.func @transform_3(%arg0: i32) -> (i32, i32) {
    %c0_i32 = arith.constant 0 : i32
    %c0_i32_0 = arith.constant 0 : i32
    %c0_i32_1 = arith.constant 0 : i32
    return %c0_i32, %c0_i32_0 : i32, i32
  }
  func.func @transform_4(%arg0: i32) -> (i32, i32) {
    %c0_i32 = arith.constant 0 : i32
    %c0_i32_0 = arith.constant 0 : i32
    %c0_i32_1 = arith.constant 0 : i32
    return %c0_i32, %c0_i32_0 : i32, i32
  }
  func.func @transform_5(%arg0: i32) -> (i32, i32) {
    %c0_i32 = arith.constant 0 : i32
    %c0_i32_0 = arith.constant 0 : i32
    return %arg0, %c0_i32 : i32, i32
  }
}

module attributes {stable_mosaic.version = 11 : i64} {
  func.func @_mlp_softmax_kernel(%arg0: i32, %arg1: memref<2x256xbf16, #tpu.memory_space<vmem>>, %arg2: memref<256x64xbf16, #tpu.memory_space<vmem>>, %arg3: memref<1x64xf32, #tpu.memory_space<vmem>>, %arg4: memref<64x2xf32, #tpu.memory_space<vmem>>, %arg5: memref<1x2xf32, #tpu.memory_space<vmem>>, %arg6: memref<2x2xf32, #tpu.memory_space<vmem>>) attributes {dimension_semantics = [#tpu.dimension_semantics<arbitrary>], iteration_bounds = array<i64: 1>, scalar_prefetch = 0 : i64, scratch_operands = 0 : i64, tpu.core_type = #tpu.core_type<tc>, window_params = [{pipeline_mode = #tpu.pipeline_mode<synchronous>, transform_indices = @transform_0, window_bounds = array<i64: 2, 256>}, {pipeline_mode = #tpu.pipeline_mode<synchronous>, transform_indices = @transform_1, window_bounds = array<i64: 256, 64>}, {pipeline_mode = #tpu.pipeline_mode<synchronous>, transform_indices = @transform_2, window_bounds = array<i64: 1, 64>}, {pipeline_mode = #tpu.pipeline_mode<synchronous>, transform_indices = @transform_3, window_bounds = array<i64: 64, 2>}, {pipeline_mode = #tpu.pipeline_mode<synchronous>, transform_indices = @transform_4, window_bounds = array<i64: 1, 2>}, {pipeline_mode = #tpu.pipeline_mode<synchronous>, transform_indices = @transform_5, window_bounds = array<i64: 2, 2>}]} {
    %c0 = arith.constant 0 : index
    %c0_0 = arith.constant 0 : index
    %0 = vector.load %arg1[%c0, %c0_0] : memref<2x256xbf16, #tpu.memory_space<vmem>>, vector<2x256xbf16>
    %c0_1 = arith.constant 0 : index
    %c0_2 = arith.constant 0 : index
    %1 = vector.load %arg2[%c0_1, %c0_2] : memref<256x64xbf16, #tpu.memory_space<vmem>>, vector<256x64xbf16>
    %cst = arith.constant dense<0.000000e+00> : vector<2x64xf32>
    %2 = tpu.matmul %0, %1, %cst {dimension_numbers = #tpu.dot_dimension_numbers<[1], [0], [0], [1], [0, 0, 1, 1], [], []>} : vector<2x256xbf16>, vector<256x64xbf16>, vector<2x64xf32> -> vector<2x64xf32>
    %c0_3 = arith.constant 0 : index
    %c0_4 = arith.constant 0 : index
    %3 = vector.load %arg3[%c0_3, %c0_4] : memref<1x64xf32, #tpu.memory_space<vmem>>, vector<1x64xf32>
    %4 = vector.broadcast %3 : vector<1x64xf32> to vector<2x64xf32>
    %5 = arith.addf %2, %4 : vector<2x64xf32>
    %cst_5 = arith.constant 0.000000e+00 : f32
    %6 = vector.broadcast %cst_5 : f32 to vector<2x64xf32>
    %7 = arith.cmpf ogt, %5, %6 : vector<2x64xf32>
    %8 = math.exp %5 : vector<2x64xf32>
    %cst_6 = arith.constant 1.000000e+00 : f32
    %9 = vector.broadcast %cst_6 : f32 to vector<2x64xf32>
    %10 = arith.subf %8, %9 : vector<2x64xf32>
    %11 = arith.select %7, %5, %10 : vector<2x64xi1>, vector<2x64xf32>
    %c0_7 = arith.constant 0 : index
    %c0_8 = arith.constant 0 : index
    %12 = vector.load %arg4[%c0_7, %c0_8] : memref<64x2xf32, #tpu.memory_space<vmem>>, vector<64x2xf32>
    %cst_9 = arith.constant dense<0.000000e+00> : vector<2x2xf32>
    %13 = tpu.matmul %11, %12, %cst_9 {dimension_numbers = #tpu.dot_dimension_numbers<[1], [0], [0], [1], [0, 0, 1, 1], [], []>} : vector<2x64xf32>, vector<64x2xf32>, vector<2x2xf32> -> vector<2x2xf32>
    %c0_10 = arith.constant 0 : index
    %c0_11 = arith.constant 0 : index
    %14 = vector.load %arg5[%c0_10, %c0_11] : memref<1x2xf32, #tpu.memory_space<vmem>>, vector<1x2xf32>
    %15 = vector.broadcast %14 : vector<1x2xf32> to vector<2x2xf32>
    %16 = arith.addf %13, %15 : vector<2x2xf32>
    %cst_12 = arith.constant dense<0xFF800000> : vector<2xf32>
    %17 = vector.multi_reduction <maximumf>, %16, %cst_12 [1] : vector<2x2xf32> to vector<2xf32>
    %18 = vector.shape_cast %17 : vector<2xf32> to vector<2x1xf32>
    %19 = vector.broadcast %18 : vector<2x1xf32> to vector<2x2xf32>
    %20 = arith.subf %16, %19 : vector<2x2xf32>
    %21 = math.exp %20 : vector<2x2xf32>
    %cst_13 = arith.constant dense<0.000000e+00> : vector<2xf32>
    %22 = vector.multi_reduction <add>, %21, %cst_13 [1] : vector<2x2xf32> to vector<2xf32>
    %23 = vector.shape_cast %22 : vector<2xf32> to vector<2x1xf32>
    %24 = vector.broadcast %23 : vector<2x1xf32> to vector<2x2xf32>
    %25 = arith.divf %21, %24 : vector<2x2xf32>
    %c0_14 = arith.constant 0 : index
    %c0_15 = arith.constant 0 : index
    %26 = vector.load %arg6[%c0_14, %c0_15] : memref<2x2xf32, #tpu.memory_space<vmem>>, vector<2x2xf32>
    tpu.vector_store %arg6[%c0_14, %c0_15], %25 {strides = array<i32>} : memref<2x2xf32, #tpu.memory_space<vmem>>, vector<2x2xf32>,
    return
  }
  func.func @transform_0(%arg0: i32) -> (i32, i32) {
    %c0_i32 = arith.constant 0 : i32
    %c0_i32_0 = arith.constant 0 : i32
    %c0_i32_1 = arith.constant 0 : i32
    return %c0_i32, %c0_i32_0 : i32, i32
  }
  func.func @transform_1(%arg0: i32) -> (i32, i32) {
    %c0_i32 = arith.constant 0 : i32
    %c0_i32_0 = arith.constant 0 : i32
    %c0_i32_1 = arith.constant 0 : i32
    return %c0_i32, %c0_i32_0 : i32, i32
  }
  func.func @transform_2(%arg0: i32) -> (i32, i32) {
    %c0_i32 = arith.constant 0 : i32
    %c0_i32_0 = arith.constant 0 : i32
    %c0_i32_1 = arith.constant 0 : i32
    return %c0_i32, %c0_i32_0 : i32, i32
  }
  func.func @transform_3(%arg0: i32) -> (i32, i32) {
    %c0_i32 = arith.constant 0 : i32
    %c0_i32_0 = arith.constant 0 : i32
    %c0_i32_1 = arith.constant 0 : i32
    return %c0_i32, %c0_i32_0 : i32, i32
  }
  func.func @transform_4(%arg0: i32) -> (i32, i32) {
    %c0_i32 = arith.constant 0 : i32
    %c0_i32_0 = arith.constant 0 : i32
    %c0_i32_1 = arith.constant 0 : i32
    return %c0_i32, %c0_i32_0 : i32, i32
  }
  func.func @transform_5(%arg0: i32) -> (i32, i32) {
    %c0_i32 = arith.constant 0 : i32
    %c0_i32_0 = arith.constant 0 : i32
    %c0_i32_1 = arith.constant 0 : i32
    return %c0_i32, %c0_i32_0 : i32, i32
  }
}

</mosaic_0001>

<bundles_post_ra>
// kernel: cnn_forward.4
= control target key start
LH: loop header
LB: loop body
LE: loop exit
PB: predicated region body
PF: predicated region fallthrough
CT: control target
= control target key end

     0   :  { %s5109_s18 = smov 0   ;;  %s6358_s0 = inlined_call_operand.vmem [shape: bf16[2048,960], index: 0, kind: input, shape index: {}]   ;;  %s6359_s1 = inlined_call_operand.vmem [shape: bf16[960,64], index: 1, kind: input, shape index: {}]   ;;  %s6360_s2 = inlined_call_operand.vmem [shape: f32[1,64], index: 2, kind: input, shape index: {}]   ;;  %s6361_s3 = inlined_call_operand.vmem [shape: f32[1,64], index: 3, kind: input, shape index: {}]   ;;  %s6362_s4 = inlined_call_operand.vmem [shape: f32[1,64], index: 4, kind: input, shape index: {}]   ;;  %s6363_s5 = inlined_call_operand.vmem [shape: f32[2048,64], index: 5, kind: output, shape index: {}]  }
   0x1 LB: > { %s4058_s19 = sadd.s32 4294967295, %s5076_s18   ;;  %p4062_p0 = scmp.ge.s32.totalorder %s5076_s18, 1  ;;  %s5076_s18 = sphi %s5109_s18, %s15_s18  }
   0x2   : > { %p189_p1 = scmp.lt.s32.totalorder %s5076_s18, 5 }
   0x4   : > { %p190_p2 = pnand %p4062_p0, %p189_p1 }
   0x5   : > { %v4879_v0 = vld [vmem:[%s6359_s1] sm:$0xff] (!%p190_p2)   ;;  %v5078_v1 = vmov (!%p190_p2), 0   ;;  %v4881_v3 = vld [vmem:[%s6359_s1 + $0x8] sm:$0xff] (!%p190_p2)   ;;  %v4883_v5 = vld [vmem:[%s6359_s1 + $0x10] sm:$0xff] (!%p190_p2)   ;;  %s4063_s15 = sshll.u32 (!%p190_p2), %s4058_s19, 6  ;;  %vm2223_vm0 = vcmask (!%p190_p2), 523264  }
   0x6   : > { %193 = sbr.rel (%p190_p2) target bundleno = 813 (0x32d), region = 40  ;;  %2320 = vmatprep.subr.bf16.mxu1 (!%p190_p2), %v5078_v1  ;;  %2898 = vmatprep.subr.bf16.mxu0 (!%p190_p2), %v5078_v1  ;;  %v4880_v2 = vld [vmem:[%s6359_s1 + $0x100] sm:$0xff] (!%p190_p2)   ;;  %v4882_v4 = vld [vmem:[%s6359_s1 + $0x108] sm:$0xff] (!%p190_p2)   ;;  %v4884_v6 = vld [vmem:[%s6359_s1 + $0x110] sm:$0xff] (!%p190_p2)   ;;  %p219_p3 = scmp.lt.s32.totalorder (!%p190_p2), %s4063_s15, 255 }
   0x7   : > { %2321 = vmatpush1.bf16.msra.mxu1 (!%p190_p2), %v4879_v0  ;;  %2899 = vmatpush1.bf16.msra.mxu0 (!%p190_p2), %v4880_v2  ;;  %v4885_v7 = vld [vmem:[%s6359_s1 + $0x18] sm:$0xff] (!%p190_p2)   ;;  %v4887_v9 = vld [vmem:[%s6359_s1 + $0x20] sm:$0xff] (!%p190_p2)   ;;  %v4889_v11 = vld [vmem:[%s6359_s1 + $0x28] sm:$0xff] (!%p190_p2)  }
   0x8   : > { %2322 = vmatprep.subr.bf16.mxu1 (!%p190_p2), %v5078_v1  ;;  %2900 = vmatprep.subr.bf16.mxu0 (!%p190_p2), %v5078_v1  ;;  %v4886_v8 = vld [vmem:[%s6359_s1 + $0x118] sm:$0xff] (!%p190_p2)   ;;  %v4888_v10 = vld [vmem:[%s6359_s1 + $0x120] sm:$0xff] (!%p190_p2)   ;;  %v4890_v12 = vld [vmem:[%s6359_s1 + $0x128] sm:$0xff] (!%p190_p2)  }
   0x9   : > { %v4891_v13 = vld [vmem:[%s6359_s1 + $0x30] sm:$0xff] (!%p190_p2)   ;;  %v4893_v15 = vld [vmem:[%s6359_s1 + $0x38] sm:$0xff] (!%p190_p2)   ;;  %v4895_v17 = vld [vmem:[%s6359_s1 + $0x40] sm:$0xff] (!%p190_p2)  }
   0xa   : > { %v4892_v14 = vld [vmem:[%s6359_s1 + $0x130] sm:$0xff] (!%p190_p2)   ;;  %v4894_v16 = vld [vmem:[%s6359_s1 + $0x138] sm:$0xff] (!%p190_p2)   ;;  %v4896_v18 = vld [vmem:[%s6359_s1 + $0x140] sm:$0xff] (!%p190_p2)  }
   0xb   : > { %2323 = vmatpush1.bf16.msra.mxu1 (!%p190_p2), %v4881_v3  ;;  %2901 = vmatpush1.bf16.msra.mxu0 (!%p190_p2), %v4882_v4  ;;  %v4897_v24 = vld [vmem:[%s6359_s1 + $0x48] sm:$0xff] (!%p190_p2)   ;;  %v4899_v27 = vld [vmem:[%s6359_s1 + $0x50] sm:$0xff] (!%p190_p2)   ;;  %v4901_v29 = vld [vmem:[%s6359_s1 + $0x58] sm:$0xff] (!%p190_p2)  }
   0xc   : > { %2324 = vmatprep.subr.bf16.mxu1 (!%p190_p2), %v5078_v1  ;;  %2902 = vmatprep.subr.bf16.mxu0 (!%p190_p2), %v5078_v1  ;;  %v4898_v26 = vld [vmem:[%s6359_s1 + $0x148] sm:$0xff] (!%p190_p2)   ;;  %v4900_v28 = vld [vmem:[%s6359_s1 + $0x150] sm:$0xff] (!%p190_p2)   ;;  %v4902_v30 = vld [vmem:[%s6359_s1 + $0x158] sm:$0xff] (!%p190_p2)  }
   0xd   : > { %s6365_s15 = smov (!%p219_p3, %s4063_s15), 255  ;;  %v4903_v31 = vld [vmem:[%s6359_s1 + $0x60] sm:$0xff]   ;;  %v4905_v33 = vld [vmem:[%s6359_s1 + $0x68] sm:$0xff]   ;;  %v4907_v35 = vld [vmem:[%s6359_s1 + $0x70] sm:$0xff]  }
   0xe   : > { %s4485_s27 = sshll.u32 %s6365_s15, 5  ;;  %v4904_v32 = vld [vmem:[%s6359_s1 + $0x160] sm:$0xff]   ;;  %v4906_v34 = vld [vmem:[%s6359_s1 + $0x168] sm:$0xff]   ;;  %v4908_v36 = vld [vmem:[%s6359_s1 + $0x170] sm:$0xff]   ;;  %s4067_s12 = sshll.u32 %s6365_s15, 3 }
   0xf   : > { %2325 = vmatpush1.bf16.msra.mxu1 %v4883_v5  ;;  %2903 = vmatpush1.bf16.msra.mxu0 %v4884_v6  ;;  %s5189_s7 = scalar_lea.vmem %s6358_s0, %s4485_s27  ;;  %v4909_v37 = vld [vmem:[%s6359_s1 + $0x78] sm:$0xff]   ;;  %v4911_v45 = vld [vmem:[%s6359_s1 + $0x80] sm:$0xff]   ;;  %v4913_v49 = vld [vmem:[%s6359_s1 + $0x88] sm:$0xff]   ;;  %s5719_s17 = scalar_lea.vmem %s6363_s5, %s4067_s12 }
  0x10   : > { %2326 = vmatprep.subr.bf16.mxu1 %v5078_v1  ;;  %2904 = vmatprep.subr.bf16.mxu0 %v5078_v1  ;;  %v5200_v19 = vld [vmem:[%s5189_s7] sm:$0xff]  ;;  %v5206_v21 = vld [vmem:[%s5189_s7 + $0x10] sm:$0xff]  ;;  %v4910_v38 = vld [vmem:[%s6359_s1 + $0x178] sm:$0xff]  }
  0x11   : > { %v5203_v20 = vld [vmem:[%s5189_s7 + $0x20] sm:$0xff]  ;;  %v238_v23 = vld [vmem:[%s5189_s7 + $0x30] sm:$0xff]  ;;  %v4914_v52 = vld [vmem:[%s6359_s1 + $0x188] sm:$0xff]  }
  0x12   : > { %v4070_v22 = vcombine.high %v5200_v19, %v5203_v20  ;;  %v4074_v25 = vcombine.high %v5206_v21, %v238_v23  ;;  %v240_v39 = vld [vmem:[%s5189_s7 + $0x40] sm:$0xff]  ;;  %v4069_v41 = vcombine.low %v5200_v19, %v5203_v20  ;;  %v242_v42 = vld [vmem:[%s5189_s7 + $0x50] sm:$0xff]  ;;  %v4073_v44 = vcombine.low %v5206_v21, %v238_v23  ;;  %v4917_v2 = vld [vmem:[%s6359_s1 + $0x98] sm:$0xff]  }
  0x13   : > { %2327 = vmatpush1.bf16.msra.mxu1 %v4885_v7  ;;  %2905 = vmatpush1.bf16.msra.mxu0 %v4886_v8  ;;  %v244_v40 = vld [vmem:[%s5189_s7 + $0x60] sm:$0xff]  ;;  %v246_v43 = vld [vmem:[%s5189_s7 + $0x70] sm:$0xff]  ;;  %v4919_v3 = vld [vmem:[%s6359_s1 + $0x198] sm:$0xff]  }
  0x14   : > { %2328 = vmatprep.subr.bf16.mxu1 %v5078_v1  ;;  %2906 = vmatprep.subr.bf16.mxu0 %v5078_v1  ;;  %v4912_v46 = vld [vmem:[%s6359_s1 + $0x180] sm:$0xff]   ;;  %v4078_v47 = vcombine.high %v240_v39, %v244_v40  ;;  %v4082_v48 = vcombine.high %v242_v42, %v246_v43  ;;  %v250_v53 = vld [vmem:[%s5189_s7 + $0x90] sm:$0xff]  ;;  %v4077_v55 = vcombine.low %v240_v39, %v244_v40 }
  0x15   : > { %2352 = vmatprep.mubr.bf16.mxu1 %v4070_v22  ;;  %2930 = vmatprep.mubr.bf16.mxu0 %v4074_v25  ;;  %v248_v50 = vld [vmem:[%s5189_s7 + $0x80] sm:$0xff]  ;;  %v254_v54 = vld [vmem:[%s5189_s7 + $0xb0] sm:$0xff]  ;;  %v4081_v56 = vcombine.low %v242_v42, %v246_v43 }
  0x16   : > { %v252_v51 = vld [vmem:[%s5189_s7 + $0xa0] sm:$0xff]  ;;  %v4090_v58 = vcombine.high %v250_v53, %v254_v54  ;;  %v4915_v59 = vld [vmem:[%s6359_s1 + $0x90] sm:$0xff]   ;;  %v4089_v6 = vcombine.low %v250_v53, %v254_v54 }
  0x17   : > { %2329 = vmatpush1.bf16.msra.mxu1 %v4887_v9  ;;  %2907 = vmatpush1.bf16.msra.mxu0 %v4888_v10  ;;  %v4086_v57 = vcombine.high %v248_v50, %v252_v51  ;;  %v4916_v60 = vld [vmem:[%s6359_s1 + $0x190] sm:$0xff]   ;;  %v256_v61 = vld [vmem:[%s5189_s7 + $0xc0] sm:$0xff]  ;;  %v4085_v4 = vcombine.low %v248_v50, %v252_v51 }
  0x18   : > { %2330 = vmatprep.subr.bf16.mxu1 %v5078_v1  ;;  %2908 = vmatprep.subr.bf16.mxu0 %v5078_v1  ;;  %v260_v62 = vld [vmem:[%s5189_s7 + $0xe0] sm:$0xff]  ;;  %v258_v63 = vld [vmem:[%s5189_s7 + $0xd0] sm:$0xff] }
  0x19   : > { %v262_v0 = vld [vmem:[%s5189_s7 + $0xf0] sm:$0xff]  ;;  %v4918_v5 = vld [vmem:[%s6359_s1 + $0xa0] sm:$0xff]   ;;  %v4094_v7 = vcombine.high %v256_v61, %v260_v62 }
  0x1a   : > { %v4921_v8 = vld [vmem:[%s6359_s1 + $0x1a0] sm:$0xff]   ;;  %v4098_v9 = vcombine.high %v258_v63, %v262_v0  ;;  %v4922_v20 = vld [vmem:[%s6359_s1 + $0xb0] sm:$0xff]  }
  0x1b   : > { %2331 = vmatpush1.bf16.msra.mxu1 %v4889_v11  ;;  %2909 = vmatpush1.bf16.msra.mxu0 %v4890_v12  ;;  %v264_v10 = vld [vmem:[%s5189_s7 + $0x100] sm:$0xff]  ;;  %v4920_v12 = vld [vmem:[%s6359_s1 + $0xa8] sm:$0xff]   ;;  %v4926_v21 = vld [vmem:[%s6359_s1 + $0x1b0] sm:$0xff]  }
  0x1c   : > { %2332 = vmatprep.subr.bf16.mxu1 %v5078_v1  ;;  %2910 = vmatprep.subr.bf16.mxu0 %v5078_v1  ;;  %v268_v11 = vld [vmem:[%s5189_s7 + $0x120] sm:$0xff]  ;;  %v274_v25 = vld [vmem:[%s5189_s7 + $0x150] sm:$0xff] }
  0x1d   : > { %v272_v22 = vld [vmem:[%s5189_s7 + $0x140] sm:$0xff]  ;;  %v4929_v42 = vld [vmem:[%s6359_s1 + $0xd0] sm:$0xff]  }
  0x1e   : > { %v276_v23 = vld [vmem:[%s5189_s7 + $0x160] sm:$0xff] }
  0x1f   : > { %2333 = vmatpush1.bf16.msra.mxu1 %v4891_v13  ;;  %2911 = vmatpush1.bf16.msra.mxu0 %v4892_v14  ;;  %v266_v13 = vld [vmem:[%s5189_s7 + $0x110] sm:$0xff]  ;;  %v4930_v43 = vld [vmem:[%s6359_s1 + $0x1c0] sm:$0xff]  }
  0x20   : > { %2334 = vmatprep.subr.bf16.mxu1 %v5078_v1  ;;  %2912 = vmatprep.subr.bf16.mxu0 %v5078_v1  ;;  %v270_v14 = vld [vmem:[%s5189_s7 + $0x130] sm:$0xff]  ;;  %v296_v53 = vld [vmem:[%s5189_s7 + $0x200] sm:$0xff] }
  0x21   : > { %v4106_v19 = vcombine.high %v266_v13, %v270_v14  ;;  %v300_v54 = vld [vmem:[%s5189_s7 + $0x220] sm:$0xff] }
  0x23   : > { %2335 = vmatpush1.bf16.msra.mxu1 %v4893_v15  ;;  %2913 = vmatpush1.bf16.msra.mxu0 %v4894_v16  ;;  %v4923_v15 = vld [vmem:[%s6359_s1 + $0x1a8] sm:$0xff]   ;;  %v4093_v16 = vcombine.low %v256_v61, %v260_v62  ;;  %v304_v61 = vld [vmem:[%s5189_s7 + $0x240] sm:$0xff] }
  0x24   : > { %2336 = vmatprep.subr.bf16.mxu1 %v5078_v1  ;;  %2914 = vmatprep.subr.bf16.mxu0 %v5078_v1  ;;  %v308_v62 = vld [vmem:[%s5189_s7 + $0x260] sm:$0xff] }
  0x27   : > { %2337 = vmatpush1.bf16.msra.mxu1 %v4895_v17  ;;  %2915 = vmatpush1.bf16.msra.mxu0 %v4896_v18  ;;  %v4097_v17 = vcombine.low %v258_v63, %v262_v0  ;;  %v4102_v18 = vcombine.high %v264_v10, %v268_v11  ;;  %v306_v63 = vld [vmem:[%s5189_s7 + $0x250] sm:$0xff] }
  0x28   : > { %2338 = vmatprep.subr.bf16.mxu1 %v5078_v1  ;;  %2916 = vmatprep.subr.bf16.mxu0 %v5078_v1  ;;  %v310_v0 = vld [vmem:[%s5189_s7 + $0x270] sm:$0xff] }
  0x2b   : > { %2339 = vmatpush1.bf16.msra.mxu1 %v4897_v24  ;;  %2917 = vmatpush1.bf16.msra.mxu0 %v4898_v26  ;;  %v4924_v24 = vld [vmem:[%s6359_s1 + $0xb8] sm:$0xff]   ;;  %v278_v26 = vld [vmem:[%s5189_s7 + $0x170] sm:$0xff] }
  0x2c   : > { %2340 = vmatprep.subr.bf16.mxu1 %v5078_v1  ;;  %2918 = vmatprep.subr.bf16.mxu0 %v5078_v1  ;;  %v4113_v39 = vcombine.low %v274_v25, %v278_v26 }
  0x2f   : > { %2341 = vmatpush1.bf16.msra.mxu1 %v4899_v27  ;;  %2919 = vmatpush1.bf16.msra.mxu0 %v4900_v28  ;;  %v4928_v27 = vld [vmem:[%s6359_s1 + $0x1b8] sm:$0xff]   ;;  %v4101_v28 = vcombine.low %v264_v10, %v268_v11  ;;  %v314_v10 = vld [vmem:[%s5189_s7 + $0x290] sm:$0xff] }
  0x30   : > { %2342 = vmatprep.subr.bf16.mxu1 %v5078_v1  ;;  %2920 = vmatprep.subr.bf16.mxu0 %v5078_v1  ;;  %v318_v11 = vld [vmem:[%s5189_s7 + $0x2b0] sm:$0xff] }
  0x33   : > { %2343 = vmatpush1.bf16.msra.mxu1 %v4901_v29  ;;  %2921 = vmatpush1.bf16.msra.mxu0 %v4902_v30  ;;  %v4105_v29 = vcombine.low %v266_v13, %v270_v14  ;;  %v4110_v30 = vcombine.high %v272_v22, %v276_v23  ;;  %v4145_v13 = vcombine.low %v306_v63, %v310_v0 }
  0x34   : > { %2344 = vmatprep.subr.bf16.mxu1 %v5078_v1  ;;  %2922 = vmatprep.subr.bf16.mxu0 %v5078_v1 }
  0x37   : > { %2345 = vmatpush1.bf16.msra.mxu1 %v4903_v31  ;;  %2923 = vmatpush1.bf16.msra.mxu0 %v4904_v32  ;;  %v4114_v31 = vcombine.high %v274_v25, %v278_v26  ;;  %v4925_v32 = vld [vmem:[%s6359_s1 + $0xc0] sm:$0xff]  }
  0x38   : > { %2346 = vmatprep.subr.bf16.mxu1 %v5078_v1  ;;  %2924 = vmatprep.subr.bf16.mxu0 %v5078_v1  ;;  %v328_v25 = vld [vmem:[%s5189_s7 + $0x300] sm:$0xff] }
  0x39   : > { %v332_v26 = vld [vmem:[%s5189_s7 + $0x320] sm:$0xff] }
  0x3b   : > { %2347 = vmatpush1.bf16.msra.mxu1 %v4905_v33  ;;  %2925 = vmatpush1.bf16.msra.mxu0 %v4906_v34  ;;  %v280_v33 = vld [vmem:[%s5189_s7 + $0x180] sm:$0xff] }
  0x3c   : > { %2348 = vmatprep.subr.bf16.mxu1 %v5078_v1  ;;  %2926 = vmatprep.subr.bf16.mxu0 %v5078_v1  ;;  %v284_v34 = vld [vmem:[%s5189_s7 + $0x1a0] sm:$0xff] }
  0x3d   : > { %v4118_v40 = vcombine.high %v280_v33, %v284_v34 }
  0x3f   : > { %2349 = vmatpush1.bf16.msra.mxu1 %v4907_v35  ;;  %2927 = vmatpush1.bf16.msra.mxu0 %v4908_v36  ;;  %v4927_v35 = vld [vmem:[%s6359_s1 + $0xc8] sm:$0xff]   ;;  %v282_v36 = vld [vmem:[%s5189_s7 + $0x190] sm:$0xff] }
  0x40   : > { %2350 = vmatprep.subr.bf16.mxu1 %v5078_v1  ;;  %2928 = vmatprep.subr.bf16.mxu0 %v5078_v1 }
  0x43   : > { %2351 = vmatpush1.bf16.msra.mxu1 %v4909_v37  ;;  %2929 = vmatpush1.bf16.msra.mxu0 %v4910_v38  ;;  %v286_v37 = vld [vmem:[%s5189_s7 + $0x1b0] sm:$0xff]  ;;  %v4109_v38 = vcombine.low %v272_v22, %v276_v23 }
  0x44   : > { %2609 = vmatprep.subr.bf16.mxu1 %v5078_v1  ;;  %3187 = vmatprep.subr.bf16.mxu0 %v5078_v1 }
  0x46   : > { %2353 = vmatmul.mubr.bf16.vlgmr.msra.gmra.mrb[0].mxu1 %v4069_v41  ;;  %2931 = vmatmul.mubr.bf16.vlgmr.msra.gmra.mrb[0].mxu0 %v4073_v44  ;;  %v4122_v41 = vcombine.high %v282_v36, %v286_v37  ;;  %v288_v44 = vld [vmem:[%s5189_s7 + $0x1c0] sm:$0xff] }
  0x47   : > { %2610 = vmatpush1.bf16.msra.mxu1 %v4911_v45  ;;  %3188 = vmatpush1.bf16.msra.mxu0 %v4912_v46  ;;  %v292_v45 = vld [vmem:[%s5189_s7 + $0x1e0] sm:$0xff]  ;;  %v290_v46 = vld [vmem:[%s5189_s7 + $0x1d0] sm:$0xff] }
  0x48   : > { %2360 = vmatprep.mubr.bf16.mxu1 %v4078_v47  ;;  %2938 = vmatprep.mubr.bf16.mxu0 %v4082_v48  ;;  %v294_v47 = vld [vmem:[%s5189_s7 + $0x1f0] sm:$0xff]  ;;  %v4117_v48 = vcombine.low %v280_v33, %v284_v34  ;;  %v4126_v50 = vcombine.high %v288_v44, %v292_v45  ;;  %v336_v34 = vld [vmem:[%s5189_s7 + $0x340] sm:$0xff] }
  0x49   : > { %2611 = vmatprep.subr.bf16.mxu1 %v5078_v1  ;;  %3189 = vmatprep.subr.bf16.mxu0 %v5078_v1  ;;  %v4130_v51 = vcombine.high %v290_v46, %v294_v47  ;;  %v4935_v33 = vld [vmem:[%s6359_s1 + $0x1d0] sm:$0xff]  }
  0x4b   : > { %2612 = vmatpush1.bf16.msra.mxu1 %v4913_v49  ;;  %3190 = vmatpush1.bf16.msra.mxu0 %v4914_v52  ;;  %v4121_v49 = vcombine.low %v282_v36, %v286_v37  ;;  %v4931_v52 = vld [vmem:[%s6359_s1 + $0xd8] sm:$0xff]   ;;  %v338_v36 = vld [vmem:[%s5189_s7 + $0x350] sm:$0xff] }
  0x4c   : > { %2613 = vmatprep.subr.bf16.mxu1 %v5078_v1  ;;  %3191 = vmatprep.subr.bf16.mxu0 %v5078_v1  ;;  %v342_v37 = vld [vmem:[%s5189_s7 + $0x370] sm:$0xff] }
  0x4e   : > { %2361 = vmatmul.mubr.bf16.gmra.mrb[4].mxu1 %v4077_v55  ;;  %2939 = vmatmul.mubr.bf16.gmra.mrb[4].mxu0 %v4081_v56  ;;  %v298_v55 = vld [vmem:[%s5189_s7 + $0x210] sm:$0xff] }
  0x4f   : > { %2368 = vmatprep.mubr.bf16.mxu1 %v4086_v57  ;;  %2946 = vmatprep.mubr.bf16.mxu0 %v4090_v58  ;;  %v302_v56 = vld [vmem:[%s5189_s7 + $0x230] sm:$0xff]  ;;  %v4125_v57 = vcombine.low %v288_v44, %v292_v45  ;;  %v4129_v58 = vcombine.low %v290_v46, %v294_v47  ;;  %v348_v44 = vld [vmem:[%s5189_s7 + $0x3a0] sm:$0xff] }
  0x50   : > { %2614 = vmatpush1.bf16.msra.mxu1 %v4915_v59  ;;  %3192 = vmatpush1.bf16.msra.mxu0 %v4916_v60  ;;  %v4134_v59 = vcombine.high %v296_v53, %v300_v54  ;;  %v4138_v60 = vcombine.high %v298_v55, %v302_v56  ;;  %v346_v45 = vld [vmem:[%s5189_s7 + $0x390] sm:$0xff] }
  0x51   : > { %2615 = vmatprep.subr.bf16.mxu1 %v5078_v1  ;;  %3193 = vmatprep.subr.bf16.mxu0 %v5078_v1  ;;  %v350_v46 = vld [vmem:[%s5189_s7 + $0x3b0] sm:$0xff] }
  0x54   : > { %2616 = vmatpush1.bf16.msra.mxu1 %v4917_v2  ;;  %3194 = vmatpush1.bf16.msra.mxu0 %v4919_v3  ;;  %v4133_v2 = vcombine.low %v296_v53, %v300_v54  ;;  %v4137_v3 = vcombine.low %v298_v55, %v302_v56  ;;  %v356_v53 = vld [vmem:[%s5189_s7 + $0x3e0] sm:$0xff]  ;;  %v354_v54 = vld [vmem:[%s5189_s7 + $0x3d0] sm:$0xff]  ;;  %v4185_v56 = vcombine.low %v346_v45, %v350_v46 }
  0x55   : > { %2617 = vmatprep.subr.bf16.mxu1 %v5078_v1  ;;  %3195 = vmatprep.subr.bf16.mxu0 %v5078_v1  ;;  %v358_v55 = vld [vmem:[%s5189_s7 + $0x3f0] sm:$0xff] }
  0x56   : > { %2369 = vmatmul.mubr.bf16.gmra.mrb[8].mxu1 %v4085_v4  ;;  %2947 = vmatmul.mubr.bf16.gmra.mrb[8].mxu0 %v4089_v6  ;;  %v4142_v4 = vcombine.high %v304_v61, %v308_v62  ;;  %v4932_v6 = vld [vmem:[%s6359_s1 + $0xe0] sm:$0xff]  }
  0x57   : > { %2376 = vmatprep.mubr.bf16.mxu1 %v4094_v7  ;;  %2954 = vmatprep.mubr.bf16.mxu0 %v4098_v9  ;;  %v4933_v7 = vld [vmem:[%s6359_s1 + $0x1c8] sm:$0xff]   ;;  %v316_v9 = vld [vmem:[%s5189_s7 + $0x2a0] sm:$0xff] }
  0x58   : > { %2618 = vmatpush1.bf16.msra.mxu1 %v4918_v5  ;;  %3196 = vmatpush1.bf16.msra.mxu0 %v4921_v8  ;;  %v4146_v5 = vcombine.high %v306_v63, %v310_v0  ;;  %v312_v8 = vld [vmem:[%s5189_s7 + $0x280] sm:$0xff]  ;;  %v366_v63 = vld [vmem:[%s5189_s7 + $0x430] sm:$0xff] }
  0x59   : > { %2619 = vmatprep.subr.bf16.mxu1 %v5078_v1  ;;  %3197 = vmatprep.subr.bf16.mxu0 %v5078_v1  ;;  %v4150_v14 = vcombine.high %v312_v8, %v316_v9 }
  0x5c   : > { %2620 = vmatpush1.bf16.msra.mxu1 %v4920_v12  ;;  %3198 = vmatpush1.bf16.msra.mxu0 %v4923_v15  ;;  %v4141_v12 = vcombine.low %v304_v61, %v308_v62  ;;  %v4154_v15 = vcombine.high %v314_v10, %v318_v11  ;;  %v364_v61 = vld [vmem:[%s5189_s7 + $0x420] sm:$0xff]  ;;  %v362_v62 = vld [vmem:[%s5189_s7 + $0x410] sm:$0xff] }
  0x5d   : > { %2621 = vmatprep.subr.bf16.mxu1 %v5078_v1  ;;  %3199 = vmatprep.subr.bf16.mxu0 %v5078_v1 }
  0x5e   : > { %2377 = vmatmul.mubr.bf16.gmra.mrb[12].mxu1 %v4093_v16  ;;  %2955 = vmatmul.mubr.bf16.gmra.mrb[12].mxu0 %v4097_v17  ;;  %v320_v16 = vld [vmem:[%s5189_s7 + $0x2c0] sm:$0xff] }
  0x5f   : > { %2384 = vmatprep.mubr.bf16.mxu1 %v4102_v18  ;;  %2962 = vmatprep.mubr.bf16.mxu0 %v4106_v19  ;;  %v324_v17 = vld [vmem:[%s5189_s7 + $0x2e0] sm:$0xff]  ;;  %v322_v18 = vld [vmem:[%s5189_s7 + $0x2d0] sm:$0xff] }
  0x60   : > { %2622 = vmatpush1.bf16.msra.mxu1 %v4922_v20  ;;  %3200 = vmatpush1.bf16.msra.mxu0 %v4926_v21  ;;  %v326_v19 = vld [vmem:[%s5189_s7 + $0x2f0] sm:$0xff]  ;;  %v4149_v20 = vcombine.low %v312_v8, %v316_v9  ;;  %v4153_v21 = vcombine.low %v314_v10, %v318_v11  ;;  %v4158_v22 = vcombine.high %v320_v16, %v324_v17 }
  0x61   : > { %2623 = vmatprep.subr.bf16.mxu1 %v5078_v1  ;;  %3201 = vmatprep.subr.bf16.mxu0 %v5078_v1  ;;  %v4162_v23 = vcombine.high %v322_v18, %v326_v19  ;;  %v374_v8 = vld [vmem:[%s5189_s7 + $0x470] sm:$0xff]  ;;  %v4201_v10 = vcombine.low %v362_v62, %v366_v63 }
  0x64   : > { %2624 = vmatpush1.bf16.msra.mxu1 %v4924_v24  ;;  %3202 = vmatpush1.bf16.msra.mxu0 %v4928_v27  ;;  %v4934_v24 = vld [vmem:[%s6359_s1 + $0xe8] sm:$0xff]   ;;  %v330_v27 = vld [vmem:[%s5189_s7 + $0x310] sm:$0xff] }
  0x65   : > { %2625 = vmatprep.subr.bf16.mxu1 %v5078_v1  ;;  %3203 = vmatprep.subr.bf16.mxu0 %v5078_v1 }
  0x66   : > { %2385 = vmatmul.mubr.bf16.gmra.mrb[16].mxu1 %v4101_v28  ;;  %2963 = vmatmul.mubr.bf16.gmra.mrb[16].mxu0 %v4105_v29  ;;  %v334_v28 = vld [vmem:[%s5189_s7 + $0x330] sm:$0xff]  ;;  %v4157_v29 = vcombine.low %v320_v16, %v324_v17 }
  0x67   : > { %2392 = vmatprep.mubr.bf16.mxu1 %v4110_v30  ;;  %2970 = vmatprep.mubr.bf16.mxu0 %v4114_v31  ;;  %v4161_v30 = vcombine.low %v322_v18, %v326_v19  ;;  %v4166_v31 = vcombine.high %v328_v25, %v332_v26  ;;  %v382_v16 = vld [vmem:[%s5189_s7 + $0x4b0] sm:$0xff] }
  0x68   : > { %2626 = vmatpush1.bf16.msra.mxu1 %v4925_v32  ;;  %3204 = vmatpush1.bf16.msra.mxu0 %v4930_v43  ;;  %v4170_v32 = vcombine.high %v330_v27, %v334_v28  ;;  %v344_v43 = vld [vmem:[%s5189_s7 + $0x380] sm:$0xff] }
  0x69   : > { %2627 = vmatprep.subr.bf16.mxu1 %v5078_v1  ;;  %3205 = vmatprep.subr.bf16.mxu0 %v5078_v1 }
  0x6c   : > { %2628 = vmatpush1.bf16.msra.mxu1 %v4927_v35  ;;  %3206 = vmatpush1.bf16.msra.mxu0 %v4933_v7  ;;  %v340_v35 = vld [vmem:[%s5189_s7 + $0x360] sm:$0xff]  ;;  %v370_v7 = vld [vmem:[%s5189_s7 + $0x450] sm:$0xff] }
  0x6d   : > { %2629 = vmatprep.subr.bf16.mxu1 %v5078_v1  ;;  %3207 = vmatprep.subr.bf16.mxu0 %v5078_v1  ;;  %v4173_v47 = vcombine.low %v336_v34, %v340_v35  ;;  %v4209_v18 = vcombine.low %v370_v7, %v374_v8 }
  0x6e   : > { %2393 = vmatmul.mubr.bf16.gmra.mrb[20].mxu1 %v4109_v38  ;;  %2971 = vmatmul.mubr.bf16.gmra.mrb[20].mxu0 %v4113_v39  ;;  %v4165_v38 = vcombine.low %v328_v25, %v332_v26  ;;  %v4169_v39 = vcombine.low %v330_v27, %v334_v28 }
  0x6f   : > { %2400 = vmatprep.mubr.bf16.mxu1 %v4118_v40  ;;  %2978 = vmatprep.mubr.bf16.mxu0 %v4122_v41  ;;  %v4174_v40 = vcombine.high %v336_v34, %v340_v35  ;;  %v4178_v41 = vcombine.high %v338_v36, %v342_v37 }
  0x70   : > { %2630 = vmatpush1.bf16.msra.mxu1 %v4929_v42  ;;  %3208 = vmatpush1.bf16.msra.mxu0 %v4935_v33  ;;  %v4936_v42 = vld [vmem:[%s6359_s1 + $0xf0] sm:$0xff]  }
  0x71   : > { %2631 = vmatprep.subr.bf16.mxu1 %v5078_v1  ;;  %3209 = vmatprep.subr.bf16.mxu0 %v5078_v1 }
  0x74   : > { %2632 = vmatpush1.bf16.msra.mxu1 %v4931_v52  ;;  %v352_v52 = vld [vmem:[%s5189_s7 + $0x3c0] sm:$0xff] }
  0x75   : > { %2633 = vmatprep.subr.bf16.mxu1 %v5078_v1  ;;  %v4189_v0 = vcombine.low %v352_v52, %v356_v53 }
  0x76   : > { %2401 = vmatmul.mubr.bf16.gmra.mrb[24].mxu1 %v4117_v48  ;;  %2979 = vmatmul.mubr.bf16.gmra.mrb[24].mxu0 %v4121_v49  ;;  %v4177_v48 = vcombine.low %v338_v36, %v342_v37  ;;  %v4182_v49 = vcombine.high %v344_v43, %v348_v44  ;;  %v400_v37 = vld [vmem:[%s5189_s7 + $0x540] sm:$0xff] }
  0x77   : > { %2408 = vmatprep.mubr.bf16.mxu1 %v4126_v50  ;;  %2986 = vmatprep.mubr.bf16.mxu0 %v4130_v51  ;;  %v4186_v50 = vcombine.high %v346_v45, %v350_v46  ;;  %v4937_v51 = vld [vmem:[%s6359_s1 + $0x1d8] sm:$0xff]   ;;  %v408_v45 = vld [vmem:[%s5189_s7 + $0x580] sm:$0xff] }
  0x78   : > { %2634 = vmatpush1.bf16.msra.mxu1 %v4932_v6  ;;  %3210 = vmatpush1.bf16.msra.mxu0 %v4937_v51  ;;  %v372_v6 = vld [vmem:[%s5189_s7 + $0x460] sm:$0xff] }
  0x79   : > { %2635 = vmatprep.subr.bf16.mxu1 %v5078_v1  ;;  %v412_v46 = vld [vmem:[%s5189_s7 + $0x5a0] sm:$0xff] }
  0x7a   : > { %v4246_v51 = vcombine.high %v408_v45, %v412_v46 }
  0x7c   : > { %2636 = vmatpush1.bf16.msra.mxu1 %v4934_v24  ;;  %v390_v24 = vld [vmem:[%s5189_s7 + $0x4f0] sm:$0xff] }
  0x7d   : > { %2637 = vmatprep.subr.bf16.mxu1 %v5078_v1 }
  0x7e   : > { %2409 = vmatmul.mubr.bf16.gmra.mrb[28].mxu1 %v4125_v57  ;;  %2987 = vmatmul.mubr.bf16.gmra.mrb[28].mxu0 %v4129_v58  ;;  %v4190_v57 = vcombine.high %v352_v52, %v356_v53  ;;  %v4194_v58 = vcombine.high %v354_v54, %v358_v55  ;;  %v416_v53 = vld [vmem:[%s5189_s7 + $0x5c0] sm:$0xff] }
  0x7f   : > { %2416 = vmatprep.mubr.bf16.mxu1 %v4134_v59  ;;  %2994 = vmatprep.mubr.bf16.mxu0 %v4138_v60  ;;  %v4938_v59 = vld [vmem:[%s6359_s1 + $0xf8] sm:$0xff]   ;;  %v360_v60 = vld [vmem:[%s5189_s7 + $0x400] sm:$0xff] }
  0x80   : > { %2638 = vmatpush1.bf16.msra.mxu1 %v4936_v42  ;;  %v4197_v9 = vcombine.low %v360_v60, %v364_v61 }
  0x81   : > { %2639 = vmatprep.subr.bf16.mxu1 %v5078_v1  ;;  %v4181_v1 = vcombine.low %v344_v43, %v348_v44 }
  0x84   : > { %2640 = vmatpush1.bf16.msra.mxu1 %v4938_v59 }
  0x86   : > { %2417 = vmatmul.mubr.bf16.gmra.mrb[32].mxu1 %v4133_v2  ;;  %2995 = vmatmul.mubr.bf16.gmra.mrb[32].mxu0 %v4137_v3  ;;  %v4193_v2 = vcombine.low %v354_v54, %v358_v55  ;;  %v4198_v3 = vcombine.high %v360_v60, %v364_v61  ;;  %v420_v54 = vld [vmem:[%s5189_s7 + $0x5e0] sm:$0xff]  ;;  %v418_v55 = vld [vmem:[%s5189_s7 + $0x5d0] sm:$0xff] }
  0x87   : > { %2424 = vmatprep.mubr.bf16.mxu1 %v4142_v4  ;;  %3002 = vmatprep.mubr.bf16.mxu0 %v4146_v5  ;;  %v4202_v4 = vcombine.high %v362_v62, %v366_v63  ;;  %v368_v5 = vld [vmem:[%s5189_s7 + $0x440] sm:$0xff]  ;;  %v426_v62 = vld [vmem:[%s5189_s7 + $0x610] sm:$0xff] }
  0x88   : > { %v4206_v11 = vcombine.high %v368_v5, %v372_v6  ;;  %v4205_v17 = vcombine.low %v368_v5, %v372_v6  ;;  %v424_v60 = vld [vmem:[%s5189_s7 + $0x600] sm:$0xff]  ;;  %v430_v63 = vld [vmem:[%s5189_s7 + $0x630] sm:$0xff] }
  0x89   : > { %v428_v61 = vld [vmem:[%s5189_s7 + $0x620] sm:$0xff] }
  0x8a   : > { %v432_v5 = vld [vmem:[%s5189_s7 + $0x640] sm:$0xff] }
  0x8b   : > { %v436_v6 = vld [vmem:[%s5189_s7 + $0x660] sm:$0xff] }
  0x8e   : > { %2425 = vmatmul.mubr.bf16.gmra.mrb[36].mxu1 %v4141_v12  ;;  %3003 = vmatmul.mubr.bf16.gmra.mrb[36].mxu0 %v4145_v13  ;;  %v4210_v12 = vcombine.high %v370_v7, %v374_v8  ;;  %v376_v13 = vld [vmem:[%s5189_s7 + $0x480] sm:$0xff]  ;;  %v434_v7 = vld [vmem:[%s5189_s7 + $0x650] sm:$0xff] }
  0x8f   : > { %2432 = vmatprep.mubr.bf16.mxu1 %v4150_v14  ;;  %3010 = vmatprep.mubr.bf16.mxu0 %v4154_v15  ;;  %v380_v14 = vld [vmem:[%s5189_s7 + $0x4a0] sm:$0xff]  ;;  %v378_v15 = vld [vmem:[%s5189_s7 + $0x490] sm:$0xff] }
  0x90   : > { %v4214_v19 = vcombine.high %v376_v13, %v380_v14  ;;  %v4213_v25 = vcombine.low %v376_v13, %v380_v14  ;;  %v4217_v26 = vcombine.low %v378_v15, %v382_v16  ;;  %v438_v8 = vld [vmem:[%s5189_s7 + $0x670] sm:$0xff]  ;;  %v440_v13 = vld [vmem:[%s5189_s7 + $0x680] sm:$0xff] }
  0x91   : > { %v444_v14 = vld [vmem:[%s5189_s7 + $0x6a0] sm:$0xff] }
  0x96   : > { %2433 = vmatmul.mubr.bf16.gmra.mrb[40].mxu1 %v4149_v20  ;;  %3011 = vmatmul.mubr.bf16.gmra.mrb[40].mxu0 %v4153_v21  ;;  %v4218_v20 = vcombine.high %v378_v15, %v382_v16  ;;  %v384_v21 = vld [vmem:[%s5189_s7 + $0x4c0] sm:$0xff]  ;;  %v442_v15 = vld [vmem:[%s5189_s7 + $0x690] sm:$0xff] }
  0x97   : > { %2440 = vmatprep.mubr.bf16.mxu1 %v4158_v22  ;;  %3018 = vmatprep.mubr.bf16.mxu0 %v4162_v23  ;;  %v388_v22 = vld [vmem:[%s5189_s7 + $0x4e0] sm:$0xff]  ;;  %v386_v23 = vld [vmem:[%s5189_s7 + $0x4d0] sm:$0xff] }
  0x98   : > { %v4222_v27 = vcombine.high %v384_v21, %v388_v22  ;;  %v4226_v28 = vcombine.high %v386_v23, %v390_v24  ;;  %v4221_v33 = vcombine.low %v384_v21, %v388_v22  ;;  %v4225_v34 = vcombine.low %v386_v23, %v390_v24  ;;  %v446_v16 = vld [vmem:[%s5189_s7 + $0x6b0] sm:$0xff]  ;;  %v448_v21 = vld [vmem:[%s5189_s7 + $0x6c0] sm:$0xff] }
  0x99   : > { %v452_v22 = vld [vmem:[%s5189_s7 + $0x6e0] sm:$0xff]  ;;  %v450_v23 = vld [vmem:[%s5189_s7 + $0x6d0] sm:$0xff] }
  0x9a   : > { %v454_v24 = vld [vmem:[%s5189_s7 + $0x6f0] sm:$0xff] }
  0x9e   : > { %2441 = vmatmul.mubr.bf16.gmra.mrb[44].mxu1 %v4157_v29  ;;  %3019 = vmatmul.mubr.bf16.gmra.mrb[44].mxu0 %v4161_v30  ;;  %v392_v29 = vld [vmem:[%s5189_s7 + $0x500] sm:$0xff] }
  0x9f   : > { %2448 = vmatprep.mubr.bf16.mxu1 %v4166_v31  ;;  %3026 = vmatprep.mubr.bf16.mxu0 %v4170_v32  ;;  %v396_v30 = vld [vmem:[%s5189_s7 + $0x520] sm:$0xff]  ;;  %v394_v31 = vld [vmem:[%s5189_s7 + $0x510] sm:$0xff] }
  0xa0   : > { %v398_v32 = vld [vmem:[%s5189_s7 + $0x530] sm:$0xff]  ;;  %v4230_v35 = vcombine.high %v392_v29, %v396_v30 }
  0xa1   : > { %v4234_v36 = vcombine.high %v394_v31, %v398_v32  ;;  %v4233_v42 = vcombine.low %v394_v31, %v398_v32  ;;  %v458_v31 = vld [vmem:[%s5189_s7 + $0x710] sm:$0xff] }
  0xa2   : > { %v462_v32 = vld [vmem:[%s5189_s7 + $0x730] sm:$0xff] }
  0xa6   : > { %2449 = vmatmul.mubr.bf16.gmra.mrb[48].mxu1 %v4165_v38  ;;  %3027 = vmatmul.mubr.bf16.gmra.mrb[48].mxu0 %v4169_v39  ;;  %v404_v38 = vld [vmem:[%s5189_s7 + $0x560] sm:$0xff]  ;;  %v402_v39 = vld [vmem:[%s5189_s7 + $0x550] sm:$0xff] }
  0xa7   : > { %2456 = vmatprep.mubr.bf16.mxu1 %v4174_v40  ;;  %3034 = vmatprep.mubr.bf16.mxu0 %v4178_v41  ;;  %v406_v40 = vld [vmem:[%s5189_s7 + $0x570] sm:$0xff]  ;;  %v4229_v41 = vcombine.low %v392_v29, %v396_v30  ;;  %v4238_v43 = vcombine.high %v400_v37, %v404_v38  ;;  %v456_v29 = vld [vmem:[%s5189_s7 + $0x700] sm:$0xff] }
  0xa8   : > { %v4242_v44 = vcombine.high %v402_v39, %v406_v40  ;;  %v460_v30 = vld [vmem:[%s5189_s7 + $0x720] sm:$0xff] }
  0xae   : > { %2457 = vmatmul.mubr.bf16.gmra.mrb[52].mxu1 %v4173_v47  ;;  %3035 = vmatmul.mubr.bf16.gmra.mrb[52].mxu0 %v4177_v48  ;;  %v410_v47 = vld [vmem:[%s5189_s7 + $0x590] sm:$0xff] }
  0xaf   : > { %2464 = vmatprep.mubr.bf16.mxu1 %v4182_v49  ;;  %3042 = vmatprep.mubr.bf16.mxu0 %v4186_v50  ;;  %v414_v48 = vld [vmem:[%s5189_s7 + $0x5b0] sm:$0xff]  ;;  %v4237_v49 = vcombine.low %v400_v37, %v404_v38  ;;  %v4241_v50 = vcombine.low %v402_v39, %v406_v40  ;;  %v464_v37 = vld [vmem:[%s5189_s7 + $0x740] sm:$0xff] }
  0xb0   : > { %v4250_v52 = vcombine.high %v410_v47, %v414_v48  ;;  %v468_v38 = vld [vmem:[%s5189_s7 + $0x760] sm:$0xff]  ;;  %v466_v39 = vld [vmem:[%s5189_s7 + $0x750] sm:$0xff] }
  0xb1   : > { %v470_v40 = vld [vmem:[%s5189_s7 + $0x770] sm:$0xff] }
  0xb6   : > { %2465 = vmatmul.mubr.bf16.gmra.mrb[56].mxu1 %v4181_v1  ;;  %3043 = vmatmul.mubr.bf16.gmra.mrb[56].mxu0 %v4185_v56  ;;  %v422_v1 = vld [vmem:[%s5189_s7 + $0x5f0] sm:$0xff]  ;;  %v4245_v56 = vcombine.low %v408_v45, %v412_v46  ;;  %v472_v45 = vld [vmem:[%s5189_s7 + $0x780] sm:$0xff] }
  0xb7   : > { %2472 = vmatprep.mubr.bf16.mxu1 %v4190_v57  ;;  %3050 = vmatprep.mubr.bf16.mxu0 %v4194_v58  ;;  %v4249_v57 = vcombine.low %v410_v47, %v414_v48  ;;  %v4254_v58 = vcombine.high %v416_v53, %v420_v54  ;;  %v4258_v59 = vcombine.high %v418_v55, %v422_v1  ;;  %v476_v46 = vld [vmem:[%s5189_s7 + $0x7a0] sm:$0xff]  ;;  %v474_v47 = vld [vmem:[%s5189_s7 + $0x790] sm:$0xff] }
  0xb8   : > { %v478_v48 = vld [vmem:[%s5189_s7 + $0x7b0] sm:$0xff] }
  0xbe   : > { %2473 = vmatmul.mubr.bf16.gmra.mrb[60].mxu1 %v4189_v0  ;;  %3051 = vmatmul.mubr.bf16.gmra.mrb[60].mxu0 %v4193_v2  ;;  %v4253_v0 = vcombine.low %v416_v53, %v420_v54  ;;  %v4257_v2 = vcombine.low %v418_v55, %v422_v1  ;;  %v480_v53 = vld [vmem:[%s5189_s7 + $0x7c0] sm:$0xff]  ;;  %v482_v55 = vld [vmem:[%s5189_s7 + $0x7d0] sm:$0xff] }
  0xbf   : > { %2480 = vmatprep.mubr.bf16.mxu1 %v4198_v3  ;;  %3058 = vmatprep.mubr.bf16.mxu0 %v4202_v4  ;;  %v4262_v3 = vcombine.high %v424_v60, %v428_v61  ;;  %v4266_v4 = vcombine.high %v426_v62, %v430_v63  ;;  %v484_v54 = vld [vmem:[%s5189_s7 + $0x7e0] sm:$0xff]  ;;  %v486_v1 = vld [vmem:[%s5189_s7 + $0x7f0] sm:$0xff] }
  0xc6   : > { %2481 = vmatmul.mubr.bf16.gmra.mrb[64].mxu1 %v4197_v9  ;;  %3059 = vmatmul.mubr.bf16.gmra.mrb[64].mxu0 %v4201_v10  ;;  %v4261_v9 = vcombine.low %v424_v60, %v428_v61  ;;  %v4265_v10 = vcombine.low %v426_v62, %v430_v63  ;;  %v233_v60 = vld [vmem:[%s5189_s7 + $0x8] sm:$0xff]  ;;  %v235_v62 = vld [vmem:[%s5189_s7 + $0x18] sm:$0xff] }
  0xc7   : > { %2488 = vmatprep.mubr.bf16.mxu1 %v4206_v11  ;;  %3066 = vmatprep.mubr.bf16.mxu0 %v4210_v12  ;;  %v4270_v11 = vcombine.high %v432_v5, %v436_v6  ;;  %v4274_v12 = vcombine.high %v434_v7, %v438_v8  ;;  %v237_v61 = vld [vmem:[%s5189_s7 + $0x28] sm:$0xff]  ;;  %v239_v63 = vld [vmem:[%s5189_s7 + $0x38] sm:$0xff] }
  0xce   : > { %2489 = vmatmul.mubr.bf16.gmra.mrb[68].mxu1 %v4205_v17  ;;  %3067 = vmatmul.mubr.bf16.gmra.mrb[68].mxu0 %v4209_v18  ;;  %v4269_v17 = vcombine.low %v432_v5, %v436_v6  ;;  %v4273_v18 = vcombine.low %v434_v7, %v438_v8  ;;  %v241_v5 = vld [vmem:[%s5189_s7 + $0x48] sm:$0xff]  ;;  %v243_v7 = vld [vmem:[%s5189_s7 + $0x58] sm:$0xff] }
  0xcf   : > { %2496 = vmatprep.mubr.bf16.mxu1 %v4214_v19  ;;  %3074 = vmatprep.mubr.bf16.mxu0 %v4218_v20  ;;  %v4278_v19 = vcombine.high %v440_v13, %v444_v14  ;;  %v4282_v20 = vcombine.high %v442_v15, %v446_v16  ;;  %v245_v6 = vld [vmem:[%s5189_s7 + $0x68] sm:$0xff]  ;;  %v247_v8 = vld [vmem:[%s5189_s7 + $0x78] sm:$0xff] }
  0xd6   : > { %2497 = vmatmul.mubr.bf16.gmra.mrb[72].mxu1 %v4213_v25  ;;  %3075 = vmatmul.mubr.bf16.gmra.mrb[72].mxu0 %v4217_v26  ;;  %v4277_v25 = vcombine.low %v440_v13, %v444_v14  ;;  %v4281_v26 = vcombine.low %v442_v15, %v446_v16  ;;  %v249_v13 = vld [vmem:[%s5189_s7 + $0x88] sm:$0xff]  ;;  %v251_v15 = vld [vmem:[%s5189_s7 + $0x98] sm:$0xff] }
  0xd7   : > { %2504 = vmatprep.mubr.bf16.mxu1 %v4222_v27  ;;  %3082 = vmatprep.mubr.bf16.mxu0 %v4226_v28  ;;  %v4286_v27 = vcombine.high %v448_v21, %v452_v22  ;;  %v4290_v28 = vcombine.high %v450_v23, %v454_v24  ;;  %v253_v14 = vld [vmem:[%s5189_s7 + $0xa8] sm:$0xff]  ;;  %v255_v16 = vld [vmem:[%s5189_s7 + $0xb8] sm:$0xff] }
  0xde   : > { %2505 = vmatmul.mubr.bf16.gmra.mrb[76].mxu1 %v4221_v33  ;;  %3083 = vmatmul.mubr.bf16.gmra.mrb[76].mxu0 %v4225_v34  ;;  %v4285_v33 = vcombine.low %v448_v21, %v452_v22  ;;  %v4289_v34 = vcombine.low %v450_v23, %v454_v24  ;;  %v257_v21 = vld [vmem:[%s5189_s7 + $0xc8] sm:$0xff]  ;;  %v259_v23 = vld [vmem:[%s5189_s7 + $0xd8] sm:$0xff] }
  0xdf   : > { %2512 = vmatprep.mubr.bf16.mxu1 %v4230_v35  ;;  %3090 = vmatprep.mubr.bf16.mxu0 %v4234_v36  ;;  %v4294_v35 = vcombine.high %v456_v29, %v460_v30  ;;  %v4298_v36 = vcombine.high %v458_v31, %v462_v32  ;;  %v261_v22 = vld [vmem:[%s5189_s7 + $0xe8] sm:$0xff]  ;;  %v263_v24 = vld [vmem:[%s5189_s7 + $0xf8] sm:$0xff] }
  0xe6   : > { %2513 = vmatmul.mubr.bf16.gmra.mrb[80].mxu1 %v4229_v41  ;;  %3091 = vmatmul.mubr.bf16.gmra.mrb[80].mxu0 %v4233_v42  ;;  %v4293_v41 = vcombine.low %v456_v29, %v460_v30  ;;  %v4297_v42 = vcombine.low %v458_v31, %v462_v32  ;;  %v265_v29 = vld [vmem:[%s5189_s7 + $0x108] sm:$0xff]  ;;  %v267_v31 = vld [vmem:[%s5189_s7 + $0x118] sm:$0xff] }
  0xe7   : > { %2520 = vmatprep.mubr.bf16.mxu1 %v4238_v43  ;;  %3098 = vmatprep.mubr.bf16.mxu0 %v4242_v44  ;;  %v4302_v43 = vcombine.high %v464_v37, %v468_v38  ;;  %v4306_v44 = vcombine.high %v466_v39, %v470_v40  ;;  %v269_v30 = vld [vmem:[%s5189_s7 + $0x128] sm:$0xff]  ;;  %v271_v32 = vld [vmem:[%s5189_s7 + $0x138] sm:$0xff] }
  0xee   : > { %2521 = vmatmul.mubr.bf16.gmra.mrb[84].mxu1 %v4237_v49  ;;  %3099 = vmatmul.mubr.bf16.gmra.mrb[84].mxu0 %v4241_v50  ;;  %v4301_v49 = vcombine.low %v464_v37, %v468_v38  ;;  %v4305_v50 = vcombine.low %v466_v39, %v470_v40  ;;  %v273_v37 = vld [vmem:[%s5189_s7 + $0x148] sm:$0xff]  ;;  %v275_v39 = vld [vmem:[%s5189_s7 + $0x158] sm:$0xff] }
  0xef   : > { %2528 = vmatprep.mubr.bf16.mxu1 %v4246_v51  ;;  %3106 = vmatprep.mubr.bf16.mxu0 %v4250_v52  ;;  %v4310_v51 = vcombine.high %v472_v45, %v476_v46  ;;  %v4314_v52 = vcombine.high %v474_v47, %v478_v48  ;;  %v277_v38 = vld [vmem:[%s5189_s7 + $0x168] sm:$0xff]  ;;  %v279_v40 = vld [vmem:[%s5189_s7 + $0x178] sm:$0xff] }
  0xf6   : > { %2529 = vmatmul.mubr.bf16.gmra.mrb[88].mxu1 %v4245_v56  ;;  %3107 = vmatmul.mubr.bf16.gmra.mrb[88].mxu0 %v4249_v57  ;;  %v4309_v56 = vcombine.low %v472_v45, %v476_v46  ;;  %v4313_v57 = vcombine.low %v474_v47, %v478_v48  ;;  %v281_v45 = vld [vmem:[%s5189_s7 + $0x188] sm:$0xff]  ;;  %v283_v47 = vld [vmem:[%s5189_s7 + $0x198] sm:$0xff] }
  0xf7   : > { %2536 = vmatprep.mubr.bf16.mxu1 %v4254_v58  ;;  %3114 = vmatprep.mubr.bf16.mxu0 %v4258_v59  ;;  %v4318_v58 = vcombine.high %v480_v53, %v484_v54  ;;  %v4322_v59 = vcombine.high %v482_v55, %v486_v1  ;;  %v285_v46 = vld [vmem:[%s5189_s7 + $0x1a8] sm:$0xff]  ;;  %v287_v48 = vld [vmem:[%s5189_s7 + $0x1b8] sm:$0xff] }
  0xfe   : > { %2537 = vmatmul.mubr.bf16.gmra.mrb[92].mxu1 %v4253_v0  ;;  %3115 = vmatmul.mubr.bf16.gmra.mrb[92].mxu0 %v4257_v2  ;;  %v4317_v0 = vcombine.low %v480_v53, %v484_v54  ;;  %v4321_v2 = vcombine.low %v482_v55, %v486_v1  ;;  %v289_v53 = vld [vmem:[%s5189_s7 + $0x1c8] sm:$0xff]  ;;  %v291_v55 = vld [vmem:[%s5189_s7 + $0x1d8] sm:$0xff] }
  0xff   : > { %2544 = vmatprep.mubr.bf16.mxu1 %v4262_v3  ;;  %3122 = vmatprep.mubr.bf16.mxu0 %v4266_v4  ;;  %v4072_v3 = vcombine.high %v233_v60, %v237_v61  ;;  %v4076_v4 = vcombine.high %v235_v62, %v239_v63  ;;  %v293_v54 = vld [vmem:[%s5189_s7 + $0x1e8] sm:$0xff]  ;;  %v295_v1 = vld [vmem:[%s5189_s7 + $0x1f8] sm:$0xff] }
 0x106   : > { %2545 = vmatmul.mubr.bf16.gmra.mrb[96].mxu1 %v4261_v9  ;;  %3123 = vmatmul.mubr.bf16.gmra.mrb[96].mxu0 %v4265_v10  ;;  %v4071_v9 = vcombine.low %v233_v60, %v237_v61  ;;  %v4075_v10 = vcombine.low %v235_v62, %v239_v63  ;;  %v297_v60 = vld [vmem:[%s5189_s7 + $0x208] sm:$0xff]  ;;  %v299_v62 = vld [vmem:[%s5189_s7 + $0x218] sm:$0xff] }
 0x107   : > { %2552 = vmatprep.mubr.bf16.mxu1 %v4270_v11  ;;  %3130 = vmatprep.mubr.bf16.mxu0 %v4274_v12  ;;  %v4080_v11 = vcombine.high %v241_v5, %v245_v6  ;;  %v4084_v12 = vcombine.high %v243_v7, %v247_v8  ;;  %v301_v61 = vld [vmem:[%s5189_s7 + $0x228] sm:$0xff]  ;;  %v303_v63 = vld [vmem:[%s5189_s7 + $0x238] sm:$0xff] }
 0x10e   : > { %2553 = vmatmul.mubr.bf16.gmra.mrb[100].mxu1 %v4269_v17  ;;  %3131 = vmatmul.mubr.bf16.gmra.mrb[100].mxu0 %v4273_v18  ;;  %v4079_v17 = vcombine.low %v241_v5, %v245_v6  ;;  %v4083_v18 = vcombine.low %v243_v7, %v247_v8  ;;  %v305_v5 = vld [vmem:[%s5189_s7 + $0x248] sm:$0xff]  ;;  %v307_v7 = vld [vmem:[%s5189_s7 + $0x258] sm:$0xff] }
 0x10f   : > { %2560 = vmatprep.mubr.bf16.mxu1 %v4278_v19  ;;  %3138 = vmatprep.mubr.bf16.mxu0 %v4282_v20  ;;  %v4088_v19 = vcombine.high %v249_v13, %v253_v14  ;;  %v4092_v20 = vcombine.high %v251_v15, %v255_v16  ;;  %v309_v6 = vld [vmem:[%s5189_s7 + $0x268] sm:$0xff]  ;;  %v311_v8 = vld [vmem:[%s5189_s7 + $0x278] sm:$0xff] }
 0x116   : > { %2561 = vmatmul.mubr.bf16.gmra.mrb[104].mxu1 %v4277_v25  ;;  %3139 = vmatmul.mubr.bf16.gmra.mrb[104].mxu0 %v4281_v26  ;;  %v4087_v25 = vcombine.low %v249_v13, %v253_v14  ;;  %v4091_v26 = vcombine.low %v251_v15, %v255_v16  ;;  %v313_v13 = vld [vmem:[%s5189_s7 + $0x288] sm:$0xff]  ;;  %v315_v15 = vld [vmem:[%s5189_s7 + $0x298] sm:$0xff] }
 0x117   : > { %2568 = vmatprep.mubr.bf16.mxu1 %v4286_v27  ;;  %3146 = vmatprep.mubr.bf16.mxu0 %v4290_v28  ;;  %v4096_v27 = vcombine.high %v257_v21, %v261_v22  ;;  %v4100_v28 = vcombine.high %v259_v23, %v263_v24  ;;  %v317_v14 = vld [vmem:[%s5189_s7 + $0x2a8] sm:$0xff]  ;;  %v319_v16 = vld [vmem:[%s5189_s7 + $0x2b8] sm:$0xff] }
 0x11e   : > { %2569 = vmatmul.mubr.bf16.gmra.mrb[108].mxu1 %v4285_v33  ;;  %3147 = vmatmul.mubr.bf16.gmra.mrb[108].mxu0 %v4289_v34  ;;  %v4095_v33 = vcombine.low %v257_v21, %v261_v22  ;;  %v4099_v34 = vcombine.low %v259_v23, %v263_v24  ;;  %v321_v21 = vld [vmem:[%s5189_s7 + $0x2c8] sm:$0xff]  ;;  %v323_v23 = vld [vmem:[%s5189_s7 + $0x2d8] sm:$0xff] }
 0x11f   : > { %2576 = vmatprep.mubr.bf16.mxu1 %v4294_v35  ;;  %3154 = vmatprep.mubr.bf16.mxu0 %v4298_v36  ;;  %v4104_v35 = vcombine.high %v265_v29, %v269_v30  ;;  %v4108_v36 = vcombine.high %v267_v31, %v271_v32  ;;  %v325_v22 = vld [vmem:[%s5189_s7 + $0x2e8] sm:$0xff]  ;;  %v327_v24 = vld [vmem:[%s5189_s7 + $0x2f8] sm:$0xff] }
 0x126   : > { %2577 = vmatmul.mubr.bf16.gmra.mrb[112].mxu1 %v4293_v41  ;;  %3155 = vmatmul.mubr.bf16.gmra.mrb[112].mxu0 %v4297_v42  ;;  %v4103_v41 = vcombine.low %v265_v29, %v269_v30  ;;  %v4107_v42 = vcombine.low %v267_v31, %v271_v32  ;;  %v329_v29 = vld [vmem:[%s5189_s7 + $0x308] sm:$0xff]  ;;  %v331_v31 = vld [vmem:[%s5189_s7 + $0x318] sm:$0xff] }
 0x127   : > { %2584 = vmatprep.mubr.bf16.mxu1 %v4302_v43  ;;  %3162 = vmatprep.mubr.bf16.mxu0 %v4306_v44  ;;  %v4112_v43 = vcombine.high %v273_v37, %v277_v38  ;;  %v4116_v44 = vcombine.high %v275_v39, %v279_v40  ;;  %v333_v30 = vld [vmem:[%s5189_s7 + $0x328] sm:$0xff]  ;;  %v335_v32 = vld [vmem:[%s5189_s7 + $0x338] sm:$0xff] }
 0x12e   : > { %2585 = vmatmul.mubr.bf16.gmra.mrb[116].mxu1 %v4301_v49  ;;  %3163 = vmatmul.mubr.bf16.gmra.mrb[116].mxu0 %v4305_v50  ;;  %v4111_v49 = vcombine.low %v273_v37, %v277_v38  ;;  %v4115_v50 = vcombine.low %v275_v39, %v279_v40  ;;  %v337_v37 = vld [vmem:[%s5189_s7 + $0x348] sm:$0xff]  ;;  %v339_v39 = vld [vmem:[%s5189_s7 + $0x358] sm:$0xff] }
 0x12f   : > { %2592 = vmatprep.mubr.bf16.mxu1 %v4310_v51  ;;  %3170 = vmatprep.mubr.bf16.mxu0 %v4314_v52  ;;  %v4120_v51 = vcombine.high %v281_v45, %v285_v46  ;;  %v4124_v52 = vcombine.high %v283_v47, %v287_v48  ;;  %v341_v38 = vld [vmem:[%s5189_s7 + $0x368] sm:$0xff]  ;;  %v343_v40 = vld [vmem:[%s5189_s7 + $0x378] sm:$0xff] }
 0x136   : > { %2593 = vmatmul.mubr.bf16.gmra.mrb[120].mxu1 %v4309_v56  ;;  %3171 = vmatmul.mubr.bf16.gmra.mrb[120].mxu0 %v4313_v57  ;;  %v4119_v56 = vcombine.low %v281_v45, %v285_v46  ;;  %v4123_v57 = vcombine.low %v283_v47, %v287_v48  ;;  %v345_v45 = vld [vmem:[%s5189_s7 + $0x388] sm:$0xff]  ;;  %v347_v47 = vld [vmem:[%s5189_s7 + $0x398] sm:$0xff] }
 0x137   : > { %2600 = vmatprep.mubr.bf16.mxu1 %v4318_v58  ;;  %3178 = vmatprep.mubr.bf16.mxu0 %v4322_v59  ;;  %v4128_v58 = vcombine.high %v289_v53, %v293_v54  ;;  %v4132_v59 = vcombine.high %v291_v55, %v295_v1  ;;  %v349_v46 = vld [vmem:[%s5189_s7 + $0x3a8] sm:$0xff]  ;;  %v351_v48 = vld [vmem:[%s5189_s7 + $0x3b8] sm:$0xff] }
 0x13e   : > { %2601 = vmatmul.mubr.bf16.gmra.mrb[124].mxu1 %v4317_v0  ;;  %3179 = vmatmul.mubr.bf16.gmra.mrb[124].mxu0 %v4321_v2  ;;  %v4127_v0 = vcombine.low %v289_v53, %v293_v54  ;;  %v4131_v2 = vcombine.low %v291_v55, %v295_v1  ;;  %v353_v53 = vld [vmem:[%s5189_s7 + $0x3c8] sm:$0xff]  ;;  %v355_v55 = vld [vmem:[%s5189_s7 + $0x3d8] sm:$0xff] }
 0x13f   : > { %2641 = vmatprep.mubr.bf16.mxu1 %v4072_v3  ;;  %4385 = vmatprep.mubr.msk.bf16.mxu0 %vm2223_vm0, %v4076_v4  ;;  %v4136_v3 = vcombine.high %v297_v60, %v301_v61  ;;  %v4140_v4 = vcombine.high %v299_v62, %v303_v63  ;;  %v357_v54 = vld [vmem:[%s5189_s7 + $0x3e8] sm:$0xff]  ;;  %v359_v1 = vld [vmem:[%s5189_s7 + $0x3f8] sm:$0xff] }
 0x146   : > { %2642 = vmatmul.mubr.bf16.vlgmr.msra.gmra.mrb[0].mxu1 %v4071_v9  ;;  %3220 = vmatmul.mubr.bf16.vlgmr.msra.gmra.mrb[0].mxu0 %v4075_v10  ;;  %v4135_v9 = vcombine.low %v297_v60, %v301_v61  ;;  %v4139_v10 = vcombine.low %v299_v62, %v303_v63  ;;  %v361_v60 = vld [vmem:[%s5189_s7 + $0x408] sm:$0xff]  ;;  %v363_v62 = vld [vmem:[%s5189_s7 + $0x418] sm:$0xff] }
 0x147   : > { %2649 = vmatprep.mubr.bf16.mxu1 %v4080_v11  ;;  %4386 = vmatprep.mubr.msk.bf16.mxu0 %vm2223_vm0, %v4084_v12  ;;  %v4144_v11 = vcombine.high %v305_v5, %v309_v6  ;;  %v4148_v12 = vcombine.high %v307_v7, %v311_v8  ;;  %v365_v61 = vld [vmem:[%s5189_s7 + $0x428] sm:$0xff]  ;;  %v367_v63 = vld [vmem:[%s5189_s7 + $0x438] sm:$0xff] }
 0x14e   : > { %2650 = vmatmul.mubr.bf16.gmra.mrb[4].mxu1 %v4079_v17  ;;  %3228 = vmatmul.mubr.bf16.gmra.mrb[4].mxu0 %v4083_v18  ;;  %v4143_v17 = vcombine.low %v305_v5, %v309_v6  ;;  %v4147_v18 = vcombine.low %v307_v7, %v311_v8  ;;  %v369_v5 = vld [vmem:[%s5189_s7 + $0x448] sm:$0xff]  ;;  %v371_v7 = vld [vmem:[%s5189_s7 + $0x458] sm:$0xff] }
 0x14f   : > { %2657 = vmatprep.mubr.bf16.mxu1 %v4088_v19  ;;  %4387 = vmatprep.mubr.msk.bf16.mxu0 %vm2223_vm0, %v4092_v20  ;;  %v4152_v19 = vcombine.high %v313_v13, %v317_v14  ;;  %v4156_v20 = vcombine.high %v315_v15, %v319_v16  ;;  %v373_v6 = vld [vmem:[%s5189_s7 + $0x468] sm:$0xff]  ;;  %v375_v8 = vld [vmem:[%s5189_s7 + $0x478] sm:$0xff] }
 0x156   : > { %2658 = vmatmul.mubr.bf16.gmra.mrb[8].mxu1 %v4087_v25  ;;  %3236 = vmatmul.mubr.bf16.gmra.mrb[8].mxu0 %v4091_v26  ;;  %v4151_v25 = vcombine.low %v313_v13, %v317_v14  ;;  %v4155_v26 = vcombine.low %v315_v15, %v319_v16  ;;  %v377_v13 = vld [vmem:[%s5189_s7 + $0x488] sm:$0xff]  ;;  %v379_v15 = vld [vmem:[%s5189_s7 + $0x498] sm:$0xff] }
 0x157   : > { %2665 = vmatprep.mubr.bf16.mxu1 %v4096_v27  ;;  %4388 = vmatprep.mubr.msk.bf16.mxu0 %vm2223_vm0, %v4100_v28  ;;  %v4160_v27 = vcombine.high %v321_v21, %v325_v22  ;;  %v4164_v28 = vcombine.high %v323_v23, %v327_v24  ;;  %v381_v14 = vld [vmem:[%s5189_s7 + $0x4a8] sm:$0xff]  ;;  %v383_v16 = vld [vmem:[%s5189_s7 + $0x4b8] sm:$0xff] }
 0x15e   : > { %2666 = vmatmul.mubr.bf16.gmra.mrb[12].mxu1 %v4095_v33  ;;  %3244 = vmatmul.mubr.bf16.gmra.mrb[12].mxu0 %v4099_v34  ;;  %v4159_v33 = vcombine.low %v321_v21, %v325_v22  ;;  %v4163_v34 = vcombine.low %v323_v23, %v327_v24  ;;  %v385_v21 = vld [vmem:[%s5189_s7 + $0x4c8] sm:$0xff]  ;;  %v387_v23 = vld [vmem:[%s5189_s7 + $0x4d8] sm:$0xff] }
 0x15f   : > { %2673 = vmatprep.mubr.bf16.mxu1 %v4104_v35  ;;  %4389 = vmatprep.mubr.msk.bf16.mxu0 %vm2223_vm0, %v4108_v36  ;;  %v4168_v35 = vcombine.high %v329_v29, %v333_v30  ;;  %v4172_v36 = vcombine.high %v331_v31, %v335_v32  ;;  %v389_v22 = vld [vmem:[%s5189_s7 + $0x4e8] sm:$0xff]  ;;  %v391_v24 = vld [vmem:[%s5189_s7 + $0x4f8] sm:$0xff] }
 0x166   : > { %2674 = vmatmul.mubr.bf16.gmra.mrb[16].mxu1 %v4103_v41  ;;  %3252 = vmatmul.mubr.bf16.gmra.mrb[16].mxu0 %v4107_v42  ;;  %v4167_v41 = vcombine.low %v329_v29, %v333_v30  ;;  %v4171_v42 = vcombine.low %v331_v31, %v335_v32  ;;  %v393_v29 = vld [vmem:[%s5189_s7 + $0x508] sm:$0xff]  ;;  %v395_v31 = vld [vmem:[%s5189_s7 + $0x518] sm:$0xff] }
 0x167   : > { %2681 = vmatprep.mubr.bf16.mxu1 %v4112_v43  ;;  %4390 = vmatprep.mubr.msk.bf16.mxu0 %vm2223_vm0, %v4116_v44  ;;  %v4176_v43 = vcombine.high %v337_v37, %v341_v38  ;;  %v4180_v44 = vcombine.high %v339_v39, %v343_v40  ;;  %v397_v30 = vld [vmem:[%s5189_s7 + $0x528] sm:$0xff]  ;;  %v399_v32 = vld [vmem:[%s5189_s7 + $0x538] sm:$0xff] }
 0x16e   : > { %2682 = vmatmul.mubr.bf16.gmra.mrb[20].mxu1 %v4111_v49  ;;  %3260 = vmatmul.mubr.bf16.gmra.mrb[20].mxu0 %v4115_v50  ;;  %v4175_v49 = vcombine.low %v337_v37, %v341_v38  ;;  %v4179_v50 = vcombine.low %v339_v39, %v343_v40  ;;  %v401_v37 = vld [vmem:[%s5189_s7 + $0x548] sm:$0xff]  ;;  %v403_v39 = vld [vmem:[%s5189_s7 + $0x558] sm:$0xff] }
 0x16f   : > { %2689 = vmatprep.mubr.bf16.mxu1 %v4120_v51  ;;  %4391 = vmatprep.mubr.msk.bf16.mxu0 %vm2223_vm0, %v4124_v52  ;;  %v4184_v51 = vcombine.high %v345_v45, %v349_v46  ;;  %v4188_v52 = vcombine.high %v347_v47, %v351_v48  ;;  %v405_v38 = vld [vmem:[%s5189_s7 + $0x568] sm:$0xff]  ;;  %v407_v40 = vld [vmem:[%s5189_s7 + $0x578] sm:$0xff] }
 0x176   : > { %2690 = vmatmul.mubr.bf16.gmra.mrb[24].mxu1 %v4119_v56  ;;  %3268 = vmatmul.mubr.bf16.gmra.mrb[24].mxu0 %v4123_v57  ;;  %v4183_v56 = vcombine.low %v345_v45, %v349_v46  ;;  %v4187_v57 = vcombine.low %v347_v47, %v351_v48  ;;  %v409_v45 = vld [vmem:[%s5189_s7 + $0x588] sm:$0xff]  ;;  %v411_v47 = vld [vmem:[%s5189_s7 + $0x598] sm:$0xff] }
 0x177   : > { %2697 = vmatprep.mubr.bf16.mxu1 %v4128_v58  ;;  %4392 = vmatprep.mubr.msk.bf16.mxu0 %vm2223_vm0, %v4132_v59  ;;  %v4192_v58 = vcombine.high %v353_v53, %v357_v54  ;;  %v4196_v59 = vcombine.high %v355_v55, %v359_v1  ;;  %v413_v46 = vld [vmem:[%s5189_s7 + $0x5a8] sm:$0xff]  ;;  %v415_v48 = vld [vmem:[%s5189_s7 + $0x5b8] sm:$0xff] }
 0x17e   : > { %2698 = vmatmul.mubr.bf16.gmra.mrb[28].mxu1 %v4127_v0  ;;  %3276 = vmatmul.mubr.bf16.gmra.mrb[28].mxu0 %v4131_v2  ;;  %v4191_v0 = vcombine.low %v353_v53, %v357_v54  ;;  %v4195_v2 = vcombine.low %v355_v55, %v359_v1  ;;  %v417_v53 = vld [vmem:[%s5189_s7 + $0x5c8] sm:$0xff]  ;;  %v419_v55 = vld [vmem:[%s5189_s7 + $0x5d8] sm:$0xff] }
 0x17f   : > { %2705 = vmatprep.mubr.bf16.mxu1 %v4136_v3  ;;  %4393 = vmatprep.mubr.msk.bf16.mxu0 %vm2223_vm0, %v4140_v4  ;;  %v4200_v3 = vcombine.high %v361_v60, %v365_v61  ;;  %v4204_v4 = vcombine.high %v363_v62, %v367_v63  ;;  %v421_v54 = vld [vmem:[%s5189_s7 + $0x5e8] sm:$0xff]  ;;  %v423_v1 = vld [vmem:[%s5189_s7 + $0x5f8] sm:$0xff] }
 0x186   : > { %2706 = vmatmul.mubr.bf16.gmra.mrb[32].mxu1 %v4135_v9  ;;  %3284 = vmatmul.mubr.bf16.gmra.mrb[32].mxu0 %v4139_v10  ;;  %v4199_v9 = vcombine.low %v361_v60, %v365_v61  ;;  %v4203_v10 = vcombine.low %v363_v62, %v367_v63  ;;  %v425_v60 = vld [vmem:[%s5189_s7 + $0x608] sm:$0xff]  ;;  %v427_v62 = vld [vmem:[%s5189_s7 + $0x618] sm:$0xff] }
 0x187   : > { %2713 = vmatprep.mubr.bf16.mxu1 %v4144_v11  ;;  %4394 = vmatprep.mubr.msk.bf16.mxu0 %vm2223_vm0, %v4148_v12  ;;  %v4208_v11 = vcombine.high %v369_v5, %v373_v6  ;;  %v4212_v12 = vcombine.high %v371_v7, %v375_v8  ;;  %v429_v61 = vld [vmem:[%s5189_s7 + $0x628] sm:$0xff]  ;;  %v431_v63 = vld [vmem:[%s5189_s7 + $0x638] sm:$0xff] }
 0x18e   : > { %2714 = vmatmul.mubr.bf16.gmra.mrb[36].mxu1 %v4143_v17  ;;  %3292 = vmatmul.mubr.bf16.gmra.mrb[36].mxu0 %v4147_v18  ;;  %v4207_v17 = vcombine.low %v369_v5, %v373_v6  ;;  %v4211_v18 = vcombine.low %v371_v7, %v375_v8  ;;  %v433_v5 = vld [vmem:[%s5189_s7 + $0x648] sm:$0xff]  ;;  %v435_v7 = vld [vmem:[%s5189_s7 + $0x658] sm:$0xff] }
 0x18f   : > { %2721 = vmatprep.mubr.bf16.mxu1 %v4152_v19  ;;  %4395 = vmatprep.mubr.msk.bf16.mxu0 %vm2223_vm0, %v4156_v20  ;;  %v4216_v19 = vcombine.high %v377_v13, %v381_v14  ;;  %v4220_v20 = vcombine.high %v379_v15, %v383_v16  ;;  %v437_v6 = vld [vmem:[%s5189_s7 + $0x668] sm:$0xff]  ;;  %v439_v8 = vld [vmem:[%s5189_s7 + $0x678] sm:$0xff] }
 0x196   : > { %2722 = vmatmul.mubr.bf16.gmra.mrb[40].mxu1 %v4151_v25  ;;  %3300 = vmatmul.mubr.bf16.gmra.mrb[40].mxu0 %v4155_v26  ;;  %v4215_v25 = vcombine.low %v377_v13, %v381_v14  ;;  %v4219_v26 = vcombine.low %v379_v15, %v383_v16  ;;  %v441_v13 = vld [vmem:[%s5189_s7 + $0x688] sm:$0xff]  ;;  %v443_v15 = vld [vmem:[%s5189_s7 + $0x698] sm:$0xff] }
 0x197   : > { %2729 = vmatprep.mubr.bf16.mxu1 %v4160_v27  ;;  %4396 = vmatprep.mubr.msk.bf16.mxu0 %vm2223_vm0, %v4164_v28  ;;  %v4224_v27 = vcombine.high %v385_v21, %v389_v22  ;;  %v4228_v28 = vcombine.high %v387_v23, %v391_v24  ;;  %v445_v14 = vld [vmem:[%s5189_s7 + $0x6a8] sm:$0xff]  ;;  %v447_v16 = vld [vmem:[%s5189_s7 + $0x6b8] sm:$0xff] }
 0x19e   : > { %2730 = vmatmul.mubr.bf16.gmra.mrb[44].mxu1 %v4159_v33  ;;  %3308 = vmatmul.mubr.bf16.gmra.mrb[44].mxu0 %v4163_v34  ;;  %v4223_v33 = vcombine.low %v385_v21, %v389_v22  ;;  %v4227_v34 = vcombine.low %v387_v23, %v391_v24  ;;  %v449_v21 = vld [vmem:[%s5189_s7 + $0x6c8] sm:$0xff]  ;;  %v451_v23 = vld [vmem:[%s5189_s7 + $0x6d8] sm:$0xff] }
 0x19f   : > { %2737 = vmatprep.mubr.bf16.mxu1 %v4168_v35  ;;  %4397 = vmatprep.mubr.msk.bf16.mxu0 %vm2223_vm0, %v4172_v36  ;;  %v4232_v35 = vcombine.high %v393_v29, %v397_v30  ;;  %v4236_v36 = vcombine.high %v395_v31, %v399_v32  ;;  %v453_v22 = vld [vmem:[%s5189_s7 + $0x6e8] sm:$0xff]  ;;  %v455_v24 = vld [vmem:[%s5189_s7 + $0x6f8] sm:$0xff] }
 0x1a6   : > { %2738 = vmatmul.mubr.bf16.gmra.mrb[48].mxu1 %v4167_v41  ;;  %3316 = vmatmul.mubr.bf16.gmra.mrb[48].mxu0 %v4171_v42  ;;  %v4231_v41 = vcombine.low %v393_v29, %v397_v30  ;;  %v4235_v42 = vcombine.low %v395_v31, %v399_v32  ;;  %v5649_v29 = vld [vmem:[%s6360_s2] ss:$0 sm:$0xff]  ;;  %v457_v30 = vld [vmem:[%s5189_s7 + $0x708] sm:$0xff] }
 0x1a7   : > { %2745 = vmatprep.mubr.bf16.mxu1 %v4176_v43  ;;  %4398 = vmatprep.mubr.msk.bf16.mxu0 %vm2223_vm0, %v4180_v44  ;;  %v4240_v43 = vcombine.high %v401_v37, %v405_v38  ;;  %v4244_v44 = vcombine.high %v403_v39, %v407_v40  ;;  %v461_v31 = vld [vmem:[%s5189_s7 + $0x728] sm:$0xff] }
 0x1ae   : > { %2746 = vmatmul.mubr.bf16.gmra.mrb[52].mxu1 %v4175_v49  ;;  %3324 = vmatmul.mubr.bf16.gmra.mrb[52].mxu0 %v4179_v50  ;;  %v4239_v49 = vcombine.low %v401_v37, %v405_v38  ;;  %v4243_v50 = vcombine.low %v403_v39, %v407_v40  ;;  %v4287_v38 = vcombine.low %v449_v21, %v453_v22 }
 0x1af   : > { %2753 = vmatprep.mubr.bf16.mxu1 %v4184_v51  ;;  %4399 = vmatprep.mubr.msk.bf16.mxu0 %vm2223_vm0, %v4188_v52  ;;  %v4248_v51 = vcombine.high %v409_v45, %v413_v46  ;;  %v4252_v52 = vcombine.high %v411_v47, %v415_v48 }
 0x1b6   : > { %2754 = vmatmul.mubr.bf16.gmra.mrb[56].mxu1 %v4183_v56  ;;  %3332 = vmatmul.mubr.bf16.gmra.mrb[56].mxu0 %v4187_v57  ;;  %v4247_v56 = vcombine.low %v409_v45, %v413_v46  ;;  %v4251_v57 = vcombine.low %v411_v47, %v415_v48 }
 0x1b7   : > { %2761 = vmatprep.mubr.bf16.mxu1 %v4192_v58  ;;  %4400 = vmatprep.mubr.msk.bf16.mxu0 %vm2223_vm0, %v4196_v59  ;;  %v4256_v58 = vcombine.high %v417_v53, %v421_v54  ;;  %v4260_v59 = vcombine.high %v419_v55, %v423_v1 }
 0x1be   : > { %2762 = vmatmul.mubr.bf16.gmra.mrb[60].mxu1 %v4191_v0  ;;  %3340 = vmatmul.mubr.bf16.gmra.mrb[60].mxu0 %v4195_v2  ;;  %v4255_v0 = vcombine.low %v417_v53, %v421_v54  ;;  %v4259_v2 = vcombine.low %v419_v55, %v423_v1  ;;  %v469_v53 = vld [vmem:[%s5189_s7 + $0x768] sm:$0xff]  ;;  %v467_v55 = vld [vmem:[%s5189_s7 + $0x758] sm:$0xff] }
 0x1bf   : > { %2769 = vmatprep.mubr.bf16.mxu1 %v4200_v3  ;;  %4401 = vmatprep.mubr.msk.bf16.mxu0 %vm2223_vm0, %v4204_v4  ;;  %v4264_v3 = vcombine.high %v425_v60, %v429_v61  ;;  %v4268_v4 = vcombine.high %v427_v62, %v431_v63  ;;  %v471_v1 = vld [vmem:[%s5189_s7 + $0x778] sm:$0xff] }
 0x1c6   : > { %2770 = vmatmul.mubr.bf16.gmra.mrb[64].mxu1 %v4199_v9  ;;  %3348 = vmatmul.mubr.bf16.gmra.mrb[64].mxu0 %v4203_v10  ;;  %v4263_v9 = vcombine.low %v425_v60, %v429_v61  ;;  %v4267_v10 = vcombine.low %v427_v62, %v431_v63 }
 0x1c7   : > { %2777 = vmatprep.mubr.bf16.mxu1 %v4208_v11  ;;  %4402 = vmatprep.mubr.msk.bf16.mxu0 %vm2223_vm0, %v4212_v12  ;;  %v4272_v11 = vcombine.high %v433_v5, %v437_v6  ;;  %v4276_v12 = vcombine.high %v435_v7, %v439_v8 }
 0x1ce   : > { %2778 = vmatmul.mubr.bf16.gmra.mrb[68].mxu1 %v4207_v17  ;;  %3356 = vmatmul.mubr.bf16.gmra.mrb[68].mxu0 %v4211_v18  ;;  %v4271_v17 = vcombine.low %v433_v5, %v437_v6  ;;  %v4275_v18 = vcombine.low %v435_v7, %v439_v8  ;;  %v4308_v5 = vcombine.high %v467_v55, %v471_v1 }
 0x1cf   : > { %2785 = vmatprep.mubr.bf16.mxu1 %v4216_v19  ;;  %4403 = vmatprep.mubr.msk.bf16.mxu0 %vm2223_vm0, %v4220_v20  ;;  %v4280_v19 = vcombine.high %v441_v13, %v445_v14  ;;  %v4284_v20 = vcombine.high %v443_v15, %v447_v16 }
 0x1d6   : > { %2786 = vmatmul.mubr.bf16.gmra.mrb[72].mxu1 %v4215_v25  ;;  %3364 = vmatmul.mubr.bf16.gmra.mrb[72].mxu0 %v4219_v26  ;;  %v4279_v25 = vcombine.low %v441_v13, %v445_v14  ;;  %v4283_v26 = vcombine.low %v443_v15, %v447_v16  ;;  %v5685_v13 = vld [vmem:[%s5189_s7 + $0x798] sm:$0xff] }
 0x1d7   : > { %2793 = vmatprep.mubr.bf16.mxu1 %v4224_v27  ;;  %4404 = vmatprep.mubr.msk.bf16.mxu0 %vm2223_vm0, %v4228_v28  ;;  %v4288_v27 = vcombine.high %v449_v21, %v453_v22  ;;  %v4292_v28 = vcombine.high %v451_v23, %v455_v24  ;;  %v5688_v14 = vld [vmem:[%s5189_s7 + $0x7b8] sm:$0xff]  ;;  %v5694_v21 = vld [vmem:[%s6361_s3] ss:$0 sm:$0xff] }
 0x1de   : > { %2794 = vmatmul.mubr.bf16.gmra.mrb[76].mxu1 %v4223_v33  ;;  %3372 = vmatmul.mubr.bf16.gmra.mrb[76].mxu0 %v4227_v34  ;;  %v459_v33 = vld [vmem:[%s5189_s7 + $0x718] sm:$0xff] }
 0x1df   : > { %2801 = vmatprep.mubr.bf16.mxu1 %v4232_v35  ;;  %4405 = vmatprep.mubr.msk.bf16.mxu0 %vm2223_vm0, %v4236_v36  ;;  %v463_v34 = vld [vmem:[%s5189_s7 + $0x738] sm:$0xff] }
 0x1e0   : > { %v4300_v47 = vcombine.high %v459_v33, %v463_v34  ;;  %v4299_v62 = vcombine.low %v459_v33, %v463_v34  ;;  %v5709_v34 = vld [vmem:[%s6362_s4] ss:$0 sm:$0xff] }
 0x1e6   : > { %2802 = vmatmul.mubr.bf16.gmra.mrb[80].mxu1 %v4231_v41  ;;  %3380 = vmatmul.mubr.bf16.gmra.mrb[80].mxu0 %v4235_v42  ;;  %v4291_v41 = vcombine.low %v451_v23, %v455_v24  ;;  %v4296_v42 = vcombine.high %v457_v30, %v461_v31  ;;  %v4307_v24 = vcombine.low %v467_v55, %v471_v1 }
 0x1e7   : > { %2809 = vmatprep.mubr.bf16.mxu1 %v4240_v43  ;;  %4406 = vmatprep.mubr.msk.bf16.mxu0 %vm2223_vm0, %v4244_v44 }
 0x1ee   : > { %2810 = vmatmul.mubr.bf16.gmra.mrb[84].mxu1 %v4239_v49  ;;  %3388 = vmatmul.mubr.bf16.gmra.mrb[84].mxu0 %v4243_v50 }
 0x1ef   : > { %2817 = vmatprep.mubr.bf16.mxu1 %v4248_v51  ;;  %4407 = vmatprep.mubr.msk.bf16.mxu0 %vm2223_vm0, %v4252_v52  ;;  %v465_v52 = vld [vmem:[%s5189_s7 + $0x748] sm:$0xff] }
 0x1f0   : > { %v4304_v63 = vcombine.high %v465_v52, %v469_v53 }
 0x1f6   : > { %2818 = vmatmul.mubr.bf16.gmra.mrb[88].mxu1 %v4247_v56  ;;  %3396 = vmatmul.mubr.bf16.gmra.mrb[88].mxu0 %v4251_v57 }
 0x1f7   : > { %2825 = vmatprep.mubr.bf16.mxu1 %v4256_v58  ;;  %4408 = vmatprep.mubr.msk.bf16.mxu0 %vm2223_vm0, %v4260_v59  ;;  %v4295_v59 = vcombine.low %v457_v30, %v461_v31 }
 0x1fe   : > { %2826 = vmatmul.mubr.bf16.gmra.mrb[92].mxu1 %v4255_v0  ;;  %3404 = vmatmul.mubr.bf16.gmra.mrb[92].mxu0 %v4259_v2 }
 0x1ff   : > { %2833 = vmatprep.mubr.bf16.mxu1 %v4264_v3  ;;  %4409 = vmatprep.mubr.msk.bf16.mxu0 %vm2223_vm0, %v4268_v4 }
 0x206   : > { %2834 = vmatmul.mubr.bf16.gmra.mrb[96].mxu1 %v4263_v9  ;;  %3412 = vmatmul.mubr.bf16.gmra.mrb[96].mxu0 %v4267_v10  ;;  %v5679_v10 = vld [vmem:[%s5189_s7 + $0x788] sm:$0xff] }
 0x207   : > { %2841 = vmatprep.mubr.bf16.mxu1 %v4272_v11  ;;  %4410 = vmatprep.mubr.msk.bf16.mxu0 %vm2223_vm0, %v4276_v12  ;;  %v5682_v11 = vld [vmem:[%s5189_s7 + $0x7a8] sm:$0xff] }
 0x20e   : > { %2842 = vmatmul.mubr.bf16.gmra.mrb[100].mxu1 %v4271_v17  ;;  %3420 = vmatmul.mubr.bf16.gmra.mrb[100].mxu0 %v4275_v18 }
 0x20f   : > { %2849 = vmatprep.mubr.bf16.mxu1 %v4280_v19  ;;  %4411 = vmatprep.mubr.msk.bf16.mxu0 %vm2223_vm0, %v4284_v20  ;;  %v4303_v19 = vcombine.low %v465_v52, %v469_v53 }
 0x216   : > { %2850 = vmatmul.mubr.bf16.gmra.mrb[104].mxu1 %v4279_v25  ;;  %3428 = vmatmul.mubr.bf16.gmra.mrb[104].mxu0 %v4283_v26  ;;  %v4312_v25 = vcombine.high %v5679_v10, %v5682_v11 }
 0x217   : > { %2857 = vmatprep.mubr.bf16.mxu1 %v4288_v27  ;;  %4412 = vmatprep.mubr.msk.bf16.mxu0 %vm2223_vm0, %v4292_v28 }
 0x219   : > { %v2643_v32 = vpop.f32.mrb[0].mxu1  ;;  %v3221_v36 = vpop.f32.mrb[0].mxu0 }
 0x21a   : > { %v4486_v35 = vadd.f32 %v5649_v29, %v2643_v32  ;;  %v2645_v37 = vpop.f32.mrb[1].mxu1  ;;  %v3223_v39 = vpop.f32.mrb[1].mxu0  ;;  %v4316_v32 = vcombine.high %v5685_v13, %v5688_v14 }
 0x21b   : > { %v2646_v40 = vpop.f32.mrb[2].mxu1  ;;  %v3224_v45 = vpop.f32.mrb[2].mxu0 }
 0x21c   : > { %v5657_v43 = vadd.f32 %v4486_v35, %v3221_v36  ;;  %v4488_v44 = vadd.f32 %v5649_v29, %v2646_v40  ;;  %v2648_v46 = vpop.f32.mrb[3].mxu1  ;;  %v3226_v48 = vpop.f32.mrb[3].mxu0 }
 0x21d   : > { %v5736_v48 = vld [vmem:[%s5189_s7 + $0x7f8] sm:$0xff] }
 0x21e   : > { %v3540_v49 = vmul.f32 1.442695, %v5657_v43  ;;  %v5661_v50 = vadd.f32 %v4488_v44, %v3224_v45  ;;  %2858 = vmatmul.mubr.bf16.gmra.mrb[108].mxu1 %v4287_v38  ;;  %3436 = vmatmul.mubr.bf16.gmra.mrb[108].mxu0 %v4291_v41  ;;  %vm3476_vm1 = vcmp.gt.f32.partialorder %v5657_v43, 0.0  ;;  %v5729_v44 = vld [vmem:[%s5189_s7 + $0x7e8] sm:$0xff] }
 0x21f   : > { %2865 = vmatprep.mubr.bf16.mxu1 %v4296_v42  ;;  %4413 = vmatprep.mubr.msk.bf16.mxu0 %vm2223_vm0, %v4300_v47  ;;  %v5733_v47 = vld [vmem:[%s5189_s7 + $0x7d8] sm:$0xff] }
 0x220   : > { %4939 = vpow2.f32 %v3540_v49  ;;  %v3542_v51 = vmul.f32 1.442695, %v5661_v50  ;;  %vm3477_vm2 = vcmp.gt.f32.partialorder %v5661_v50, 0.0 }
 0x221   : > { %v2651_v54 = vpop.f32.mrb[4].mxu1  ;;  %v3229_v57 = vpop.f32.mrb[4].mxu0 }
 0x222   : > { %4941 = vpow2.f32 %v3542_v51  ;;  %v4490_v56 = vadd.f32 %v5649_v29, %v2651_v54  ;;  %v2653_v58 = vpop.f32.mrb[5].mxu1  ;;  %v3231_v60 = vpop.f32.mrb[5].mxu0  ;;  %v4311_v54 = vcombine.low %v5679_v10, %v5682_v11 }
 0x223   : > { %v2654_v61 = vpop.f32.mrb[6].mxu1  ;;  %v3232_v3 = vpop.f32.mrb[6].mxu0 }
 0x224   : > { %v5670_v0 = vadd.f32 %v4490_v56, %v3229_v57  ;;  %v4492_v2 = vadd.f32 %v5649_v29, %v2654_v61  ;;  %v2656_v4 = vpop.f32.mrb[7].mxu1  ;;  %v3234_v6 = vpop.f32.mrb[7].mxu0  ;;  %v4315_v57 = vcombine.low %v5685_v13, %v5688_v14 }
 0x226   : > { %v3544_v7 = vmul.f32 1.442695, %v5670_v0  ;;  %v5674_v8 = vadd.f32 %v4492_v2, %v3232_v3  ;;  %2866 = vmatmul.mubr.bf16.gmra.mrb[112].mxu1 %v4295_v59  ;;  %3444 = vmatmul.mubr.bf16.gmra.mrb[112].mxu0 %v4299_v62  ;;  %vm3478_vm3 = vcmp.gt.f32.partialorder %v5670_v0, 0.0  ;;  %v4324_v2 = vcombine.high %v5733_v47, %v5736_v48 }
 0x227   : > { %2873 = vmatprep.mubr.bf16.mxu1 %v4304_v63  ;;  %4414 = vmatprep.mubr.msk.bf16.mxu0 %vm2223_vm0, %v4308_v5 }
 0x228   : > { %4943 = vpow2.f32 %v3544_v7  ;;  %v3546_v9 = vmul.f32 1.442695, %v5674_v8  ;;  %vm3479_vm4 = vcmp.gt.f32.partialorder %v5674_v8, 0.0 }
 0x229   : > { %v2659_v12 = vpop.f32.mrb[8].mxu1  ;;  %v3237_v17 = vpop.f32.mrb[8].mxu0 }
 0x22a   : > { %v4940_v15 = vpop.eup %4939  ;;  %4945 = vpow2.f32 %v3546_v9  ;;  %v4494_v16 = vadd.f32 %v5649_v29, %v2659_v12  ;;  %v2661_v18 = vpop.f32.mrb[9].mxu1 }
 0x22b   : > { %v4417_v20 = vadd.f32 -1.0, %v4940_v15  ;;  %v3239_v22 = vpop.f32.mrb[9].mxu0  ;;  %v2662_v23 = vpop.f32.mrb[10].mxu1 }
 0x22c   : > { %v4942_v26 = vpop.eup %4941  ;;  %v5700_v27 = vadd.f32 %v4494_v16, %v3237_v17  ;;  %v4496_v28 = vadd.f32 %v5649_v29, %v2662_v23  ;;  %v3240_v30 = vpop.f32.mrb[10].mxu0  ;;  %v4323_v23 = vcombine.low %v5733_v47, %v5736_v48 }
 0x22d   : > { %v2664_v31 = vpop.f32.mrb[11].mxu1  ;;  %v3732_v33 = vsel %vm3476_vm1, %v5657_v43, %v4417_v20  ;;  %v4418_v35 = vadd.f32 -1.0, %v4942_v26  ;;  %v3242_v36 = vpop.f32.mrb[11].mxu0  ;;  %v5726_v43 = vld [vmem:[%s5189_s7 + $0x7c8] sm:$0xff] }
 0x22e   : > { %v3803_v37 = vmul.f32 %v5694_v21, %v3732_v33  ;;  %v3548_v38 = vmul.f32 1.442695, %v5700_v27  ;;  %v5714_v39 = vadd.f32 %v4496_v28, %v3240_v30  ;;  %2874 = vmatmul.mubr.bf16.gmra.mrb[116].mxu1 %v4303_v19  ;;  %3452 = vmatmul.mubr.bf16.gmra.mrb[116].mxu0 %v4307_v24  ;;  %v4320_v58 = vcombine.high %v5726_v43, %v5729_v44 }
 0x22f   : > { %v3733_v40 = vsel %vm3477_vm2, %v5661_v50, %v4418_v35  ;;  %2881 = vmatprep.mubr.bf16.mxu1 %v4312_v25  ;;  %4415 = vmatprep.mubr.msk.bf16.mxu0 %vm2223_vm0, %v4316_v32  ;;  %v4319_v18 = vcombine.low %v5726_v43, %v5729_v44  ;;  %vm3480_vm5 = vcmp.gt.f32.partialorder %v5700_v27, 0.0 }
 0x230   : > { %v3874_v41 = vadd.f32 %v5709_v34, %v3803_v37  ;;  %v3804_v42 = vmul.f32 %v5694_v21, %v3733_v40  ;;  %4947 = vpow2.f32 %v3548_v38  ;;  %v3550_v45 = vmul.f32 1.442695, %v5714_v39 }
 0x231   : > { %v2667_v46 = vpop.f32.mrb[12].mxu1  ;;  %v3245_v52 = vpop.f32.mrb[12].mxu0  ;;  %vm3481_vm6 = vcmp.gt.f32.partialorder %v5714_v39, 0.0 }
 0x232   : > { %v4944_v49 = vpop.eup %4943  ;;  %3938 = vst.msk [vmem:[%s5719_s17] sm:$0xff] %vm2223_vm0, %v3874_v41  ;;  %v3875_v50 = vadd.f32 %v5709_v34, %v3804_v42  ;;  %v4498_v51 = vadd.f32 %v5649_v29, %v2667_v46  ;;  %v2669_v53 = vpop.f32.mrb[13].mxu1  ;;  %4949 = vpow2.f32 %v3550_v45 }
 0x233   : > { %v4419_v55 = vadd.f32 -1.0, %v4944_v49  ;;  %v3247_v1 = vpop.f32.mrb[13].mxu0  ;;  %v2670_v56 = vpop.f32.mrb[14].mxu1 }
 0x234   : > { %v4946_v59 = vpop.eup %4945  ;;  %3939 = vst.msk [vmem:[%s5719_s17 + $0x8] sm:$0xff] %vm2223_vm0, %v3875_v50  ;;  %v5751_v60 = vadd.f32 %v4498_v51, %v3245_v52  ;;  %v4500_v61 = vadd.f32 %v5649_v29, %v2670_v56  ;;  %v3248_v62 = vpop.f32.mrb[14].mxu0 }
 0x235   : > { %v2672_v63 = vpop.f32.mrb[15].mxu1  ;;  %v3734_v3 = vsel %vm3478_vm3, %v5670_v0, %v4419_v55  ;;  %v4420_v4 = vadd.f32 -1.0, %v4946_v59  ;;  %v3250_v5 = vpop.f32.mrb[15].mxu0 }
 0x236   : > { %v3805_v6 = vmul.f32 %v5694_v21, %v3734_v3  ;;  %v3552_v7 = vmul.f32 1.442695, %v5751_v60  ;;  %v5760_v9 = vadd.f32 %v4500_v61, %v3248_v62  ;;  %2882 = vmatmul.mubr.bf16.gmra.mrb[120].mxu1 %v4311_v54  ;;  %3460 = vmatmul.mubr.bf16.gmra.mrb[120].mxu0 %v4315_v57  ;;  %vm3482_vm7 = vcmp.gt.f32.partialorder %v5751_v60, 0.0 }
 0x237   : > { %v3735_v10 = vsel %vm3479_vm4, %v5674_v8, %v4420_v4  ;;  %2889 = vmatprep.mubr.bf16.mxu1 %v4320_v58  ;;  %4416 = vmatprep.mubr.msk.bf16.mxu0 %vm2223_vm0, %v4324_v2 }
 0x238   : > { %v3876_v11 = vadd.f32 %v5709_v34, %v3805_v6  ;;  %v3806_v0 = vmul.f32 %v5694_v21, %v3735_v10  ;;  %4951 = vpow2.f32 %v3552_v7  ;;  %v3554_v12 = vmul.f32 1.442695, %v5760_v9 }
 0x239   : > { %v2675_v13 = vpop.f32.mrb[16].mxu1  ;;  %v3253_v16 = vpop.f32.mrb[16].mxu0  ;;  %vm3483_vm8 = vcmp.gt.f32.partialorder %v5760_v9, 0.0 }
 0x23a   : > { %v4948_v14 = vpop.eup %4947  ;;  %3940 = vst.msk [vmem:[%s5719_s17 + $0x10] sm:$0xff] %vm2223_vm0, %v3876_v11  ;;  %v3877_v15 = vadd.f32 %v5709_v34, %v3806_v0  ;;  %v4502_v8 = vadd.f32 %v5649_v29, %v2675_v13  ;;  %v2677_v17 = vpop.f32.mrb[17].mxu1  ;;  %4953 = vpow2.f32 %v3554_v12 }
 0x23b   : > { %v4421_v19 = vadd.f32 -1.0, %v4948_v14  ;;  %v3255_v20 = vpop.f32.mrb[17].mxu0  ;;  %v2678_v22 = vpop.f32.mrb[18].mxu1 }
 0x23c   : > { %3941 = vst.msk [vmem:[%s5719_s17 + $0x18] sm:$0xff] %vm2223_vm0, %v3877_v15  ;;  %v5778_v24 = vadd.f32 %v4502_v8, %v3253_v16  ;;  %v4504_v25 = vadd.f32 %v5649_v29, %v2678_v22  ;;  %v3256_v26 = vpop.f32.mrb[18].mxu0  ;;  %v2680_v28 = vpop.f32.mrb[19].mxu1 }
 0x23d   : > { %v4950_v30 = vpop.eup %4949  ;;  %v3736_v31 = vsel %vm3480_vm5, %v5700_v27, %v4421_v19  ;;  %v3258_v32 = vpop.f32.mrb[19].mxu0 }
 0x23e   : > { %v3807_v33 = vmul.f32 %v5694_v21, %v3736_v31  ;;  %v4422_v35 = vadd.f32 -1.0, %v4950_v30  ;;  %v3556_v36 = vmul.f32 1.442695, %v5778_v24  ;;  %2890 = vmatmul.mubr.bf16.gmra.mrb[124].mxu1 %v4319_v18  ;;  %v5785_v37 = vadd.f32 %v4504_v25, %v3256_v26  ;;  %3468 = vmatmul.mubr.bf16.gmra.mrb[124].mxu0 %v4323_v23 }
 0x23f   : > { %vm3484_vm9 = vcmp.gt.f32.partialorder %v5778_v24, 0.0 }
 0x240   : > { %v3878_v38 = vadd.f32 %v5709_v34, %v3807_v33  ;;  %v3737_v40 = vsel %vm3481_vm6, %v5714_v39, %v4422_v35  ;;  %4955 = vpow2.f32 %v3556_v36  ;;  %v3558_v41 = vmul.f32 1.442695, %v5785_v37 }
 0x241   : > { %v3808_v27 = vmul.f32 %v5694_v21, %v3737_v40  ;;  %v2683_v42 = vpop.f32.mrb[20].mxu1  ;;  %v3261_v45 = vpop.f32.mrb[20].mxu0  ;;  %vm3485_vm10 = vcmp.gt.f32.partialorder %v5785_v37, 0.0 }
 0x242   : > { %v4952_v43 = vpop.eup %4951  ;;  %3942 = vst.msk [vmem:[%s5719_s17 + $0x20] sm:$0xff] %vm2223_vm0, %v3878_v38  ;;  %v4506_v44 = vadd.f32 %v5649_v29, %v2683_v42  ;;  %v2685_v46 = vpop.f32.mrb[21].mxu1  ;;  %4957 = vpow2.f32 %v3558_v41 }
 0x243   : > { %v3879_v47 = vadd.f32 %v5709_v34, %v3808_v27  ;;  %v4423_v48 = vadd.f32 -1.0, %v4952_v43  ;;  %v3263_v49 = vpop.f32.mrb[21].mxu0  ;;  %v2686_v39 = vpop.f32.mrb[22].mxu1 }
 0x244   : > { %v5796_v50 = vadd.f32 %v4506_v44, %v3261_v45  ;;  %v4508_v51 = vadd.f32 %v5649_v29, %v2686_v39  ;;  %v3264_v52 = vpop.f32.mrb[22].mxu0  ;;  %v2688_v53 = vpop.f32.mrb[23].mxu1 }
 0x245   : > { %v4954_v54 = vpop.eup %4953  ;;  %3943 = vst.msk [vmem:[%s5719_s17 + $0x28] sm:$0xff] %vm2223_vm0, %v3879_v47  ;;  %v3738_v55 = vsel %vm3482_vm7, %v5751_v60, %v4423_v48  ;;  %v3266_v1 = vpop.f32.mrb[23].mxu0 }
 0x246   : > { %v3809_v56 = vmul.f32 %v5694_v21, %v3738_v55  ;;  %v4424_v57 = vadd.f32 -1.0, %v4954_v54  ;;  %v3560_v58 = vmul.f32 1.442695, %v5796_v50  ;;  %v5805_v59 = vadd.f32 %v4508_v51, %v3264_v52 }
 0x247   : > { %vm3486_vm11 = vcmp.gt.f32.partialorder %v5796_v50, 0.0 }
 0x248   : > { %v3880_v61 = vadd.f32 %v5709_v34, %v3809_v56  ;;  %v3739_v62 = vsel %vm3483_vm8, %v5760_v9, %v4424_v57  ;;  %4959 = vpow2.f32 %v3560_v58  ;;  %v3562_v2 = vmul.f32 1.442695, %v5805_v59 }
 0x249   : > { %v3810_v63 = vmul.f32 %v5694_v21, %v3739_v62  ;;  %v2691_v60 = vpop.f32.mrb[24].mxu1  ;;  %v3269_v5 = vpop.f32.mrb[24].mxu0  ;;  %vm3487_vm12 = vcmp.gt.f32.partialorder %v5805_v59, 0.0 }
 0x24a   : > { %v4956_v3 = vpop.eup %4955  ;;  %3944 = vst.msk [vmem:[%s5719_s17 + $0x30] sm:$0xff] %vm2223_vm0, %v3880_v61  ;;  %v4510_v4 = vadd.f32 %v5649_v29, %v2691_v60  ;;  %v2693_v6 = vpop.f32.mrb[25].mxu1  ;;  %4961 = vpow2.f32 %v3562_v2 }
 0x24b   : > { %v3881_v7 = vadd.f32 %v5709_v34, %v3810_v63  ;;  %v4425_v10 = vadd.f32 -1.0, %v4956_v3  ;;  %v3271_v11 = vpop.f32.mrb[25].mxu0  ;;  %v2694_v9 = vpop.f32.mrb[26].mxu1 }
 0x24c   : > { %v5816_v0 = vadd.f32 %v4510_v4, %v3269_v5  ;;  %v4512_v12 = vadd.f32 %v5649_v29, %v2694_v9  ;;  %v3272_v13 = vpop.f32.mrb[26].mxu0  ;;  %v2696_v14 = vpop.f32.mrb[27].mxu1 }
 0x24d   : > { %v4958_v15 = vpop.eup %4957  ;;  %3945 = vst.msk [vmem:[%s5719_s17 + $0x38] sm:$0xff] %vm2223_vm0, %v3881_v7  ;;  %v3740_v8 = vsel %vm3484_vm9, %v5778_v24, %v4425_v10  ;;  %v3274_v16 = vpop.f32.mrb[27].mxu0 }
 0x24e   : > { %v3811_v17 = vmul.f32 %v5694_v21, %v3740_v8  ;;  %v4426_v18 = vadd.f32 -1.0, %v4958_v15  ;;  %v3564_v19 = vmul.f32 1.442695, %v5816_v0  ;;  %v5825_v20 = vadd.f32 %v4512_v12, %v3272_v13 }
 0x24f   : > { %vm3488_vm13 = vcmp.gt.f32.partialorder %v5816_v0, 0.0 }
 0x250   : > { %v3882_v22 = vadd.f32 %v5709_v34, %v3811_v17  ;;  %v3741_v23 = vsel %vm3485_vm10, %v5785_v37, %v4426_v18  ;;  %4963 = vpow2.f32 %v3564_v19  ;;  %v3566_v26 = vmul.f32 1.442695, %v5825_v20 }
 0x251   : > { %v3812_v25 = vmul.f32 %v5694_v21, %v3741_v23  ;;  %v2699_v24 = vpop.f32.mrb[28].mxu1  ;;  %v3277_v31 = vpop.f32.mrb[28].mxu0  ;;  %vm3489_vm14 = vcmp.gt.f32.partialorder %v5825_v20, 0.0 }
 0x252   : > { %v4960_v28 = vpop.eup %4959  ;;  %3946 = vst.msk [vmem:[%s5719_s17 + $0x40] sm:$0xff] %vm2223_vm0, %v3882_v22  ;;  %v4514_v30 = vadd.f32 %v5649_v29, %v2699_v24  ;;  %v2701_v32 = vpop.f32.mrb[29].mxu1  ;;  %4965 = vpow2.f32 %v3566_v26 }
 0x253   : > { %v3883_v33 = vadd.f32 %v5709_v34, %v3812_v25  ;;  %v4427_v35 = vadd.f32 -1.0, %v4960_v28  ;;  %v3279_v36 = vpop.f32.mrb[29].mxu0  ;;  %v2702_v37 = vpop.f32.mrb[30].mxu1 }
 0x254   : > { %v5836_v38 = vadd.f32 %v4514_v30, %v3277_v31  ;;  %v4516_v40 = vadd.f32 %v5649_v29, %v2702_v37  ;;  %v3280_v27 = vpop.f32.mrb[30].mxu0  ;;  %v2704_v41 = vpop.f32.mrb[31].mxu1 }
 0x255   : > { %v4962_v42 = vpop.eup %4961  ;;  %3947 = vst.msk [vmem:[%s5719_s17 + $0x48] sm:$0xff] %vm2223_vm0, %v3883_v33  ;;  %v3742_v43 = vsel %vm3486_vm11, %v5796_v50, %v4427_v35  ;;  %v3282_v44 = vpop.f32.mrb[31].mxu0 }
 0x256   : > { %v3813_v45 = vmul.f32 %v5694_v21, %v3742_v43  ;;  %v4428_v46 = vadd.f32 -1.0, %v4962_v42  ;;  %v3568_v47 = vmul.f32 1.442695, %v5836_v38  ;;  %v5845_v48 = vadd.f32 %v4516_v40, %v3280_v27 }
 0x257   : > { %vm3490_vm15 = vcmp.gt.f32.partialorder %v5836_v38, 0.0 }
 0x258   : > { %v3884_v49 = vadd.f32 %v5709_v34, %v3813_v45  ;;  %v3743_v39 = vsel %vm3487_vm12, %v5805_v59, %v4428_v46  ;;  %4967 = vpow2.f32 %v3568_v47  ;;  %v3570_v52 = vmul.f32 1.442695, %v5845_v48 }
 0x259   : > { %v3814_v51 = vmul.f32 %v5694_v21, %v3743_v39  ;;  %v2707_v50 = vpop.f32.mrb[32].mxu1  ;;  %v3285_v55 = vpop.f32.mrb[32].mxu0  ;;  %vm3491_vm1 = vcmp.gt.f32.partialorder %v5845_v48, 0.0 }
 0x25a   : > { %v4964_v53 = vpop.eup %4963  ;;  %3948 = vst.msk [vmem:[%s5719_s17 + $0x50] sm:$0xff] %vm2223_vm0, %v3884_v49  ;;  %v4518_v54 = vadd.f32 %v5649_v29, %v2707_v50  ;;  %v2709_v1 = vpop.f32.mrb[33].mxu1  ;;  %4969 = vpow2.f32 %v3570_v52 }
 0x25b   : > { %v3885_v56 = vadd.f32 %v5709_v34, %v3814_v51  ;;  %v4429_v57 = vadd.f32 -1.0, %v4964_v53  ;;  %v3287_v58 = vpop.f32.mrb[33].mxu0  ;;  %v2710_v59 = vpop.f32.mrb[34].mxu1 }
 0x25c   : > { %v5856_v61 = vadd.f32 %v4518_v54, %v3285_v55  ;;  %v4520_v62 = vadd.f32 %v5649_v29, %v2710_v59  ;;  %v3288_v63 = vpop.f32.mrb[34].mxu0  ;;  %v2712_v2 = vpop.f32.mrb[35].mxu1 }
 0x25d   : > { %v4966_v60 = vpop.eup %4965  ;;  %3949 = vst.msk [vmem:[%s5719_s17 + $0x58] sm:$0xff] %vm2223_vm0, %v3885_v56  ;;  %v3744_v3 = vsel %vm3488_vm13, %v5816_v0, %v4429_v57  ;;  %v3290_v4 = vpop.f32.mrb[35].mxu0 }
 0x25e   : > { %v3815_v5 = vmul.f32 %v5694_v21, %v3744_v3  ;;  %v4430_v6 = vadd.f32 -1.0, %v4966_v60  ;;  %v3572_v7 = vmul.f32 1.442695, %v5856_v61  ;;  %v5865_v10 = vadd.f32 %v4520_v62, %v3288_v63 }
 0x25f   : > { %vm3492_vm2 = vcmp.gt.f32.partialorder %v5856_v61, 0.0 }
 0x260   : > { %v3886_v11 = vadd.f32 %v5709_v34, %v3815_v5  ;;  %v3745_v9 = vsel %vm3489_vm14, %v5825_v20, %v4430_v6  ;;  %4971 = vpow2.f32 %v3572_v7  ;;  %v3574_v13 = vmul.f32 1.442695, %v5865_v10 }
 0x261   : > { %v3816_v12 = vmul.f32 %v5694_v21, %v3745_v9  ;;  %v2715_v0 = vpop.f32.mrb[36].mxu1  ;;  %v3293_v8 = vpop.f32.mrb[36].mxu0  ;;  %vm3493_vm3 = vcmp.gt.f32.partialorder %v5865_v10, 0.0 }
 0x262   : > { %v4968_v14 = vpop.eup %4967  ;;  %3950 = vst.msk [vmem:[%s5719_s17 + $0x60] sm:$0xff] %vm2223_vm0, %v3886_v11  ;;  %v4522_v15 = vadd.f32 %v5649_v29, %v2715_v0  ;;  %v2717_v16 = vpop.f32.mrb[37].mxu1  ;;  %4973 = vpow2.f32 %v3574_v13 }
 0x263   : > { %v3887_v17 = vadd.f32 %v5709_v34, %v3816_v12  ;;  %v4431_v18 = vadd.f32 -1.0, %v4968_v14  ;;  %v3295_v19 = vpop.f32.mrb[37].mxu0  ;;  %v2718_v20 = vpop.f32.mrb[38].mxu1 }
 0x264   : > { %v5876_v22 = vadd.f32 %v4522_v15, %v3293_v8  ;;  %v4524_v23 = vadd.f32 %v5649_v29, %v2718_v20  ;;  %v3296_v25 = vpop.f32.mrb[38].mxu0  ;;  %v2720_v26 = vpop.f32.mrb[39].mxu1 }
 0x265   : > { %v4970_v24 = vpop.eup %4969  ;;  %3951 = vst.msk [vmem:[%s5719_s17 + $0x68] sm:$0xff] %vm2223_vm0, %v3887_v17  ;;  %v3746_v28 = vsel %vm3490_vm15, %v5836_v38, %v4431_v18  ;;  %v3298_v30 = vpop.f32.mrb[39].mxu0 }
 0x266   : > { %v3817_v31 = vmul.f32 %v5694_v21, %v3746_v28  ;;  %v4432_v32 = vadd.f32 -1.0, %v4970_v24  ;;  %v3576_v33 = vmul.f32 1.442695, %v5876_v22  ;;  %v5885_v35 = vadd.f32 %v4524_v23, %v3296_v25 }
 0x267   : > { %vm3494_vm4 = vcmp.gt.f32.partialorder %v5876_v22, 0.0 }
 0x268   : > { %v3888_v36 = vadd.f32 %v5709_v34, %v3817_v31  ;;  %v3747_v37 = vsel %vm3491_vm1, %v5845_v48, %v4432_v32  ;;  %4975 = vpow2.f32 %v3576_v33  ;;  %v3578_v27 = vmul.f32 1.442695, %v5885_v35 }
 0x269   : > { %v3818_v40 = vmul.f32 %v5694_v21, %v3747_v37  ;;  %v2723_v38 = vpop.f32.mrb[40].mxu1  ;;  %v3301_v43 = vpop.f32.mrb[40].mxu0  ;;  %vm3495_vm5 = vcmp.gt.f32.partialorder %v5885_v35, 0.0 }
 0x26a   : > { %v4972_v41 = vpop.eup %4971  ;;  %3952 = vst.msk [vmem:[%s5719_s17 + $0x70] sm:$0xff] %vm2223_vm0, %v3888_v36  ;;  %v4526_v42 = vadd.f32 %v5649_v29, %v2723_v38  ;;  %v2725_v44 = vpop.f32.mrb[41].mxu1  ;;  %4977 = vpow2.f32 %v3578_v27 }
 0x26b   : > { %v3889_v45 = vadd.f32 %v5709_v34, %v3818_v40  ;;  %v4433_v46 = vadd.f32 -1.0, %v4972_v41  ;;  %v3303_v47 = vpop.f32.mrb[41].mxu0  ;;  %v2726_v48 = vpop.f32.mrb[42].mxu1 }
 0x26c   : > { %v5896_v49 = vadd.f32 %v4526_v42, %v3301_v43  ;;  %v4528_v39 = vadd.f32 %v5649_v29, %v2726_v48  ;;  %v3304_v51 = vpop.f32.mrb[42].mxu0  ;;  %v2728_v52 = vpop.f32.mrb[43].mxu1 }
 0x26d   : > { %v4974_v50 = vpop.eup %4973  ;;  %3953 = vst.msk [vmem:[%s5719_s17 + $0x78] sm:$0xff] %vm2223_vm0, %v3889_v45  ;;  %v3748_v53 = vsel %vm3492_vm2, %v5856_v61, %v4433_v46  ;;  %v3306_v54 = vpop.f32.mrb[43].mxu0 }
 0x26e   : > { %v3819_v55 = vmul.f32 %v5694_v21, %v3748_v53  ;;  %v4434_v1 = vadd.f32 -1.0, %v4974_v50  ;;  %v3580_v56 = vmul.f32 1.442695, %v5896_v49  ;;  %v5905_v57 = vadd.f32 %v4528_v39, %v3304_v51 }
 0x26f   : > { %vm3496_vm6 = vcmp.gt.f32.partialorder %v5896_v49, 0.0 }
 0x270   : > { %v3890_v58 = vadd.f32 %v5709_v34, %v3819_v55  ;;  %v3749_v59 = vsel %vm3493_vm3, %v5865_v10, %v4434_v1  ;;  %4979 = vpow2.f32 %v3580_v56  ;;  %v3582_v63 = vmul.f32 1.442695, %v5905_v57 }
 0x271   : > { %v3820_v62 = vmul.f32 %v5694_v21, %v3749_v59  ;;  %v2731_v61 = vpop.f32.mrb[44].mxu1  ;;  %v3309_v3 = vpop.f32.mrb[44].mxu0  ;;  %vm3497_vm7 = vcmp.gt.f32.partialorder %v5905_v57, 0.0 }
 0x272   : > { %v4976_v2 = vpop.eup %4975  ;;  %3954 = vst.msk [vmem:[%s5719_s17 + $0x80] sm:$0xff] %vm2223_vm0, %v3890_v58  ;;  %v4530_v60 = vadd.f32 %v5649_v29, %v2731_v61  ;;  %v2733_v4 = vpop.f32.mrb[45].mxu1  ;;  %4981 = vpow2.f32 %v3582_v63 }
 0x273   : > { %v3891_v5 = vadd.f32 %v5709_v34, %v3820_v62  ;;  %v4435_v6 = vadd.f32 -1.0, %v4976_v2  ;;  %v3311_v7 = vpop.f32.mrb[45].mxu0  ;;  %v2734_v10 = vpop.f32.mrb[46].mxu1 }
 0x274   : > { %v5916_v11 = vadd.f32 %v4530_v60, %v3309_v3  ;;  %v4532_v9 = vadd.f32 %v5649_v29, %v2734_v10  ;;  %v3312_v12 = vpop.f32.mrb[46].mxu0  ;;  %v2736_v13 = vpop.f32.mrb[47].mxu1 }
 0x275   : > { %v4978_v0 = vpop.eup %4977  ;;  %3955 = vst.msk [vmem:[%s5719_s17 + $0x88] sm:$0xff] %vm2223_vm0, %v3891_v5  ;;  %v3750_v14 = vsel %vm3494_vm4, %v5876_v22, %v4435_v6  ;;  %v3314_v15 = vpop.f32.mrb[47].mxu0 }
 0x276   : > { %v3821_v8 = vmul.f32 %v5694_v21, %v3750_v14  ;;  %v4436_v16 = vadd.f32 -1.0, %v4978_v0  ;;  %v3584_v17 = vmul.f32 1.442695, %v5916_v11  ;;  %v5925_v18 = vadd.f32 %v4532_v9, %v3312_v12 }
 0x277   : > { %vm3498_vm8 = vcmp.gt.f32.partialorder %v5916_v11, 0.0 }
 0x278   : > { %v3892_v19 = vadd.f32 %v5709_v34, %v3821_v8  ;;  %v3751_v20 = vsel %vm3495_vm5, %v5885_v35, %v4436_v16  ;;  %4983 = vpow2.f32 %v3584_v17  ;;  %v3586_v25 = vmul.f32 1.442695, %v5925_v18 }
 0x279   : > { %v3822_v23 = vmul.f32 %v5694_v21, %v3751_v20  ;;  %v2739_v22 = vpop.f32.mrb[48].mxu1  ;;  %v3317_v28 = vpop.f32.mrb[48].mxu0  ;;  %vm3499_vm9 = vcmp.gt.f32.partialorder %v5925_v18, 0.0 }
 0x27a   : > { %v4980_v26 = vpop.eup %4979  ;;  %3956 = vst.msk [vmem:[%s5719_s17 + $0x90] sm:$0xff] %vm2223_vm0, %v3892_v19  ;;  %v4534_v24 = vadd.f32 %v5649_v29, %v2739_v22  ;;  %v2741_v30 = vpop.f32.mrb[49].mxu1  ;;  %4985 = vpow2.f32 %v3586_v25 }
 0x27b   : > { %v3893_v31 = vadd.f32 %v5709_v34, %v3822_v23  ;;  %v4437_v32 = vadd.f32 -1.0, %v4980_v26  ;;  %v3319_v33 = vpop.f32.mrb[49].mxu0  ;;  %v2742_v35 = vpop.f32.mrb[50].mxu1 }
 0x27c   : > { %v5936_v36 = vadd.f32 %v4534_v24, %v3317_v28  ;;  %v4536_v37 = vadd.f32 %v5649_v29, %v2742_v35  ;;  %v3320_v40 = vpop.f32.mrb[50].mxu0  ;;  %v2744_v27 = vpop.f32.mrb[51].mxu1 }
 0x27d   : > { %v4982_v38 = vpop.eup %4981  ;;  %3957 = vst.msk [vmem:[%s5719_s17 + $0x98] sm:$0xff] %vm2223_vm0, %v3893_v31  ;;  %v3752_v41 = vsel %vm3496_vm6, %v5896_v49, %v4437_v32  ;;  %v3322_v42 = vpop.f32.mrb[51].mxu0 }
 0x27e   : > { %v3823_v43 = vmul.f32 %v5694_v21, %v3752_v41  ;;  %v4438_v44 = vadd.f32 -1.0, %v4982_v38  ;;  %v3588_v45 = vmul.f32 1.442695, %v5936_v36  ;;  %v5945_v46 = vadd.f32 %v4536_v37, %v3320_v40 }
 0x27f   : > { %vm3500_vm10 = vcmp.gt.f32.partialorder %v5936_v36, 0.0 }
 0x280   : > { %v3894_v47 = vadd.f32 %v5709_v34, %v3823_v43  ;;  %v3753_v48 = vsel %vm3497_vm7, %v5905_v57, %v4438_v44  ;;  %4987 = vpow2.f32 %v3588_v45  ;;  %v3590_v51 = vmul.f32 1.442695, %v5945_v46 }
 0x281   : > { %v3824_v39 = vmul.f32 %v5694_v21, %v3753_v48  ;;  %v2747_v49 = vpop.f32.mrb[52].mxu1  ;;  %v3325_v53 = vpop.f32.mrb[52].mxu0  ;;  %vm3501_vm11 = vcmp.gt.f32.partialorder %v5945_v46, 0.0 }
 0x282   : > { %v4984_v52 = vpop.eup %4983  ;;  %3958 = vst.msk [vmem:[%s5719_s17 + $0xa0] sm:$0xff] %vm2223_vm0, %v3894_v47  ;;  %v4538_v50 = vadd.f32 %v5649_v29, %v2747_v49  ;;  %v2749_v54 = vpop.f32.mrb[53].mxu1  ;;  %4989 = vpow2.f32 %v3590_v51 }
 0x283   : > { %v3895_v55 = vadd.f32 %v5709_v34, %v3824_v39  ;;  %v4439_v1 = vadd.f32 -1.0, %v4984_v52  ;;  %v3327_v56 = vpop.f32.mrb[53].mxu0  ;;  %v2750_v57 = vpop.f32.mrb[54].mxu1 }
 0x284   : > { %v5956_v58 = vadd.f32 %v4538_v50, %v3325_v53  ;;  %v4540_v59 = vadd.f32 %v5649_v29, %v2750_v57  ;;  %v3328_v62 = vpop.f32.mrb[54].mxu0  ;;  %v2752_v63 = vpop.f32.mrb[55].mxu1 }
 0x285   : > { %v4986_v61 = vpop.eup %4985  ;;  %3959 = vst.msk [vmem:[%s5719_s17 + $0xa8] sm:$0xff] %vm2223_vm0, %v3895_v55  ;;  %v3754_v2 = vsel %vm3498_vm8, %v5916_v11, %v4439_v1  ;;  %v3330_v60 = vpop.f32.mrb[55].mxu0 }
 0x286   : > { %v3825_v3 = vmul.f32 %v5694_v21, %v3754_v2  ;;  %v4440_v4 = vadd.f32 -1.0, %v4986_v61  ;;  %v3592_v5 = vmul.f32 1.442695, %v5956_v58  ;;  %v5965_v6 = vadd.f32 %v4540_v59, %v3328_v62 }
 0x287   : > { %vm3502_vm12 = vcmp.gt.f32.partialorder %v5956_v58, 0.0 }
 0x288   : > { %v3896_v7 = vadd.f32 %v5709_v34, %v3825_v3  ;;  %v3755_v10 = vsel %vm3499_vm9, %v5925_v18, %v4440_v4  ;;  %4991 = vpow2.f32 %v3592_v5  ;;  %v3594_v12 = vmul.f32 1.442695, %v5965_v6 }
 0x289   : > { %v3826_v9 = vmul.f32 %v5694_v21, %v3755_v10  ;;  %v2755_v11 = vpop.f32.mrb[56].mxu1  ;;  %v3333_v14 = vpop.f32.mrb[56].mxu0  ;;  %vm3503_vm13 = vcmp.gt.f32.partialorder %v5965_v6, 0.0  ;;  %v6021_v10 = vld [vmem:[%s6360_s2] ss:$0 sm:$0xff] }
 0x28a   : > { %v4988_v13 = vpop.eup %4987  ;;  %3960 = vst.msk [vmem:[%s5719_s17 + $0xb0] sm:$0xff] %vm2223_vm0, %v3896_v7  ;;  %v4542_v0 = vadd.f32 %v5649_v29, %v2755_v11  ;;  %v2757_v15 = vpop.f32.mrb[57].mxu1  ;;  %4993 = vpow2.f32 %v3594_v12 }
 0x28b   : > { %v3897_v8 = vadd.f32 %v5709_v34, %v3826_v9  ;;  %v4441_v16 = vadd.f32 -1.0, %v4988_v13  ;;  %v3335_v17 = vpop.f32.mrb[57].mxu0  ;;  %v2758_v18 = vpop.f32.mrb[58].mxu1 }
 0x28c   : > { %v5976_v19 = vadd.f32 %v4542_v0, %v3333_v14  ;;  %v4544_v20 = vadd.f32 %v5649_v29, %v2758_v18  ;;  %v3336_v23 = vpop.f32.mrb[58].mxu0  ;;  %v2760_v25 = vpop.f32.mrb[59].mxu1 }
 0x28d   : > { %v4990_v22 = vpop.eup %4989  ;;  %3961 = vst.msk [vmem:[%s5719_s17 + $0xb8] sm:$0xff] %vm2223_vm0, %v3897_v8  ;;  %v3756_v26 = vsel %vm3500_vm10, %v5936_v36, %v4441_v16  ;;  %v3338_v24 = vpop.f32.mrb[59].mxu0 }
 0x28e   : > { %v3827_v28 = vmul.f32 %v5694_v21, %v3756_v26  ;;  %v4442_v30 = vadd.f32 -1.0, %v4990_v22  ;;  %v3596_v31 = vmul.f32 1.442695, %v5976_v19  ;;  %v5985_v32 = vadd.f32 %v4544_v20, %v3336_v23 }
 0x28f   : > { %vm3504_vm14 = vcmp.gt.f32.partialorder %v5976_v19, 0.0 }
 0x290   : > { %v3898_v33 = vadd.f32 %v5709_v34, %v3827_v28  ;;  %v3757_v35 = vsel %vm3501_vm11, %v5945_v46, %v4442_v30  ;;  %4995 = vpow2.f32 %v3596_v31  ;;  %v3598_v40 = vmul.f32 1.442695, %v5985_v32 }
 0x291   : > { %v3828_v37 = vmul.f32 %v5694_v21, %v3757_v35  ;;  %v2763_v36 = vpop.f32.mrb[60].mxu1  ;;  %v3341_v41 = vpop.f32.mrb[60].mxu0  ;;  %vm3505_vm15 = vcmp.gt.f32.partialorder %v5985_v32, 0.0 }
 0x292   : > { %v4992_v27 = vpop.eup %4991  ;;  %3962 = vst.msk [vmem:[%s5719_s17 + $0xc0] sm:$0xff] %vm2223_vm0, %v3898_v33  ;;  %v4546_v38 = vadd.f32 %v5649_v29, %v2763_v36  ;;  %v2765_v42 = vpop.f32.mrb[61].mxu1  ;;  %4997 = vpow2.f32 %v3598_v40 }
 0x293   : > { %v3899_v43 = vadd.f32 %v5709_v34, %v3828_v37  ;;  %v4443_v44 = vadd.f32 -1.0, %v4992_v27  ;;  %v3343_v45 = vpop.f32.mrb[61].mxu0  ;;  %v2766_v46 = vpop.f32.mrb[62].mxu1 }
 0x294   : > { %v5996_v47 = vadd.f32 %v4546_v38, %v3341_v41  ;;  %v4548_v48 = vadd.f32 %v5649_v29, %v2766_v46  ;;  %v3344_v39 = vpop.f32.mrb[62].mxu0  ;;  %v2768_v51 = vpop.f32.mrb[63].mxu1 }
 0x295   : > { %v4994_v49 = vpop.eup %4993  ;;  %3963 = vst.msk [vmem:[%s5719_s17 + $0xc8] sm:$0xff] %vm2223_vm0, %v3899_v43  ;;  %v3758_v52 = vsel %vm3502_vm12, %v5956_v58, %v4443_v44  ;;  %v3346_v50 = vpop.f32.mrb[63].mxu0 }
 0x296   : > { %v3829_v53 = vmul.f32 %v5694_v21, %v3758_v52  ;;  %v4444_v54 = vadd.f32 -1.0, %v4994_v49  ;;  %v3600_v55 = vmul.f32 1.442695, %v5996_v47  ;;  %v6005_v1 = vadd.f32 %v4548_v48, %v3344_v39 }
 0x297   : > { %vm3506_vm1 = vcmp.gt.f32.partialorder %v5996_v47, 0.0 }
 0x298   : > { %v3900_v56 = vadd.f32 %v5709_v34, %v3829_v53  ;;  %v3759_v57 = vsel %vm3503_vm13, %v5965_v6, %v4444_v54  ;;  %4999 = vpow2.f32 %v3600_v55  ;;  %v3602_v62 = vmul.f32 1.442695, %v6005_v1 }
 0x299   : > { %v3830_v59 = vmul.f32 %v5694_v21, %v3759_v57  ;;  %v2771_v58 = vpop.f32.mrb[64].mxu1  ;;  %v3349_v2 = vpop.f32.mrb[64].mxu0  ;;  %vm3507_vm2 = vcmp.gt.f32.partialorder %v6005_v1, 0.0 }
 0x29a   : > { %v4996_v63 = vpop.eup %4995  ;;  %3964 = vst.msk [vmem:[%s5719_s17 + $0xd0] sm:$0xff] %vm2223_vm0, %v3900_v56  ;;  %v4550_v61 = vadd.f32 %v5649_v29, %v2771_v58  ;;  %v2773_v60 = vpop.f32.mrb[65].mxu1  ;;  %5001 = vpow2.f32 %v3602_v62 }
 0x29b   : > { %v3901_v3 = vadd.f32 %v5709_v34, %v3830_v59  ;;  %v4445_v4 = vadd.f32 -1.0, %v4996_v63  ;;  %v3351_v5 = vpop.f32.mrb[65].mxu0  ;;  %v2774_v6 = vpop.f32.mrb[66].mxu1 }
 0x29c   : > { %v6016_v7 = vadd.f32 %v4550_v61, %v3349_v2  ;;  %v4552_v9 = vadd.f32 %v6021_v10, %v2774_v6  ;;  %v3352_v29 = vpop.f32.mrb[66].mxu0  ;;  %v2776_v12 = vpop.f32.mrb[67].mxu1  ;;  %v6070_v61 = vld [vmem:[%s6361_s3] ss:$0 sm:$0xff] }
 0x29d   : > { %v4998_v11 = vpop.eup %4997  ;;  %3965 = vst.msk [vmem:[%s5719_s17 + $0xd8] sm:$0xff] %vm2223_vm0, %v3901_v3  ;;  %v3760_v13 = vsel %vm3504_vm14, %v5976_v19, %v4445_v4  ;;  %v3354_v0 = vpop.f32.mrb[67].mxu0 }
 0x29e   : > { %v3831_v14 = vmul.f32 %v5694_v21, %v3760_v13  ;;  %v4446_v15 = vadd.f32 -1.0, %v4998_v11  ;;  %v3604_v8 = vmul.f32 1.442695, %v6016_v7  ;;  %v6030_v16 = vadd.f32 %v4552_v9, %v3352_v29 }
 0x29f   : > { %vm3508_vm3 = vcmp.gt.f32.partialorder %v6016_v7, 0.0 }
 0x2a0   : > { %v3902_v17 = vadd.f32 %v5709_v34, %v3831_v14  ;;  %v3761_v18 = vsel %vm3505_vm15, %v5985_v32, %v4446_v15  ;;  %5003 = vpow2.f32 %v3604_v8  ;;  %v3606_v23 = vmul.f32 1.442695, %v6030_v16 }
 0x2a1   : > { %v3832_v20 = vmul.f32 %v5694_v21, %v3761_v18  ;;  %v2779_v19 = vpop.f32.mrb[68].mxu1  ;;  %v3357_v26 = vpop.f32.mrb[68].mxu0  ;;  %vm3509_vm4 = vcmp.gt.f32.partialorder %v6030_v16, 0.0 }
 0x2a2   : > { %v5000_v25 = vpop.eup %4999  ;;  %3966 = vst.msk [vmem:[%s5719_s17 + $0xe0] sm:$0xff] %vm2223_vm0, %v3902_v17  ;;  %v4554_v22 = vadd.f32 %v6021_v10, %v2779_v19  ;;  %v2781_v24 = vpop.f32.mrb[69].mxu1  ;;  %5005 = vpow2.f32 %v3606_v23 }
 0x2a3   : > { %v3903_v28 = vadd.f32 %v5709_v34, %v3832_v20  ;;  %v4447_v30 = vadd.f32 -1.0, %v5000_v25  ;;  %v3359_v31 = vpop.f32.mrb[69].mxu0  ;;  %v2782_v32 = vpop.f32.mrb[70].mxu1 }
 0x2a4   : > { %v6041_v33 = vadd.f32 %v4554_v22, %v3357_v26  ;;  %v4556_v35 = vadd.f32 %v6021_v10, %v2782_v32  ;;  %v3360_v37 = vpop.f32.mrb[70].mxu0  ;;  %v2784_v40 = vpop.f32.mrb[71].mxu1 }
 0x2a5   : > { %v5002_v36 = vpop.eup %5001  ;;  %3967 = vst.msk [vmem:[%s5719_s17 + $0xe8] sm:$0xff] %vm2223_vm0, %v3903_v28  ;;  %v3762_v27 = vsel %vm3506_vm1, %v5996_v47, %v4447_v30  ;;  %v3362_v38 = vpop.f32.mrb[71].mxu0 }
 0x2a6   : > { %v3833_v41 = vmul.f32 %v5694_v21, %v3762_v27  ;;  %v4448_v42 = vadd.f32 -1.0, %v5002_v36  ;;  %v3608_v43 = vmul.f32 1.442695, %v6041_v33  ;;  %v6050_v44 = vadd.f32 %v4556_v35, %v3360_v37 }
 0x2a7   : > { %vm3510_vm5 = vcmp.gt.f32.partialorder %v6041_v33, 0.0 }
 0x2a8   : > { %v3904_v45 = vadd.f32 %v5709_v34, %v3833_v41  ;;  %v3763_v46 = vsel %vm3507_vm2, %v6005_v1, %v4448_v42  ;;  %5007 = vpow2.f32 %v3608_v43  ;;  %v3610_v39 = vmul.f32 1.442695, %v6050_v44 }
 0x2a9   : > { %v3834_v48 = vmul.f32 %v5694_v21, %v3763_v46  ;;  %v2787_v47 = vpop.f32.mrb[72].mxu1  ;;  %v3365_v52 = vpop.f32.mrb[72].mxu0  ;;  %vm3511_vm6 = vcmp.gt.f32.partialorder %v6050_v44, 0.0 }
 0x2aa   : > { %v5004_v51 = vpop.eup %5003  ;;  %3968 = vst.msk [vmem:[%s5719_s17 + $0xf0] sm:$0xff] %vm2223_vm0, %v3904_v45  ;;  %v4558_v49 = vadd.f32 %v6021_v10, %v2787_v47  ;;  %v2789_v50 = vpop.f32.mrb[73].mxu1  ;;  %5009 = vpow2.f32 %v3610_v39 }
 0x2ab   : > { %v3905_v53 = vadd.f32 %v5709_v34, %v3834_v48  ;;  %v4449_v54 = vadd.f32 -1.0, %v5004_v51  ;;  %v3367_v55 = vpop.f32.mrb[73].mxu0  ;;  %v2790_v1 = vpop.f32.mrb[74].mxu1 }
 0x2ac   : > { %v6061_v21 = vadd.f32 %v4558_v49, %v3365_v52  ;;  %v4560_v56 = vadd.f32 %v6021_v10, %v2790_v1  ;;  %v3368_v57 = vpop.f32.mrb[74].mxu0  ;;  %v2792_v59 = vpop.f32.mrb[75].mxu1 }
 0x2ad   : > { %v5006_v62 = vpop.eup %5005  ;;  %3969 = vst.msk [vmem:[%s5719_s17 + $0xf8] sm:$0xff] %vm2223_vm0, %v3905_v53  ;;  %v3764_v58 = vsel %vm3508_vm3, %v6016_v7, %v4449_v54  ;;  %v3370_v63 = vpop.f32.mrb[75].mxu0 }
 0x2ae   : > { %v3835_v2 = vmul.f32 %v6070_v61, %v3764_v58  ;;  %v4450_v60 = vadd.f32 -1.0, %v5006_v62  ;;  %v3612_v3 = vmul.f32 1.442695, %v6061_v21  ;;  %v6075_v4 = vadd.f32 %v4560_v56, %v3368_v57 }
 0x2af   : > { %vm3512_vm7 = vcmp.gt.f32.partialorder %v6061_v21, 0.0 }
 0x2b0   : > { %v3906_v5 = vadd.f32 %v5709_v34, %v3835_v2  ;;  %v3765_v6 = vsel %vm3509_vm4, %v6030_v16, %v4450_v60  ;;  %5011 = vpow2.f32 %v3612_v3  ;;  %v3614_v9 = vmul.f32 1.442695, %v6075_v4  ;;  %v6087_v34 = vld [vmem:[%s6362_s4] ss:$0 sm:$0xff] }
 0x2b1   : > { %v3836_v7 = vmul.f32 %v6070_v61, %v3765_v6  ;;  %v2795_v29 = vpop.f32.mrb[76].mxu1  ;;  %v3373_v13 = vpop.f32.mrb[76].mxu0  ;;  %vm3513_vm8 = vcmp.gt.f32.partialorder %v6075_v4, 0.0 }
 0x2b2   : > { %v5008_v12 = vpop.eup %5007  ;;  %3970 = vst.msk [vmem:[%s5719_s17 + $0x100] sm:$0xff] %vm2223_vm0, %v3906_v5  ;;  %v4562_v11 = vadd.f32 %v6021_v10, %v2795_v29  ;;  %v2797_v0 = vpop.f32.mrb[77].mxu1  ;;  %5013 = vpow2.f32 %v3614_v9 }
 0x2b3   : > { %v3907_v14 = vadd.f32 %v6087_v34, %v3836_v7  ;;  %v4451_v15 = vadd.f32 -1.0, %v5008_v12  ;;  %v3375_v8 = vpop.f32.mrb[77].mxu0  ;;  %v2798_v16 = vpop.f32.mrb[78].mxu1 }
 0x2b4   : > { %v6091_v17 = vadd.f32 %v4562_v11, %v3373_v13  ;;  %v4564_v18 = vadd.f32 %v6021_v10, %v2798_v16  ;;  %v3376_v20 = vpop.f32.mrb[78].mxu0  ;;  %v2800_v23 = vpop.f32.mrb[79].mxu1 }
 0x2b5   : > { %v5010_v19 = vpop.eup %5009  ;;  %3971 = vst.msk [vmem:[%s5719_s17 + $0x108] sm:$0xff] %vm2223_vm0, %v3907_v14  ;;  %v3766_v25 = vsel %vm3510_vm5, %v6041_v33, %v4451_v15  ;;  %v3378_v22 = vpop.f32.mrb[79].mxu0 }
 0x2b6   : > { %v3837_v26 = vmul.f32 %v6070_v61, %v3766_v25  ;;  %v4452_v24 = vadd.f32 -1.0, %v5010_v19  ;;  %v3616_v28 = vmul.f32 1.442695, %v6091_v17  ;;  %v6100_v30 = vadd.f32 %v4564_v18, %v3376_v20 }
 0x2b7   : > { %vm3514_vm9 = vcmp.gt.f32.partialorder %v6091_v17, 0.0 }
 0x2b8   : > { %v3908_v31 = vadd.f32 %v6087_v34, %v3837_v26  ;;  %v3767_v32 = vsel %vm3511_vm6, %v6050_v44, %v4452_v24  ;;  %5015 = vpow2.f32 %v3616_v28  ;;  %v3618_v37 = vmul.f32 1.442695, %v6100_v30 }
 0x2b9   : > { %v3838_v35 = vmul.f32 %v6070_v61, %v3767_v32  ;;  %v2803_v33 = vpop.f32.mrb[80].mxu1  ;;  %v3381_v27 = vpop.f32.mrb[80].mxu0  ;;  %vm3515_vm10 = vcmp.gt.f32.partialorder %v6100_v30, 0.0 }
 0x2ba   : > { %v5012_v40 = vpop.eup %5011  ;;  %3972 = vst.msk [vmem:[%s5719_s17 + $0x110] sm:$0xff] %vm2223_vm0, %v3908_v31  ;;  %v4566_v36 = vadd.f32 %v6021_v10, %v2803_v33  ;;  %v2805_v38 = vpop.f32.mrb[81].mxu1  ;;  %5017 = vpow2.f32 %v3618_v37 }
 0x2bb   : > { %v3909_v41 = vadd.f32 %v6087_v34, %v3838_v35  ;;  %v4453_v42 = vadd.f32 -1.0, %v5012_v40  ;;  %v3383_v43 = vpop.f32.mrb[81].mxu0  ;;  %v2806_v44 = vpop.f32.mrb[82].mxu1 }
 0x2bc   : > { %v6111_v45 = vadd.f32 %v4566_v36, %v3381_v27  ;;  %v4568_v46 = vadd.f32 %v6021_v10, %v2806_v44  ;;  %v3384_v48 = vpop.f32.mrb[82].mxu0  ;;  %v2808_v39 = vpop.f32.mrb[83].mxu1 }
 0x2bd   : > { %v5014_v47 = vpop.eup %5013  ;;  %3973 = vst.msk [vmem:[%s5719_s17 + $0x118] sm:$0xff] %vm2223_vm0, %v3909_v41  ;;  %v3768_v51 = vsel %vm3512_vm7, %v6061_v21, %v4453_v42  ;;  %v3386_v49 = vpop.f32.mrb[83].mxu0 }
 0x2be   : > { %v3839_v52 = vmul.f32 %v6070_v61, %v3768_v51  ;;  %v4454_v50 = vadd.f32 -1.0, %v5014_v47  ;;  %v3620_v53 = vmul.f32 1.442695, %v6111_v45  ;;  %v6120_v54 = vadd.f32 %v4568_v46, %v3384_v48 }
 0x2bf   : > { %vm3516_vm11 = vcmp.gt.f32.partialorder %v6111_v45, 0.0 }
 0x2c0   : > { %v3910_v55 = vadd.f32 %v6087_v34, %v3839_v52  ;;  %v3769_v1 = vsel %vm3513_vm8, %v6075_v4, %v4454_v50  ;;  %5019 = vpow2.f32 %v3620_v53  ;;  %v3622_v57 = vmul.f32 1.442695, %v6120_v54 }
 0x2c1   : > { %v3840_v56 = vmul.f32 %v6070_v61, %v3769_v1  ;;  %v2811_v21 = vpop.f32.mrb[84].mxu1  ;;  %v3389_v58 = vpop.f32.mrb[84].mxu0  ;;  %vm3517_vm12 = vcmp.gt.f32.partialorder %v6120_v54, 0.0 }
 0x2c2   : > { %v5016_v59 = vpop.eup %5015  ;;  %3974 = vst.msk [vmem:[%s5719_s17 + $0x120] sm:$0xff] %vm2223_vm0, %v3910_v55  ;;  %v4570_v62 = vadd.f32 %v6021_v10, %v2811_v21  ;;  %v2813_v63 = vpop.f32.mrb[85].mxu1  ;;  %5021 = vpow2.f32 %v3622_v57 }
 0x2c3   : > { %v3911_v2 = vadd.f32 %v6087_v34, %v3840_v56  ;;  %v4455_v60 = vadd.f32 -1.0, %v5016_v59  ;;  %v3391_v3 = vpop.f32.mrb[85].mxu0  ;;  %v2814_v4 = vpop.f32.mrb[86].mxu1 }
 0x2c4   : > { %v6131_v5 = vadd.f32 %v4570_v62, %v3389_v58  ;;  %v4572_v6 = vadd.f32 %v6021_v10, %v2814_v4  ;;  %v3392_v7 = vpop.f32.mrb[86].mxu0  ;;  %v2816_v9 = vpop.f32.mrb[87].mxu1 }
 0x2c5   : > { %v5018_v29 = vpop.eup %5017  ;;  %3975 = vst.msk [vmem:[%s5719_s17 + $0x128] sm:$0xff] %vm2223_vm0, %v3911_v2  ;;  %v3770_v12 = vsel %vm3514_vm9, %v6091_v17, %v4455_v60  ;;  %v3394_v11 = vpop.f32.mrb[87].mxu0 }
 0x2c6   : > { %v3841_v13 = vmul.f32 %v6070_v61, %v3770_v12  ;;  %v4456_v0 = vadd.f32 -1.0, %v5018_v29  ;;  %v3624_v14 = vmul.f32 1.442695, %v6131_v5  ;;  %v6140_v15 = vadd.f32 %v4572_v6, %v3392_v7 }
 0x2c7   : > { %vm3518_vm13 = vcmp.gt.f32.partialorder %v6131_v5, 0.0 }
 0x2c8   : > { %v3912_v8 = vadd.f32 %v6087_v34, %v3841_v13  ;;  %v3771_v16 = vsel %vm3515_vm10, %v6100_v30, %v4456_v0  ;;  %5023 = vpow2.f32 %v3624_v14  ;;  %v3626_v20 = vmul.f32 1.442695, %v6140_v15 }
 0x2c9   : > { %v3842_v18 = vmul.f32 %v6070_v61, %v3771_v16  ;;  %v2819_v17 = vpop.f32.mrb[88].mxu1  ;;  %v3397_v25 = vpop.f32.mrb[88].mxu0  ;;  %vm3519_vm14 = vcmp.gt.f32.partialorder %v6140_v15, 0.0 }
 0x2ca   : > { %v5020_v23 = vpop.eup %5019  ;;  %3976 = vst.msk [vmem:[%s5719_s17 + $0x130] sm:$0xff] %vm2223_vm0, %v3912_v8  ;;  %v4574_v19 = vadd.f32 %v6021_v10, %v2819_v17  ;;  %v2821_v22 = vpop.f32.mrb[89].mxu1  ;;  %5025 = vpow2.f32 %v3626_v20 }
 0x2cb   : > { %v3913_v26 = vadd.f32 %v6087_v34, %v3842_v18  ;;  %v4457_v24 = vadd.f32 -1.0, %v5020_v23  ;;  %v3399_v28 = vpop.f32.mrb[89].mxu0  ;;  %v2822_v30 = vpop.f32.mrb[90].mxu1 }
 0x2cc   : > { %v6151_v31 = vadd.f32 %v4574_v19, %v3397_v25  ;;  %v4576_v32 = vadd.f32 %v6021_v10, %v2822_v30  ;;  %v3400_v35 = vpop.f32.mrb[90].mxu0  ;;  %v2824_v37 = vpop.f32.mrb[91].mxu1 }
 0x2cd   : > { %v5022_v33 = vpop.eup %5021  ;;  %3977 = vst.msk [vmem:[%s5719_s17 + $0x138] sm:$0xff] %vm2223_vm0, %v3913_v26  ;;  %v3772_v40 = vsel %vm3516_vm11, %v6111_v45, %v4457_v24  ;;  %v3402_v36 = vpop.f32.mrb[91].mxu0 }
 0x2ce   : > { %v3843_v27 = vmul.f32 %v6070_v61, %v3772_v40  ;;  %v4458_v38 = vadd.f32 -1.0, %v5022_v33  ;;  %v3628_v41 = vmul.f32 1.442695, %v6151_v31  ;;  %v6160_v42 = vadd.f32 %v4576_v32, %v3400_v35 }
 0x2cf   : > { %vm3520_vm15 = vcmp.gt.f32.partialorder %v6151_v31, 0.0 }
 0x2d0   : > { %v3914_v43 = vadd.f32 %v6087_v34, %v3843_v27  ;;  %v3773_v44 = vsel %vm3517_vm12, %v6120_v54, %v4458_v38  ;;  %5027 = vpow2.f32 %v3628_v41  ;;  %v3630_v48 = vmul.f32 1.442695, %v6160_v42 }
 0x2d1   : > { %v3844_v46 = vmul.f32 %v6070_v61, %v3773_v44  ;;  %v2827_v45 = vpop.f32.mrb[92].mxu1  ;;  %v3405_v51 = vpop.f32.mrb[92].mxu0  ;;  %vm3521_vm1 = vcmp.gt.f32.partialorder %v6160_v42, 0.0 }
 0x2d2   : > { %v5024_v39 = vpop.eup %5023  ;;  %3978 = vst.msk [vmem:[%s5719_s17 + $0x140] sm:$0xff] %vm2223_vm0, %v3914_v43  ;;  %v4578_v47 = vadd.f32 %v6021_v10, %v2827_v45  ;;  %v2829_v49 = vpop.f32.mrb[93].mxu1  ;;  %5029 = vpow2.f32 %v3630_v48 }
 0x2d3   : > { %v3915_v52 = vadd.f32 %v6087_v34, %v3844_v46  ;;  %v4459_v50 = vadd.f32 -1.0, %v5024_v39  ;;  %v3407_v53 = vpop.f32.mrb[93].mxu0  ;;  %v2830_v54 = vpop.f32.mrb[94].mxu1 }
 0x2d4   : > { %v6171_v55 = vadd.f32 %v4578_v47, %v3405_v51  ;;  %v4580_v1 = vadd.f32 %v6021_v10, %v2830_v54  ;;  %v3408_v56 = vpop.f32.mrb[94].mxu0  ;;  %v2832_v57 = vpop.f32.mrb[95].mxu1 }
 0x2d5   : > { %v5026_v21 = vpop.eup %5025  ;;  %3979 = vst.msk [vmem:[%s5719_s17 + $0x148] sm:$0xff] %vm2223_vm0, %v3915_v52  ;;  %v3774_v59 = vsel %vm3518_vm13, %v6131_v5, %v4459_v50  ;;  %v3410_v62 = vpop.f32.mrb[95].mxu0 }
 0x2d6   : > { %v3845_v58 = vmul.f32 %v6070_v61, %v3774_v59  ;;  %v4460_v63 = vadd.f32 -1.0, %v5026_v21  ;;  %v3632_v2 = vmul.f32 1.442695, %v6171_v55  ;;  %v6180_v60 = vadd.f32 %v4580_v1, %v3408_v56 }
 0x2d7   : > { %vm3522_vm2 = vcmp.gt.f32.partialorder %v6171_v55, 0.0 }
 0x2d8   : > { %v3916_v3 = vadd.f32 %v6087_v34, %v3845_v58  ;;  %v3775_v4 = vsel %vm3519_vm14, %v6140_v15, %v4460_v63  ;;  %5031 = vpow2.f32 %v3632_v2  ;;  %v3634_v7 = vmul.f32 1.442695, %v6180_v60 }
 0x2d9   : > { %v3846_v6 = vmul.f32 %v6070_v61, %v3775_v4  ;;  %v2835_v5 = vpop.f32.mrb[96].mxu1  ;;  %v3413_v12 = vpop.f32.mrb[96].mxu0  ;;  %vm3523_vm3 = vcmp.gt.f32.partialorder %v6180_v60, 0.0 }
 0x2da   : > { %v5028_v9 = vpop.eup %5027  ;;  %3980 = vst.msk [vmem:[%s5719_s17 + $0x150] sm:$0xff] %vm2223_vm0, %v3916_v3  ;;  %v4582_v29 = vadd.f32 %v6021_v10, %v2835_v5  ;;  %v2837_v11 = vpop.f32.mrb[97].mxu1  ;;  %5033 = vpow2.f32 %v3634_v7 }
 0x2db   : > { %v3917_v13 = vadd.f32 %v6087_v34, %v3846_v6  ;;  %v4461_v0 = vadd.f32 -1.0, %v5028_v9  ;;  %v3415_v14 = vpop.f32.mrb[97].mxu0  ;;  %v2838_v15 = vpop.f32.mrb[98].mxu1 }
 0x2dc   : > { %v6191_v8 = vadd.f32 %v4582_v29, %v3413_v12  ;;  %v4584_v16 = vadd.f32 %v6021_v10, %v2838_v15  ;;  %v3416_v18 = vpop.f32.mrb[98].mxu0  ;;  %v2840_v20 = vpop.f32.mrb[99].mxu1 }
 0x2dd   : > { %v5030_v17 = vpop.eup %5029  ;;  %3981 = vst.msk [vmem:[%s5719_s17 + $0x158] sm:$0xff] %vm2223_vm0, %v3917_v13  ;;  %v3776_v23 = vsel %vm3520_vm15, %v6151_v31, %v4461_v0  ;;  %v3418_v19 = vpop.f32.mrb[99].mxu0 }
 0x2de   : > { %v3847_v25 = vmul.f32 %v6070_v61, %v3776_v23  ;;  %v4462_v22 = vadd.f32 -1.0, %v5030_v17  ;;  %v3636_v26 = vmul.f32 1.442695, %v6191_v8  ;;  %v6200_v24 = vadd.f32 %v4584_v16, %v3416_v18 }
 0x2df   : > { %vm3524_vm4 = vcmp.gt.f32.partialorder %v6191_v8, 0.0 }
 0x2e0   : > { %v3918_v28 = vadd.f32 %v6087_v34, %v3847_v25  ;;  %v3777_v30 = vsel %vm3521_vm1, %v6160_v42, %v4462_v22  ;;  %5035 = vpow2.f32 %v3636_v26  ;;  %v3638_v35 = vmul.f32 1.442695, %v6200_v24 }
 0x2e1   : > { %v3848_v32 = vmul.f32 %v6070_v61, %v3777_v30  ;;  %v2843_v31 = vpop.f32.mrb[100].mxu1  ;;  %v3421_v40 = vpop.f32.mrb[100].mxu0  ;;  %vm3525_vm5 = vcmp.gt.f32.partialorder %v6200_v24, 0.0 }
 0x2e2   : > { %v5032_v37 = vpop.eup %5031  ;;  %3982 = vst.msk [vmem:[%s5719_s17 + $0x160] sm:$0xff] %vm2223_vm0, %v3918_v28  ;;  %v4586_v33 = vadd.f32 %v6021_v10, %v2843_v31  ;;  %v2845_v36 = vpop.f32.mrb[101].mxu1  ;;  %5037 = vpow2.f32 %v3638_v35 }
 0x2e3   : > { %v3919_v27 = vadd.f32 %v6087_v34, %v3848_v32  ;;  %v4463_v38 = vadd.f32 -1.0, %v5032_v37  ;;  %v3423_v41 = vpop.f32.mrb[101].mxu0  ;;  %v2846_v42 = vpop.f32.mrb[102].mxu1 }
 0x2e4   : > { %v6211_v43 = vadd.f32 %v4586_v33, %v3421_v40  ;;  %v4588_v44 = vadd.f32 %v6021_v10, %v2846_v42  ;;  %v3424_v46 = vpop.f32.mrb[102].mxu0  ;;  %v2848_v48 = vpop.f32.mrb[103].mxu1 }
 0x2e5   : > { %v5034_v45 = vpop.eup %5033  ;;  %3983 = vst.msk [vmem:[%s5719_s17 + $0x168] sm:$0xff] %vm2223_vm0, %v3919_v27  ;;  %v3778_v39 = vsel %vm3522_vm2, %v6171_v55, %v4463_v38  ;;  %v3426_v47 = vpop.f32.mrb[103].mxu0 }
 0x2e6   : > { %v3849_v51 = vmul.f32 %v6070_v61, %v3778_v39  ;;  %v4464_v49 = vadd.f32 -1.0, %v5034_v45  ;;  %v3640_v52 = vmul.f32 1.442695, %v6211_v43  ;;  %v6220_v50 = vadd.f32 %v4588_v44, %v3424_v46 }
 0x2e7   : > { %vm3526_vm6 = vcmp.gt.f32.partialorder %v6211_v43, 0.0 }
 0x2e8   : > { %v3920_v53 = vadd.f32 %v6087_v34, %v3849_v51  ;;  %v3779_v54 = vsel %vm3523_vm3, %v6180_v60, %v4464_v49  ;;  %5039 = vpow2.f32 %v3640_v52  ;;  %v3642_v56 = vmul.f32 1.442695, %v6220_v50 }
 0x2e9   : > { %v3850_v1 = vmul.f32 %v6070_v61, %v3779_v54  ;;  %v2851_v55 = vpop.f32.mrb[104].mxu1  ;;  %v3429_v59 = vpop.f32.mrb[104].mxu0  ;;  %vm3527_vm7 = vcmp.gt.f32.partialorder %v6220_v50, 0.0 }
 0x2ea   : > { %v5036_v57 = vpop.eup %5035  ;;  %3984 = vst.msk [vmem:[%s5719_s17 + $0x170] sm:$0xff] %vm2223_vm0, %v3920_v53  ;;  %v4590_v21 = vadd.f32 %v6021_v10, %v2851_v55  ;;  %v2853_v62 = vpop.f32.mrb[105].mxu1  ;;  %5041 = vpow2.f32 %v3642_v56 }
 0x2eb   : > { %v3921_v58 = vadd.f32 %v6087_v34, %v3850_v1  ;;  %v4465_v63 = vadd.f32 -1.0, %v5036_v57  ;;  %v3431_v2 = vpop.f32.mrb[105].mxu0  ;;  %v2854_v60 = vpop.f32.mrb[106].mxu1 }
 0x2ec   : > { %v6231_v3 = vadd.f32 %v4590_v21, %v3429_v59  ;;  %v4592_v4 = vadd.f32 %v6021_v10, %v2854_v60  ;;  %v3432_v6 = vpop.f32.mrb[106].mxu0  ;;  %v2856_v7 = vpop.f32.mrb[107].mxu1 }
 0x2ed   : > { %v5038_v5 = vpop.eup %5037  ;;  %3985 = vst.msk [vmem:[%s5719_s17 + $0x178] sm:$0xff] %vm2223_vm0, %v3921_v58  ;;  %v3780_v9 = vsel %vm3524_vm4, %v6191_v8, %v4465_v63  ;;  %v3434_v29 = vpop.f32.mrb[107].mxu0 }
 0x2ee   : > { %v3851_v12 = vmul.f32 %v6070_v61, %v3780_v9  ;;  %v4466_v11 = vadd.f32 -1.0, %v5038_v5  ;;  %v3644_v13 = vmul.f32 1.442695, %v6231_v3  ;;  %v6240_v0 = vadd.f32 %v4592_v4, %v3432_v6 }
 0x2ef   : > { %vm3528_vm8 = vcmp.gt.f32.partialorder %v6231_v3, 0.0 }
 0x2f0   : > { %v3922_v14 = vadd.f32 %v6087_v34, %v3851_v12  ;;  %v3781_v15 = vsel %vm3525_vm5, %v6200_v24, %v4466_v11  ;;  %5043 = vpow2.f32 %v3644_v13  ;;  %v3646_v18 = vmul.f32 1.442695, %v6240_v0 }
 0x2f1   : > { %v3852_v16 = vmul.f32 %v6070_v61, %v3781_v15  ;;  %v2859_v8 = vpop.f32.mrb[108].mxu1  ;;  %v3437_v23 = vpop.f32.mrb[108].mxu0  ;;  %vm3529_vm9 = vcmp.gt.f32.partialorder %v6240_v0, 0.0 }
 0x2f2   : > { %v5040_v20 = vpop.eup %5039  ;;  %3986 = vst.msk [vmem:[%s5719_s17 + $0x180] sm:$0xff] %vm2223_vm0, %v3922_v14  ;;  %v4594_v17 = vadd.f32 %v6021_v10, %v2859_v8  ;;  %v2861_v19 = vpop.f32.mrb[109].mxu1  ;;  %5045 = vpow2.f32 %v3646_v18 }
 0x2f3   : > { %v3923_v25 = vadd.f32 %v6087_v34, %v3852_v16  ;;  %v4467_v22 = vadd.f32 -1.0, %v5040_v20  ;;  %v3439_v26 = vpop.f32.mrb[109].mxu0  ;;  %v2862_v24 = vpop.f32.mrb[110].mxu1 }
 0x2f4   : > { %v6251_v28 = vadd.f32 %v4594_v17, %v3437_v23  ;;  %v4596_v30 = vadd.f32 %v6021_v10, %v2862_v24  ;;  %v3440_v32 = vpop.f32.mrb[110].mxu0  ;;  %v2864_v35 = vpop.f32.mrb[111].mxu1 }
 0x2f5   : > { %v5042_v31 = vpop.eup %5041  ;;  %3987 = vst.msk [vmem:[%s5719_s17 + $0x188] sm:$0xff] %vm2223_vm0, %v3923_v25  ;;  %v3782_v37 = vsel %vm3526_vm6, %v6211_v43, %v4467_v22  ;;  %v3442_v33 = vpop.f32.mrb[111].mxu0 }
 0x2f6   : > { %v3853_v40 = vmul.f32 %v6070_v61, %v3782_v37  ;;  %v4468_v36 = vadd.f32 -1.0, %v5042_v31  ;;  %v3648_v27 = vmul.f32 1.442695, %v6251_v28  ;;  %v6260_v38 = vadd.f32 %v4596_v30, %v3440_v32 }
 0x2f7   : > { %vm3530_vm10 = vcmp.gt.f32.partialorder %v6251_v28, 0.0 }
 0x2f8   : > { %v3924_v41 = vadd.f32 %v6087_v34, %v3853_v40  ;;  %v3783_v42 = vsel %vm3527_vm7, %v6220_v50, %v4468_v36  ;;  %5047 = vpow2.f32 %v3648_v27  ;;  %v3650_v46 = vmul.f32 1.442695, %v6260_v38 }
 0x2f9   : > { %v3854_v44 = vmul.f32 %v6070_v61, %v3783_v42  ;;  %v2867_v43 = vpop.f32.mrb[112].mxu1  ;;  %v3445_v39 = vpop.f32.mrb[112].mxu0  ;;  %vm3531_vm11 = vcmp.gt.f32.partialorder %v6260_v38, 0.0 }
 0x2fa   : > { %v5044_v48 = vpop.eup %5043  ;;  %3988 = vst.msk [vmem:[%s5719_s17 + $0x190] sm:$0xff] %vm2223_vm0, %v3924_v41  ;;  %v4598_v45 = vadd.f32 %v6021_v10, %v2867_v43  ;;  %v2869_v47 = vpop.f32.mrb[113].mxu1  ;;  %5049 = vpow2.f32 %v3650_v46 }
 0x2fb   : > { %v3925_v51 = vadd.f32 %v6087_v34, %v3854_v44  ;;  %v4469_v49 = vadd.f32 -1.0, %v5044_v48  ;;  %v3447_v52 = vpop.f32.mrb[113].mxu0  ;;  %v2870_v50 = vpop.f32.mrb[114].mxu1 }
 0x2fc   : > { %v6271_v53 = vadd.f32 %v4598_v45, %v3445_v39  ;;  %v4600_v54 = vadd.f32 %v6021_v10, %v2870_v50  ;;  %v3448_v1 = vpop.f32.mrb[114].mxu0  ;;  %v2872_v56 = vpop.f32.mrb[115].mxu1 }
 0x2fd   : > { %v5046_v55 = vpop.eup %5045  ;;  %3989 = vst.msk [vmem:[%s5719_s17 + $0x198] sm:$0xff] %vm2223_vm0, %v3925_v51  ;;  %v3784_v57 = vsel %vm3528_vm8, %v6231_v3, %v4469_v49  ;;  %v3450_v21 = vpop.f32.mrb[115].mxu0 }
 0x2fe   : > { %v3855_v59 = vmul.f32 %v6070_v61, %v3784_v57  ;;  %v4470_v62 = vadd.f32 -1.0, %v5046_v55  ;;  %v3652_v58 = vmul.f32 1.442695, %v6271_v53  ;;  %v6280_v63 = vadd.f32 %v4600_v54, %v3448_v1 }
 0x2ff   : > { %vm3532_vm12 = vcmp.gt.f32.partialorder %v6271_v53, 0.0 }
 0x300   : > { %v3926_v2 = vadd.f32 %v6087_v34, %v3855_v59  ;;  %v3785_v60 = vsel %vm3529_vm9, %v6240_v0, %v4470_v62  ;;  %5051 = vpow2.f32 %v3652_v58  ;;  %v3654_v6 = vmul.f32 1.442695, %v6280_v63 }
 0x301   : > { %v3856_v4 = vmul.f32 %v6070_v61, %v3785_v60  ;;  %v2875_v3 = vpop.f32.mrb[116].mxu1  ;;  %v3453_v9 = vpop.f32.mrb[116].mxu0  ;;  %vm3533_vm13 = vcmp.gt.f32.partialorder %v6280_v63, 0.0 }
 0x302   : > { %v5048_v7 = vpop.eup %5047  ;;  %3990 = vst.msk [vmem:[%s5719_s17 + $0x1a0] sm:$0xff] %vm2223_vm0, %v3926_v2  ;;  %v4602_v5 = vadd.f32 %v6021_v10, %v2875_v3  ;;  %v2877_v29 = vpop.f32.mrb[117].mxu1  ;;  %5053 = vpow2.f32 %v3654_v6 }
 0x303   : > { %v3927_v12 = vadd.f32 %v6087_v34, %v3856_v4  ;;  %v4471_v11 = vadd.f32 -1.0, %v5048_v7  ;;  %v3455_v13 = vpop.f32.mrb[117].mxu0  ;;  %v2878_v0 = vpop.f32.mrb[118].mxu1 }
 0x304   : > { %v6291_v14 = vadd.f32 %v4602_v5, %v3453_v9  ;;  %v4604_v15 = vadd.f32 %v6021_v10, %v2878_v0  ;;  %v3456_v16 = vpop.f32.mrb[118].mxu0  ;;  %v2880_v18 = vpop.f32.mrb[119].mxu1 }
 0x305   : > { %v5050_v8 = vpop.eup %5049  ;;  %3991 = vst.msk [vmem:[%s5719_s17 + $0x1a8] sm:$0xff] %vm2223_vm0, %v3927_v12  ;;  %v3786_v20 = vsel %vm3530_vm10, %v6251_v28, %v4471_v11  ;;  %v3458_v17 = vpop.f32.mrb[119].mxu0 }
 0x306   : > { %v3857_v23 = vmul.f32 %v6070_v61, %v3786_v20  ;;  %v4472_v19 = vadd.f32 -1.0, %v5050_v8  ;;  %v3656_v25 = vmul.f32 1.442695, %v6291_v14  ;;  %v6300_v22 = vadd.f32 %v4604_v15, %v3456_v16 }
 0x307   : > { %vm3534_vm14 = vcmp.gt.f32.partialorder %v6291_v14, 0.0 }
 0x308   : > { %v3928_v26 = vadd.f32 %v6087_v34, %v3857_v23  ;;  %v3787_v24 = vsel %vm3531_vm11, %v6260_v38, %v4472_v19  ;;  %5055 = vpow2.f32 %v3656_v25  ;;  %v3658_v32 = vmul.f32 1.442695, %v6300_v22 }
 0x309   : > { %v3858_v30 = vmul.f32 %v6070_v61, %v3787_v24  ;;  %v2883_v28 = vpop.f32.mrb[120].mxu1  ;;  %v3461_v37 = vpop.f32.mrb[120].mxu0  ;;  %vm3535_vm15 = vcmp.gt.f32.partialorder %v6300_v22, 0.0 }
 0x30a   : > { %v5052_v35 = vpop.eup %5051  ;;  %3992 = vst.msk [vmem:[%s5719_s17 + $0x1b0] sm:$0xff] %vm2223_vm0, %v3928_v26  ;;  %v4606_v31 = vadd.f32 %v6021_v10, %v2883_v28  ;;  %v2885_v33 = vpop.f32.mrb[121].mxu1  ;;  %5057 = vpow2.f32 %v3658_v32 }
 0x30b   : > { %v3929_v40 = vadd.f32 %v6087_v34, %v3858_v30  ;;  %v4473_v36 = vadd.f32 -1.0, %v5052_v35  ;;  %v3463_v27 = vpop.f32.mrb[121].mxu0  ;;  %v2886_v38 = vpop.f32.mrb[122].mxu1 }
 0x30c   : > { %v4607_v41 = vadd.f32 %v4606_v31, %v3461_v37  ;;  %v4608_v42 = vadd.f32 %v6021_v10, %v2886_v38  ;;  %v3464_v44 = vpop.f32.mrb[122].mxu0  ;;  %v2888_v46 = vpop.f32.mrb[123].mxu1 }
 0x30d   : > { %v5054_v43 = vpop.eup %5053  ;;  %3993 = vst.msk [vmem:[%s5719_s17 + $0x1b8] sm:$0xff] %vm2223_vm0, %v3929_v40  ;;  %v3788_v48 = vsel %vm3532_vm12, %v6271_v53, %v4473_v36  ;;  %v3466_v45 = vpop.f32.mrb[123].mxu0 }
 0x30e   : > { %v3859_v39 = vmul.f32 %v6070_v61, %v3788_v48  ;;  %v4474_v47 = vadd.f32 -1.0, %v5054_v43  ;;  %v3660_v51 = vmul.f32 1.442695, %v4607_v41  ;;  %v4609_v49 = vadd.f32 %v4608_v42, %v3464_v44 }
 0x30f   : > { %vm3536_vm1 = vcmp.gt.f32.partialorder %v4607_v41, 0.0 }
 0x310   : > { %v3930_v52 = vadd.f32 %v6087_v34, %v3859_v39  ;;  %v3789_v50 = vsel %vm3533_vm13, %v6280_v63, %v4474_v47  ;;  %5059 = vpow2.f32 %v3660_v51  ;;  %v3662_v1 = vmul.f32 1.442695, %v4609_v49 }
 0x311   : > { %v3860_v54 = vmul.f32 %v6070_v61, %v3789_v50  ;;  %v2891_v56 = vpop.f32.mrb[124].mxu1  ;;  %v3469_v57 = vpop.f32.mrb[124].mxu0  ;;  %vm3537_vm2 = vcmp.gt.f32.partialorder %v4609_v49, 0.0 }
 0x312   : > { %v5056_v55 = vpop.eup %5055  ;;  %3994 = vst.msk [vmem:[%s5719_s17 + $0x1c0] sm:$0xff] %vm2223_vm0, %v3930_v52  ;;  %v4610_v53 = vadd.f32 %v6021_v10, %v2891_v56  ;;  %v2893_v21 = vpop.f32.mrb[125].mxu1  ;;  %5061 = vpow2.f32 %v3662_v1 }
 0x313   : > { %v3931_v59 = vadd.f32 %v6087_v34, %v3860_v54  ;;  %v4475_v62 = vadd.f32 -1.0, %v5056_v55  ;;  %v3471_v58 = vpop.f32.mrb[125].mxu0  ;;  %v2894_v2 = vpop.f32.mrb[126].mxu1 }
 0x314   : > { %v4611_v63 = vadd.f32 %v4610_v53, %v3469_v57  ;;  %v4612_v60 = vadd.f32 %v6021_v10, %v2894_v2  ;;  %v3472_v4 = vpop.f32.mrb[126].mxu0  ;;  %v2896_v6 = vpop.f32.mrb[127].mxu1 }
 0x315   : > { %v5058_v3 = vpop.eup %5057  ;;  %3995 = vst.msk [vmem:[%s5719_s17 + $0x1c8] sm:$0xff] %vm2223_vm0, %v3931_v59  ;;  %v3790_v7 = vsel %vm3534_vm14, %v6291_v14, %v4475_v62  ;;  %v3474_v5 = vpop.f32.mrb[127].mxu0 }
 0x316   : > { %v3861_v9 = vmul.f32 %v6070_v61, %v3790_v7  ;;  %v4476_v29 = vadd.f32 -1.0, %v5058_v3  ;;  %v3664_v12 = vmul.f32 1.442695, %v4611_v63  ;;  %v4613_v11 = vadd.f32 %v4612_v60, %v3472_v4 }
 0x317   : > { %vm3538_vm3 = vcmp.gt.f32.partialorder %v4611_v63, 0.0 }
 0x318   : > { %v3932_v13 = vadd.f32 %v6087_v34, %v3861_v9  ;;  %v3791_v10 = vsel %vm3535_vm15, %v6300_v22, %v4476_v29  ;;  %5063 = vpow2.f32 %v3664_v12  ;;  %v3666_v15 = vmul.f32 1.442695, %v4613_v11 }
 0x319   : > { %v3862_v0 = vmul.f32 %v6070_v61, %v3791_v10  ;;  %vm3539_vm4 = vcmp.gt.f32.partialorder %v4613_v11, 0.0 }
 0x31a   : > { %v5060_v16 = vpop.eup %5059  ;;  %3996 = vst.msk [vmem:[%s5719_s17 + $0x1d0] sm:$0xff] %vm2223_vm0, %v3932_v13  ;;  %5065 = vpow2.f32 %v3666_v15 }
 0x31b   : > { %v3933_v14 = vadd.f32 %v6087_v34, %v3862_v0  ;;  %v4477_v18 = vadd.f32 -1.0, %v5060_v16 }
 0x31c   : > { %v5062_v8 = vpop.eup %5061 }
 0x31d   : > { %3997 = vst.msk [vmem:[%s5719_s17 + $0x1d8] sm:$0xff] %vm2223_vm0, %v3933_v14  ;;  %v3792_v20 = vsel %vm3536_vm1, %v4607_v41, %v4477_v18  ;;  %v4478_v23 = vadd.f32 -1.0, %v5062_v8 }
 0x31e   : > { %v3863_v17 = vmul.f32 %v6070_v61, %v3792_v20 }
 0x31f   : > { %v3793_v25 = vsel %vm3537_vm2, %v4609_v49, %v4478_v23 }
 0x320   : > { %v3934_v19 = vadd.f32 %v6087_v34, %v3863_v17  ;;  %v3864_v22 = vmul.f32 %v6070_v61, %v3793_v25 }
 0x322   : > { %v5064_v26 = vpop.eup %5063  ;;  %3998 = vst.msk [vmem:[%s5719_s17 + $0x1e0] sm:$0xff] %vm2223_vm0, %v3934_v19  ;;  %v3935_v24 = vadd.f32 %v6087_v34, %v3864_v22 }
 0x323   : > { %v4479_v30 = vadd.f32 -1.0, %v5064_v26 }
 0x324   : > { %v5066_v32 = vpop.eup %5065  ;;  %3999 = vst.msk [vmem:[%s5719_s17 + $0x1e8] sm:$0xff] %vm2223_vm0, %v3935_v24 }
 0x325   : > { %v3794_v28 = vsel %vm3538_vm3, %v4611_v63, %v4479_v30  ;;  %v4480_v31 = vadd.f32 -1.0, %v5066_v32 }
 0x326   : > { %v3865_v35 = vmul.f32 %v6070_v61, %v3794_v28 }
 0x327   : > { %v3795_v33 = vsel %vm3539_vm4, %v4613_v11, %v4480_v31 }
 0x328   : > { %v3936_v37 = vadd.f32 %v6087_v34, %v3865_v35  ;;  %v3866_v40 = vmul.f32 %v6070_v61, %v3795_v33 }
 0x32a   : > { %4000 = vst.msk [vmem:[%s5719_s17 + $0x1f0] sm:$0xff] %vm2223_vm0, %v3936_v37  ;;  %v3937_v36 = vadd.f32 %v6087_v34, %v3866_v40 }
 0x32c   : > { %4001 = vst.msk [vmem:[%s5719_s17 + $0x1f8] sm:$0xff] %vm2223_vm0, %v3937_v36 }
 0x32d PF: > { %s15_s18 = sadd.s32 1, %s5076_s18  }
 0x32e   : > { %p12_p4 = scmp.ge.s32.totalorder %s15_s18, 6  }
 0x330   :  { %14 = sbr.rel (!%p12_p4) target bundleno = 1 (0x1), region = 70 }

// kernel: cnn_forward.5
= control target key start
LH: loop header
LB: loop body
LE: loop exit
PB: predicated region body
PF: predicated region fallthrough
CT: control target
= control target key end

     0   :  { %vm1438_vm2 = vcmask 523264   ;;  %s2597_s1 = inlined_call_operand.vmem [shape: bf16[1024,64], index: 1, kind: input, shape index: {}]   ;;  %s2598_s0 = inlined_call_operand.vmem [shape: bf16[128,1024], index: 0, kind: input, shape index: {}]   ;;  %s2599_s2 = inlined_call_operand.vmem [shape: f32[1,64], index: 2, kind: input, shape index: {}]   ;;  %s2600_s3 = inlined_call_operand.vmem [shape: f32[1,64], index: 3, kind: input, shape index: {}]   ;;  %s2601_s4 = inlined_call_operand.vmem [shape: f32[1,64], index: 4, kind: input, shape index: {}]   ;;  %s2602_s5 = inlined_call_operand.vmem [shape: f32[128,64], index: 5, kind: output, shape index: {}]  }
   0x1   :  { %v1862_v0 = vld [vmem:[%s2597_s1 + $0x40] sm:$0xff]   ;;  %v1866_v4 = vld [vmem:[%s2597_s1 + $0x48] sm:$0xff]   ;;  %v1870_v8 = vld [vmem:[%s2597_s1 + $0x50] sm:$0xff]  }
   0x2   :  { %v1863_v1 = vld [vmem:[%s2597_s1 + $0xc0] sm:$0xff]   ;;  %1606 = vmatprep.subr.bf16.mxu0 %v1862_v0  ;;  %v1867_v5 = vld [vmem:[%s2597_s1 + $0xc8] sm:$0xff]   ;;  %v1871_v9 = vld [vmem:[%s2597_s1 + $0xd0] sm:$0xff]  }
   0x3   :  { %v1864_v2 = vld [vmem:[%s2597_s1] sm:$0xff]   ;;  %1670 = vmatprep.subr.bf16.mxu1 %v1863_v1  ;;  %v1868_v6 = vld [vmem:[%s2597_s1 + $0x8] sm:$0xff]   ;;  %v1872_v10 = vld [vmem:[%s2597_s1 + $0x10] sm:$0xff]  }
   0x4   :  { %v1865_v3 = vld [vmem:[%s2597_s1 + $0x80] sm:$0xff]   ;;  %1607 = vmatpush3.bf16.msra.mxu0 %v1864_v2  ;;  %v1869_v7 = vld [vmem:[%s2597_s1 + $0x88] sm:$0xff]   ;;  %v1873_v11 = vld [vmem:[%s2597_s1 + $0x90] sm:$0xff]  }
   0x5   :  { %1671 = vmatpush3.bf16.msra.mxu1 %v1865_v3  ;;  %1608 = vmatprep.subr.bf16.mxu0 %v1866_v4  ;;  %v1874_v12 = vld [vmem:[%s2597_s1 + $0x58] sm:$0xff]   ;;  %v1878_v16 = vld [vmem:[%s2597_s1 + $0x60] sm:$0xff]   ;;  %v1882_v20 = vld [vmem:[%s2597_s1 + $0x68] sm:$0xff]  }
   0x6   :  { %1672 = vmatprep.subr.bf16.mxu1 %v1867_v5  ;;  %v1875_v13 = vld [vmem:[%s2597_s1 + $0xd8] sm:$0xff]   ;;  %v1879_v17 = vld [vmem:[%s2597_s1 + $0xe0] sm:$0xff]   ;;  %v1883_v21 = vld [vmem:[%s2597_s1 + $0xe8] sm:$0xff]  }
   0x7   :  { %v1876_v14 = vld [vmem:[%s2597_s1 + $0x18] sm:$0xff]   ;;  %v1880_v18 = vld [vmem:[%s2597_s1 + $0x20] sm:$0xff]   ;;  %v1884_v22 = vld [vmem:[%s2597_s1 + $0x28] sm:$0xff]  }
   0x8   :  { %1609 = vmatpush3.bf16.msra.mxu0 %v1868_v6  ;;  %v1877_v15 = vld [vmem:[%s2597_s1 + $0x98] sm:$0xff]   ;;  %v1881_v19 = vld [vmem:[%s2597_s1 + $0xa0] sm:$0xff]   ;;  %v1885_v23 = vld [vmem:[%s2597_s1 + $0xa8] sm:$0xff]  }
   0x9   :  { %1673 = vmatpush3.bf16.msra.mxu1 %v1869_v7  ;;  %1610 = vmatprep.subr.bf16.mxu0 %v1870_v8  ;;  %v1886_v24 = vld [vmem:[%s2597_s1 + $0x70] sm:$0xff]   ;;  %v1890_v28 = vld [vmem:[%s2597_s1 + $0x78] sm:$0xff]   ;;  %v21_v32 = vld [vmem:[%s2598_s0] sm:$0xff] }
   0xa   :  { %1674 = vmatprep.subr.bf16.mxu1 %v1871_v9  ;;  %v1887_v25 = vld [vmem:[%s2597_s1 + $0xf0] sm:$0xff]   ;;  %v1891_v29 = vld [vmem:[%s2597_s1 + $0xf8] sm:$0xff]   ;;  %v25_v33 = vld [vmem:[%s2598_s0 + $0x20] sm:$0xff] }
   0xb   :  { %v1888_v26 = vld [vmem:[%s2597_s1 + $0x30] sm:$0xff]   ;;  %v1892_v30 = vld [vmem:[%s2597_s1 + $0x38] sm:$0xff]   ;;  %v22_v34 = vld [vmem:[%s2598_s0 + $0x8] sm:$0xff]  ;;  %v1460_v35 = vcombine.low %v21_v32, %v25_v33  ;;  %v1461_v36 = vcombine.high %v21_v32, %v25_v33 }
   0xc   :  { %1611 = vmatpush3.bf16.msra.mxu0 %v1872_v10  ;;  %v1889_v27 = vld [vmem:[%s2597_s1 + $0xb0] sm:$0xff]   ;;  %v1893_v31 = vld [vmem:[%s2597_s1 + $0xb8] sm:$0xff]   ;;  %v26_v37 = vld [vmem:[%s2598_s0 + $0x28] sm:$0xff] }
   0xd   :  { %1675 = vmatpush3.bf16.msra.mxu1 %v1873_v11  ;;  %1612 = vmatprep.subr.bf16.mxu0 %v1874_v12  ;;  %v1462_v38 = vcombine.low %v22_v34, %v26_v37  ;;  %v1463_v39 = vcombine.high %v22_v34, %v26_v37  ;;  %v1894_v40 = vld [vmem:[%s2597_s1 + $0x140] sm:$0xff]   ;;  %v30_v47 = vld [vmem:[%s2598_s0 + $0x48] sm:$0xff]  ;;  %v1902_v62 = vld [vmem:[%s2597_s1 + $0x150] sm:$0xff]  }
   0xe   :  { %1676 = vmatprep.subr.bf16.mxu1 %v1875_v13  ;;  %956 = vmatprep.mubr.bf16.mxu0 %v1461_v36  ;;  %v1895_v41 = vld [vmem:[%s2597_s1 + $0x100] sm:$0xff]   ;;  %v34_v48 = vld [vmem:[%s2598_s0 + $0x68] sm:$0xff]  ;;  %v1903_v63 = vld [vmem:[%s2597_s1 + $0x110] sm:$0xff]  }
   0xf   :  { %1053 = vmatprep.mubr.bf16.mxu1 %v1463_v39  ;;  %v1896_v42 = vld [vmem:[%s2597_s1 + $0x1c0] sm:$0xff]   ;;  %v1471_v49 = vcombine.high %v30_v47, %v34_v48  ;;  %v1898_v50 = vld [vmem:[%s2597_s1 + $0x148] sm:$0xff]   ;;  %v1470_v53 = vcombine.low %v30_v47, %v34_v48  ;;  %v1904_v0 = vld [vmem:[%s2597_s1 + $0x1d0] sm:$0xff]  }
  0x10   :  { %1613 = vmatpush3.bf16.msra.mxu0 %v1876_v14  ;;  %v1897_v43 = vld [vmem:[%s2597_s1 + $0x180] sm:$0xff]   ;;  %v1899_v52 = vld [vmem:[%s2597_s1 + $0x108] sm:$0xff]   ;;  %v1905_v1 = vld [vmem:[%s2597_s1 + $0x190] sm:$0xff]  }
  0x11   :  { %1677 = vmatpush3.bf16.msra.mxu1 %v1877_v15  ;;  %1614 = vmatprep.subr.bf16.mxu0 %v1878_v16  ;;  %v29_v44 = vld [vmem:[%s2598_s0 + $0x40] sm:$0xff]  ;;  %v1900_v54 = vld [vmem:[%s2597_s1 + $0x1c8] sm:$0xff]   ;;  %v1906_v10 = vld [vmem:[%s2597_s1 + $0x158] sm:$0xff]  }
  0x12   :  { %1678 = vmatprep.subr.bf16.mxu1 %v1879_v17  ;;  %v33_v45 = vld [vmem:[%s2598_s0 + $0x60] sm:$0xff]  ;;  %v1901_v55 = vld [vmem:[%s2597_s1 + $0x188] sm:$0xff]   ;;  %v1907_v11 = vld [vmem:[%s2597_s1 + $0x118] sm:$0xff]  }
  0x13   :  { %v1469_v46 = vcombine.high %v29_v44, %v33_v45  ;;  %v1468_v51 = vcombine.low %v29_v44, %v33_v45  ;;  %v37_v56 = vld [vmem:[%s2598_s0 + $0x80] sm:$0xff]  ;;  %v38_v58 = vld [vmem:[%s2598_s0 + $0x88] sm:$0xff]  ;;  %v1908_v12 = vld [vmem:[%s2597_s1 + $0x1d8] sm:$0xff]  }
  0x14   :  { %1615 = vmatpush3.bf16.msra.mxu0 %v1880_v18  ;;  %v41_v57 = vld [vmem:[%s2598_s0 + $0xa0] sm:$0xff]  ;;  %v42_v59 = vld [vmem:[%s2598_s0 + $0xa8] sm:$0xff]  ;;  %v1909_v13 = vld [vmem:[%s2597_s1 + $0x198] sm:$0xff]  }
  0x15   :  { %1679 = vmatpush3.bf16.msra.mxu1 %v1881_v19  ;;  %1616 = vmatprep.subr.bf16.mxu0 %v1882_v20  ;;  %v1477_v60 = vcombine.high %v37_v56, %v41_v57  ;;  %v1479_v61 = vcombine.high %v38_v58, %v42_v59  ;;  %v1476_v2 = vcombine.low %v37_v56, %v41_v57  ;;  %v45_v3 = vld [vmem:[%s2598_s0 + $0xc0] sm:$0xff]  ;;  %v46_v5 = vld [vmem:[%s2598_s0 + $0xc8] sm:$0xff]  ;;  %v1919_v39 = vld [vmem:[%s2597_s1 + $0x130] sm:$0xff]  }
  0x16   :  { %1680 = vmatprep.subr.bf16.mxu1 %v1883_v21  ;;  %v49_v4 = vld [vmem:[%s2598_s0 + $0xe0] sm:$0xff]  ;;  %v1478_v6 = vcombine.low %v38_v58, %v42_v59  ;;  %v50_v8 = vld [vmem:[%s2598_s0 + $0xe8] sm:$0xff]  ;;  %v1923_v48 = vld [vmem:[%s2597_s1 + $0x138] sm:$0xff]  }
  0x17   :  { %v1485_v7 = vcombine.high %v45_v3, %v49_v4  ;;  %v1487_v9 = vcombine.high %v46_v5, %v50_v8  ;;  %v53_v14 = vld [vmem:[%s2598_s0 + $0x100] sm:$0xff]  ;;  %v54_v16 = vld [vmem:[%s2598_s0 + $0x108] sm:$0xff]  ;;  %v1484_v19 = vcombine.low %v45_v3, %v49_v4  ;;  %v1486_v21 = vcombine.low %v46_v5, %v50_v8  ;;  %v32_v8 = vld [vmem:[%s2598_s0 + $0x58] sm:$0xff] }
  0x18   :  { %1617 = vmatpush3.bf16.msra.mxu0 %v1884_v22  ;;  %v57_v15 = vld [vmem:[%s2598_s0 + $0x120] sm:$0xff]  ;;  %v58_v17 = vld [vmem:[%s2598_s0 + $0x128] sm:$0xff] }
  0x19   :  { %1681 = vmatpush3.bf16.msra.mxu1 %v1885_v23  ;;  %1618 = vmatprep.subr.bf16.mxu0 %v1886_v24  ;;  %v1910_v18 = vld [vmem:[%s2597_s1 + $0x160] sm:$0xff]   ;;  %v1493_v22 = vcombine.high %v53_v14, %v57_v15  ;;  %v1495_v24 = vcombine.high %v54_v16, %v58_v17  ;;  %v1916_v32 = vld [vmem:[%s2597_s1 + $0x1e8] sm:$0xff]   ;;  %v1492_v34 = vcombine.low %v53_v14, %v57_v15  ;;  %v39_v14 = vld [vmem:[%s2598_s0 + $0x90] sm:$0xff] }
  0x1a   :  { %1682 = vmatprep.subr.bf16.mxu1 %v1887_v25  ;;  %v1911_v20 = vld [vmem:[%s2597_s1 + $0x120] sm:$0xff]   ;;  %v1917_v33 = vld [vmem:[%s2597_s1 + $0x1a8] sm:$0xff]   ;;  %v43_v15 = vld [vmem:[%s2598_s0 + $0xb0] sm:$0xff] }
  0x1b   :  { %v1912_v23 = vld [vmem:[%s2597_s1 + $0x1e0] sm:$0xff]   ;;  %v70_v44 = vld [vmem:[%s2598_s0 + $0x188] sm:$0xff] }
  0x1c   :  { %1619 = vmatpush3.bf16.msra.mxu0 %v1888_v26  ;;  %v1913_v25 = vld [vmem:[%s2597_s1 + $0x1a0] sm:$0xff]   ;;  %v74_v45 = vld [vmem:[%s2598_s0 + $0x1a8] sm:$0xff] }
  0x1d   :  { %1683 = vmatpush3.bf16.msra.mxu1 %v1889_v27  ;;  %1620 = vmatprep.subr.bf16.mxu0 %v1890_v28  ;;  %v61_v26 = vld [vmem:[%s2598_s0 + $0x140] sm:$0xff]  ;;  %v1914_v28 = vld [vmem:[%s2597_s1 + $0x168] sm:$0xff]   ;;  %v1510_v59 = vcombine.low %v70_v44, %v74_v45 }
  0x1e   :  { %1684 = vmatprep.subr.bf16.mxu1 %v1891_v29  ;;  %v65_v27 = vld [vmem:[%s2598_s0 + $0x160] sm:$0xff]  ;;  %v62_v29 = vld [vmem:[%s2598_s0 + $0x148] sm:$0xff] }
  0x1f   :  { %v1501_v36 = vcombine.high %v61_v26, %v65_v27  ;;  %v1500_v47 = vcombine.low %v61_v26, %v65_v27  ;;  %v78_v56 = vld [vmem:[%s2598_s0 + $0x1c8] sm:$0xff]  ;;  %v1480_v26 = vcombine.low %v39_v14, %v43_v15 }
  0x20   :  { %1621 = vmatpush3.bf16.msra.mxu0 %v1892_v30  ;;  %v66_v30 = vld [vmem:[%s2598_s0 + $0x168] sm:$0xff] }
  0x21   :  { %1685 = vmatpush3.bf16.msra.mxu1 %v1893_v31  ;;  %1734 = vmatprep.subr.bf16.mxu0 %v1894_v40  ;;  %v1915_v31 = vld [vmem:[%s2597_s1 + $0x128] sm:$0xff]   ;;  %v1503_v37 = vcombine.high %v62_v29, %v66_v30  ;;  %v1920_v40 = vld [vmem:[%s2597_s1 + $0x1f0] sm:$0xff]  }
  0x22   :  { %1798 = vmatprep.subr.bf16.mxu1 %v1896_v42  ;;  %v73_v42 = vld [vmem:[%s2598_s0 + $0x1a0] sm:$0xff]  ;;  %v82_v57 = vld [vmem:[%s2598_s0 + $0x1e8] sm:$0xff] }
  0x23   :  { %957 = vmatmul.mubr.bf16.vlgmr.msra.gmra.mrb[0].mxu0 %v1460_v35  ;;  %v1494_v35 = vcombine.low %v54_v16, %v58_v17  ;;  %v1518_v3 = vcombine.low %v78_v56, %v82_v57  ;;  %v40_v16 = vld [vmem:[%s2598_s0 + $0x98] sm:$0xff] }
  0x24   :  { %1054 = vmatmul.mubr.bf16.vlgmr.msra.gmra.mrb[0].mxu1 %v1462_v38  ;;  %1735 = vmatpush3.bf16.msra.mxu0 %v1895_v41  ;;  %v1918_v38 = vld [vmem:[%s2597_s1 + $0x170] sm:$0xff]   ;;  %v69_v41 = vld [vmem:[%s2598_s0 + $0x180] sm:$0xff]  ;;  %v44_v17 = vld [vmem:[%s2598_s0 + $0xb8] sm:$0xff] }
  0x25   :  { %1799 = vmatpush3.bf16.msra.mxu1 %v1897_v43  ;;  %964 = vmatprep.mubr.bf16.mxu0 %v1469_v46  ;;  %v1921_v43 = vld [vmem:[%s2597_s1 + $0x1b0] sm:$0xff]   ;;  %v1922_v46 = vld [vmem:[%s2597_s1 + $0x178] sm:$0xff]   ;;  %v1508_v58 = vcombine.low %v69_v41, %v73_v42  ;;  %v1482_v27 = vcombine.low %v40_v16, %v44_v17 }
  0x26   :  { %1061 = vmatprep.mubr.bf16.mxu1 %v1471_v49  ;;  %1736 = vmatprep.subr.bf16.mxu0 %v1898_v50  ;;  %v1502_v49 = vcombine.low %v62_v29, %v66_v30  ;;  %v1509_v50 = vcombine.high %v69_v41, %v73_v42  ;;  %v55_v30 = vld [vmem:[%s2598_s0 + $0x110] sm:$0xff]  ;;  %v68_v41 = vld [vmem:[%s2598_s0 + $0x178] sm:$0xff] }
  0x27   :  { %1800 = vmatprep.subr.bf16.mxu1 %v1900_v54  ;;  %v77_v54 = vld [vmem:[%s2598_s0 + $0x1c0] sm:$0xff] }
  0x28   :  { %1737 = vmatpush3.bf16.msra.mxu0 %v1899_v52  ;;  %v1511_v52 = vcombine.high %v70_v44, %v74_v45 }
  0x29   :  { %1801 = vmatpush3.bf16.msra.mxu1 %v1901_v55  ;;  %1738 = vmatprep.subr.bf16.mxu0 %v1902_v62  ;;  %v81_v55 = vld [vmem:[%s2598_s0 + $0x1e0] sm:$0xff]  ;;  %v23_v62 = vld [vmem:[%s2598_s0 + $0x10] sm:$0xff] }
  0x2a   :  { %1802 = vmatprep.subr.bf16.mxu1 %v1904_v0  ;;  %v24_v0 = vld [vmem:[%s2598_s0 + $0x18] sm:$0xff] }
  0x2b   :  { %965 = vmatmul.mubr.bf16.gmra.mrb[4].mxu0 %v1468_v51  ;;  %v1924_v51 = vld [vmem:[%s2597_s1 + $0x1f8] sm:$0xff]  }
  0x2c   :  { %1062 = vmatmul.mubr.bf16.gmra.mrb[4].mxu1 %v1470_v53  ;;  %972 = vmatprep.mubr.bf16.mxu0 %v1477_v60  ;;  %v1925_v53 = vld [vmem:[%s2597_s1 + $0x1b8] sm:$0xff]   ;;  %v1517_v60 = vcombine.high %v77_v54, %v81_v55 }
  0x2d   :  { %1069 = vmatprep.mubr.bf16.mxu1 %v1479_v61  ;;  %1739 = vmatpush3.bf16.msra.mxu0 %v1903_v63  ;;  %v1519_v61 = vcombine.high %v78_v56, %v82_v57  ;;  %v27_v63 = vld [vmem:[%s2598_s0 + $0x30] sm:$0xff]  ;;  %v80_v56 = vld [vmem:[%s2598_s0 + $0x1d8] sm:$0xff] }
  0x2e   :  { %1803 = vmatpush3.bf16.msra.mxu1 %v1905_v1  ;;  %1740 = vmatprep.subr.bf16.mxu0 %v1906_v10  ;;  %v28_v1 = vld [vmem:[%s2598_s0 + $0x38] sm:$0xff]  ;;  %v1465_v4 = vcombine.high %v23_v62, %v27_v63  ;;  %v1464_v10 = vcombine.low %v23_v62, %v27_v63 }
  0x2f   :  { %1804 = vmatprep.subr.bf16.mxu1 %v1908_v12  ;;  %v1467_v5 = vcombine.high %v24_v0, %v28_v1  ;;  %v84_v57 = vld [vmem:[%s2598_s0 + $0x1f8] sm:$0xff] }
  0x30   :  { %v1522_v63 = vcombine.low %v80_v56, %v84_v57 }
  0x31   :  { %1741 = vmatpush3.bf16.msra.mxu0 %v1907_v11  ;;  %v1466_v11 = vcombine.low %v24_v0, %v28_v1 }
  0x32   :  { %1805 = vmatpush3.bf16.msra.mxu1 %v1909_v13  ;;  %1742 = vmatprep.subr.bf16.mxu0 %v1910_v18 }
  0x33   :  { %973 = vmatmul.mubr.bf16.gmra.mrb[8].mxu0 %v1476_v2  ;;  %1806 = vmatprep.subr.bf16.mxu1 %v1912_v23  ;;  %v1516_v2 = vcombine.low %v77_v54, %v81_v55  ;;  %v51_v23 = vld [vmem:[%s2598_s0 + $0xf0] sm:$0xff] }
  0x34   :  { %1070 = vmatmul.mubr.bf16.gmra.mrb[8].mxu1 %v1478_v6  ;;  %980 = vmatprep.mubr.bf16.mxu0 %v1485_v7  ;;  %v31_v6 = vld [vmem:[%s2598_s0 + $0x50] sm:$0xff] }
  0x35   :  { %1077 = vmatprep.mubr.bf16.mxu1 %v1487_v9  ;;  %1743 = vmatpush3.bf16.msra.mxu0 %v1911_v20  ;;  %v35_v7 = vld [vmem:[%s2598_s0 + $0x70] sm:$0xff]  ;;  %v36_v9 = vld [vmem:[%s2598_s0 + $0x78] sm:$0xff]  ;;  %v1481_v20 = vcombine.high %v39_v14, %v43_v15 }
  0x36   :  { %1807 = vmatpush3.bf16.msra.mxu1 %v1913_v25  ;;  %1744 = vmatprep.subr.bf16.mxu0 %v1914_v28  ;;  %v1473_v12 = vcombine.high %v31_v6, %v35_v7  ;;  %v1475_v13 = vcombine.high %v32_v8, %v36_v9  ;;  %v1472_v18 = vcombine.low %v31_v6, %v35_v7  ;;  %v52_v25 = vld [vmem:[%s2598_s0 + $0xf8] sm:$0xff]  ;;  %v79_v54 = vld [vmem:[%s2598_s0 + $0x1d0] sm:$0xff] }
  0x37   :  { %1808 = vmatprep.subr.bf16.mxu1 %v1916_v32  ;;  %v56_v32 = vld [vmem:[%s2598_s0 + $0x118] sm:$0xff]  ;;  %v83_v55 = vld [vmem:[%s2598_s0 + $0x1f0] sm:$0xff] }
  0x38   :  { %v1520_v62 = vcombine.low %v79_v54, %v83_v55 }
  0x39   :  { %1745 = vmatpush3.bf16.msra.mxu0 %v1915_v31  ;;  %v59_v31 = vld [vmem:[%s2598_s0 + $0x130] sm:$0xff] }
  0x3a   :  { %1809 = vmatpush3.bf16.msra.mxu1 %v1917_v33  ;;  %1746 = vmatprep.subr.bf16.mxu0 %v1918_v38  ;;  %v60_v33 = vld [vmem:[%s2598_s0 + $0x138] sm:$0xff]  ;;  %v63_v38 = vld [vmem:[%s2598_s0 + $0x150] sm:$0xff]  ;;  %v1496_v42 = vcombine.low %v55_v30, %v59_v31 }
  0x3b   :  { %981 = vmatmul.mubr.bf16.gmra.mrb[12].mxu0 %v1484_v19  ;;  %1810 = vmatprep.subr.bf16.mxu1 %v1920_v40  ;;  %v1474_v19 = vcombine.low %v32_v8, %v36_v9  ;;  %v64_v40 = vld [vmem:[%s2598_s0 + $0x158] sm:$0xff] }
  0x3c   :  { %1078 = vmatmul.mubr.bf16.gmra.mrb[12].mxu1 %v1486_v21  ;;  %988 = vmatprep.mubr.bf16.mxu0 %v1493_v22  ;;  %v1483_v21 = vcombine.high %v40_v16, %v44_v17  ;;  %v47_v22 = vld [vmem:[%s2598_s0 + $0xd0] sm:$0xff]  ;;  %v1507_v45 = vcombine.high %v64_v40, %v68_v41 }
  0x3d   :  { %1085 = vmatprep.mubr.bf16.mxu1 %v1495_v24  ;;  %1747 = vmatpush3.bf16.msra.mxu0 %v1919_v39  ;;  %v48_v24 = vld [vmem:[%s2598_s0 + $0xd8] sm:$0xff]  ;;  %v1489_v28 = vcombine.high %v47_v22, %v51_v23  ;;  %v67_v39 = vld [vmem:[%s2598_s0 + $0x170] sm:$0xff] }
  0x3e   :  { %1811 = vmatpush3.bf16.msra.mxu1 %v1921_v43  ;;  %1748 = vmatprep.subr.bf16.mxu0 %v1922_v46  ;;  %v1491_v29 = vcombine.high %v48_v24, %v52_v25  ;;  %v1498_v43 = vcombine.low %v56_v32, %v60_v33  ;;  %v1505_v44 = vcombine.high %v63_v38, %v67_v39  ;;  %v71_v46 = vld [vmem:[%s2598_s0 + $0x190] sm:$0xff] }
  0x3f   :  { %1812 = vmatprep.subr.bf16.mxu1 %v1924_v51  ;;  %v1506_v51 = vcombine.low %v64_v40, %v68_v41 }
  0x41   :  { %1749 = vmatpush3.bf16.msra.mxu0 %v1923_v48  ;;  %v72_v48 = vld [vmem:[%s2598_s0 + $0x198] sm:$0xff] }
  0x42   :  { %1813 = vmatpush3.bf16.msra.mxu1 %v1925_v53 }
  0x43   :  { %989 = vmatmul.mubr.bf16.gmra.mrb[16].mxu0 %v1492_v34  ;;  %v1488_v34 = vcombine.low %v47_v22, %v51_v23 }
  0x44   :  { %1086 = vmatmul.mubr.bf16.gmra.mrb[16].mxu1 %v1494_v35  ;;  %996 = vmatprep.mubr.bf16.mxu0 %v1501_v36  ;;  %v1490_v35 = vcombine.low %v48_v24, %v52_v25  ;;  %v1497_v36 = vcombine.high %v55_v30, %v59_v31 }
  0x45   :  { %1093 = vmatprep.mubr.bf16.mxu1 %v1503_v37  ;;  %v1499_v37 = vcombine.high %v56_v32, %v60_v33 }
  0x4b   :  { %997 = vmatmul.mubr.bf16.gmra.mrb[20].mxu0 %v1500_v47  ;;  %v75_v47 = vld [vmem:[%s2598_s0 + $0x1b0] sm:$0xff] }
  0x4c   :  { %1094 = vmatmul.mubr.bf16.gmra.mrb[20].mxu1 %v1502_v49  ;;  %1004 = vmatprep.mubr.bf16.mxu0 %v1509_v50  ;;  %v76_v49 = vld [vmem:[%s2598_s0 + $0x1b8] sm:$0xff]  ;;  %v1504_v50 = vcombine.low %v63_v38, %v67_v39 }
  0x4d   :  { %1101 = vmatprep.mubr.bf16.mxu1 %v1511_v52  ;;  %v1513_v52 = vcombine.high %v71_v46, %v75_v47  ;;  %v1515_v53 = vcombine.high %v72_v48, %v76_v49 }
  0x53   :  { %1005 = vmatmul.mubr.bf16.gmra.mrb[24].mxu0 %v1508_v58  ;;  %v1512_v58 = vcombine.low %v71_v46, %v75_v47 }
  0x54   :  { %1102 = vmatmul.mubr.bf16.gmra.mrb[24].mxu1 %v1510_v59  ;;  %1012 = vmatprep.mubr.bf16.mxu0 %v1517_v60  ;;  %v1514_v59 = vcombine.low %v72_v48, %v76_v49  ;;  %v1521_v60 = vcombine.high %v79_v54, %v83_v55 }
  0x55   :  { %1109 = vmatprep.mubr.bf16.mxu1 %v1519_v61  ;;  %v1523_v61 = vcombine.high %v80_v56, %v84_v57 }
  0x5b   :  { %1013 = vmatmul.mubr.bf16.gmra.mrb[28].mxu0 %v1516_v2  ;;  %v2375_v2 = vld [vmem:[%s2599_s2] ss:$0 sm:$0xff] }
  0x5c   :  { %1110 = vmatmul.mubr.bf16.gmra.mrb[28].mxu1 %v1518_v3  ;;  %1150 = vmatprep.mubr.bf16.mxu0 %v1465_v4 }
  0x5d   :  { %1247 = vmatprep.mubr.bf16.mxu1 %v1467_v5 }
  0x63   :  { %1151 = vmatmul.mubr.bf16.vlgmr.msra.gmra.mrb[32].mxu0 %v1464_v10 }
  0x64   :  { %1248 = vmatmul.mubr.bf16.vlgmr.msra.gmra.mrb[32].mxu1 %v1466_v11  ;;  %1158 = vmatprep.mubr.bf16.mxu0 %v1473_v12 }
  0x65   :  { %1255 = vmatprep.mubr.bf16.mxu1 %v1475_v13 }
  0x6b   :  { %1159 = vmatmul.mubr.bf16.gmra.mrb[36].mxu0 %v1472_v18 }
  0x6c   :  { %1256 = vmatmul.mubr.bf16.gmra.mrb[36].mxu1 %v1474_v19  ;;  %1166 = vmatprep.mubr.bf16.mxu0 %v1481_v20 }
  0x6d   :  { %1263 = vmatprep.mubr.bf16.mxu1 %v1483_v21 }
  0x73   :  { %1167 = vmatmul.mubr.bf16.gmra.mrb[40].mxu0 %v1480_v26 }
  0x74   :  { %1264 = vmatmul.mubr.bf16.gmra.mrb[40].mxu1 %v1482_v27  ;;  %1174 = vmatprep.mubr.bf16.mxu0 %v1489_v28 }
  0x75   :  { %1271 = vmatprep.mubr.bf16.mxu1 %v1491_v29 }
  0x7b   :  { %1175 = vmatmul.mubr.bf16.gmra.mrb[44].mxu0 %v1488_v34 }
  0x7c   :  { %1272 = vmatmul.mubr.bf16.gmra.mrb[44].mxu1 %v1490_v35  ;;  %1182 = vmatprep.mubr.bf16.mxu0 %v1497_v36 }
  0x7d   :  { %1279 = vmatprep.mubr.bf16.mxu1 %v1499_v37 }
  0x83   :  { %1183 = vmatmul.mubr.bf16.gmra.mrb[48].mxu0 %v1496_v42 }
  0x84   :  { %1280 = vmatmul.mubr.bf16.gmra.mrb[48].mxu1 %v1498_v43  ;;  %1190 = vmatprep.mubr.bf16.mxu0 %v1505_v44 }
  0x85   :  { %1287 = vmatprep.mubr.bf16.mxu1 %v1507_v45 }
  0x8b   :  { %1191 = vmatmul.mubr.bf16.gmra.mrb[52].mxu0 %v1504_v50 }
  0x8c   :  { %1288 = vmatmul.mubr.bf16.gmra.mrb[52].mxu1 %v1506_v51  ;;  %1198 = vmatprep.mubr.bf16.mxu0 %v1513_v52 }
  0x8d   :  { %1295 = vmatprep.mubr.bf16.mxu1 %v1515_v53 }
  0x93   :  { %1199 = vmatmul.mubr.bf16.gmra.mrb[56].mxu0 %v1512_v58 }
  0x94   :  { %1296 = vmatmul.mubr.bf16.gmra.mrb[56].mxu1 %v1514_v59  ;;  %1206 = vmatprep.mubr.bf16.mxu0 %v1521_v60 }
  0x95   :  { %1303 = vmatprep.mubr.bf16.mxu1 %v1523_v61 }
  0x9b   :  { %1207 = vmatmul.mubr.bf16.gmra.mrb[60].mxu0 %v1520_v62 }
  0x9c   :  { %1304 = vmatmul.mubr.bf16.gmra.mrb[60].mxu1 %v1522_v63 }
  0xf6   :  { %v1622_v0 = vpop.f32.mrb[0].mxu0 }
  0xf7   :  { %v1686_v1 = vpop.f32.mrb[0].mxu1  ;;  %v1623_v3 = vpop.f32.mrb[1].mxu0 }
  0xf8   :  { %v1624_v4 = vadd.f32 %v1623_v3, %v1622_v0  ;;  %v1687_v5 = vpop.f32.mrb[1].mxu1  ;;  %v1625_v6 = vpop.f32.mrb[2].mxu0 }
  0xf9   :  { %v1688_v7 = vadd.f32 %v1687_v5, %v1686_v1  ;;  %v1689_v8 = vpop.f32.mrb[2].mxu1  ;;  %v1626_v9 = vpop.f32.mrb[3].mxu0 }
  0xfa   :  { %v959_v10 = vadd.f32 %v1624_v4, %v2375_v2  ;;  %v1627_v11 = vadd.f32 %v1626_v9, %v1625_v6  ;;  %v1690_v12 = vpop.f32.mrb[3].mxu1 }
  0xfb   :  { %v1691_v13 = vadd.f32 %v1690_v12, %v1689_v8 }
  0xfc   :  { %v2378_v14 = vadd.f32 %v1688_v7, %v959_v10  ;;  %v962_v15 = vadd.f32 %v1627_v11, %v2375_v2 }
  0xfe   :  { %v2381_v16 = vadd.f32 %v1691_v13, %v962_v15  ;;  %v1628_v17 = vpop.f32.mrb[4].mxu0 }
  0xff   :  { %v1692_v18 = vpop.f32.mrb[4].mxu1  ;;  %v1629_v19 = vpop.f32.mrb[5].mxu0 }
 0x100   :  { %v1630_v20 = vadd.f32 %v1629_v19, %v1628_v17  ;;  %v1693_v21 = vpop.f32.mrb[5].mxu1  ;;  %v1631_v22 = vpop.f32.mrb[6].mxu0 }
 0x101   :  { %v1694_v23 = vadd.f32 %v1693_v21, %v1692_v18  ;;  %v1695_v24 = vpop.f32.mrb[6].mxu1  ;;  %v1632_v25 = vpop.f32.mrb[7].mxu0 }
 0x102   :  { %v967_v26 = vadd.f32 %v1630_v20, %v2375_v2  ;;  %v1633_v27 = vadd.f32 %v1632_v25, %v1631_v22  ;;  %v1696_v28 = vpop.f32.mrb[7].mxu1 }
 0x103   :  { %v1697_v29 = vadd.f32 %v1696_v28, %v1695_v24 }
 0x104   :  { %v2384_v30 = vadd.f32 %v1694_v23, %v967_v26  ;;  %v970_v31 = vadd.f32 %v1633_v27, %v2375_v2 }
 0x106   :  { %v2387_v32 = vadd.f32 %v1697_v29, %v970_v31  ;;  %v1634_v33 = vpop.f32.mrb[8].mxu0 }
 0x107   :  { %v1698_v34 = vpop.f32.mrb[8].mxu1  ;;  %v1635_v35 = vpop.f32.mrb[9].mxu0 }
 0x108   :  { %v1636_v36 = vadd.f32 %v1635_v35, %v1634_v33  ;;  %v1699_v37 = vpop.f32.mrb[9].mxu1  ;;  %v1637_v38 = vpop.f32.mrb[10].mxu0 }
 0x109   :  { %v1700_v39 = vadd.f32 %v1699_v37, %v1698_v34  ;;  %v1701_v40 = vpop.f32.mrb[10].mxu1  ;;  %v1638_v41 = vpop.f32.mrb[11].mxu0 }
 0x10a   :  { %v975_v42 = vadd.f32 %v1636_v36, %v2375_v2  ;;  %v1639_v43 = vadd.f32 %v1638_v41, %v1637_v38  ;;  %v1702_v44 = vpop.f32.mrb[11].mxu1 }
 0x10b   :  { %v1703_v45 = vadd.f32 %v1702_v44, %v1701_v40 }
 0x10c   :  { %v2390_v46 = vadd.f32 %v1700_v39, %v975_v42  ;;  %v978_v47 = vadd.f32 %v1639_v43, %v2375_v2 }
 0x10e   :  { %v2393_v48 = vadd.f32 %v1703_v45, %v978_v47  ;;  %v1640_v49 = vpop.f32.mrb[12].mxu0 }
 0x10f   :  { %v1704_v50 = vpop.f32.mrb[12].mxu1  ;;  %v1641_v51 = vpop.f32.mrb[13].mxu0 }
 0x110   :  { %v1642_v52 = vadd.f32 %v1641_v51, %v1640_v49  ;;  %v1705_v53 = vpop.f32.mrb[13].mxu1  ;;  %v1643_v54 = vpop.f32.mrb[14].mxu0 }
 0x111   :  { %v1706_v55 = vadd.f32 %v1705_v53, %v1704_v50  ;;  %v1707_v56 = vpop.f32.mrb[14].mxu1  ;;  %v1644_v57 = vpop.f32.mrb[15].mxu0 }
 0x112   :  { %v983_v58 = vadd.f32 %v1642_v52, %v2375_v2  ;;  %v1645_v59 = vadd.f32 %v1644_v57, %v1643_v54  ;;  %v1708_v60 = vpop.f32.mrb[15].mxu1 }
 0x113   :  { %v1709_v61 = vadd.f32 %v1708_v60, %v1707_v56 }
 0x114   :  { %v2396_v62 = vadd.f32 %v1706_v55, %v983_v58  ;;  %v986_v63 = vadd.f32 %v1645_v59, %v2375_v2 }
 0x116   :  { %v2399_v0 = vadd.f32 %v1709_v61, %v986_v63  ;;  %v1646_v1 = vpop.f32.mrb[16].mxu0 }
 0x117   :  { %v1710_v3 = vpop.f32.mrb[16].mxu1  ;;  %v1647_v4 = vpop.f32.mrb[17].mxu0 }
 0x118   :  { %v1648_v5 = vadd.f32 %v1647_v4, %v1646_v1  ;;  %v1711_v6 = vpop.f32.mrb[17].mxu1  ;;  %v1649_v7 = vpop.f32.mrb[18].mxu0 }
 0x119   :  { %v1712_v8 = vadd.f32 %v1711_v6, %v1710_v3  ;;  %v1713_v9 = vpop.f32.mrb[18].mxu1  ;;  %v1650_v10 = vpop.f32.mrb[19].mxu0 }
 0x11a   :  { %v991_v11 = vadd.f32 %v1648_v5, %v2375_v2  ;;  %v1651_v12 = vadd.f32 %v1650_v10, %v1649_v7  ;;  %v1714_v13 = vpop.f32.mrb[19].mxu1 }
 0x11b   :  { %v1715_v15 = vadd.f32 %v1714_v13, %v1713_v9 }
 0x11c   :  { %v2402_v17 = vadd.f32 %v1712_v8, %v991_v11  ;;  %v994_v18 = vadd.f32 %v1651_v12, %v2375_v2 }
 0x11e   :  { %v2405_v19 = vadd.f32 %v1715_v15, %v994_v18  ;;  %v1652_v20 = vpop.f32.mrb[20].mxu0 }
 0x11f   :  { %v1716_v21 = vpop.f32.mrb[20].mxu1  ;;  %v1653_v22 = vpop.f32.mrb[21].mxu0 }
 0x120   :  { %v1654_v23 = vadd.f32 %v1653_v22, %v1652_v20  ;;  %v1717_v24 = vpop.f32.mrb[21].mxu1  ;;  %v1655_v25 = vpop.f32.mrb[22].mxu0 }
 0x121   :  { %v1718_v26 = vadd.f32 %v1717_v24, %v1716_v21  ;;  %v1719_v27 = vpop.f32.mrb[22].mxu1  ;;  %v1656_v28 = vpop.f32.mrb[23].mxu0 }
 0x122   :  { %v999_v29 = vadd.f32 %v1654_v23, %v2375_v2  ;;  %v1657_v31 = vadd.f32 %v1656_v28, %v1655_v25  ;;  %v1720_v33 = vpop.f32.mrb[23].mxu1 }
 0x123   :  { %v1721_v34 = vadd.f32 %v1720_v33, %v1719_v27 }
 0x124   :  { %v2408_v35 = vadd.f32 %v1718_v26, %v999_v29  ;;  %v1002_v36 = vadd.f32 %v1657_v31, %v2375_v2 }
 0x126   :  { %v2411_v37 = vadd.f32 %v1721_v34, %v1002_v36  ;;  %v1658_v38 = vpop.f32.mrb[24].mxu0 }
 0x127   :  { %v1722_v39 = vpop.f32.mrb[24].mxu1  ;;  %v1659_v40 = vpop.f32.mrb[25].mxu0 }
 0x128   :  { %v1660_v41 = vadd.f32 %v1659_v40, %v1658_v38  ;;  %v1723_v42 = vpop.f32.mrb[25].mxu1  ;;  %v1661_v43 = vpop.f32.mrb[26].mxu0 }
 0x129   :  { %v1724_v44 = vadd.f32 %v1723_v42, %v1722_v39  ;;  %v1725_v45 = vpop.f32.mrb[26].mxu1  ;;  %v1662_v47 = vpop.f32.mrb[27].mxu0 }
 0x12a   :  { %v1007_v49 = vadd.f32 %v1660_v41, %v2375_v2  ;;  %v1663_v50 = vadd.f32 %v1662_v47, %v1661_v43  ;;  %v1726_v51 = vpop.f32.mrb[27].mxu1 }
 0x12b   :  { %v1727_v52 = vadd.f32 %v1726_v51, %v1725_v45 }
 0x12c   :  { %v2414_v53 = vadd.f32 %v1724_v44, %v1007_v49  ;;  %v1010_v54 = vadd.f32 %v1663_v50, %v2375_v2 }
 0x12e   :  { %v2417_v55 = vadd.f32 %v1727_v52, %v1010_v54  ;;  %v1664_v56 = vpop.f32.mrb[28].mxu0 }
 0x12f   :  { %v1728_v57 = vpop.f32.mrb[28].mxu1  ;;  %v1665_v58 = vpop.f32.mrb[29].mxu0 }
 0x130   :  { %v1666_v59 = vadd.f32 %v1665_v58, %v1664_v56  ;;  %v1729_v60 = vpop.f32.mrb[29].mxu1  ;;  %v1667_v61 = vpop.f32.mrb[30].mxu0 }
 0x131   :  { %v1730_v63 = vadd.f32 %v1729_v60, %v1728_v57  ;;  %v1731_v1 = vpop.f32.mrb[30].mxu1  ;;  %v1668_v3 = vpop.f32.mrb[31].mxu0 }
 0x132   :  { %v1015_v4 = vadd.f32 %v1666_v59, %v2375_v2  ;;  %v1669_v5 = vadd.f32 %v1668_v3, %v1667_v61  ;;  %v1732_v6 = vpop.f32.mrb[31].mxu1 }
 0x133   :  { %v1733_v7 = vadd.f32 %v1732_v6, %v1731_v1 }
 0x134   :  { %v2420_v8 = vadd.f32 %v1730_v63, %v1015_v4  ;;  %v1018_v9 = vadd.f32 %v1669_v5, %v2375_v2 }
 0x136   :  { %v2423_v10 = vadd.f32 %v1733_v7, %v1018_v9  ;;  %v1750_v11 = vpop.f32.mrb[32].mxu0  ;;  %v2439_v7 = vld [vmem:[%s2600_s3] ss:$0 sm:$0xff] }
 0x137   :  { %v1814_v12 = vpop.f32.mrb[32].mxu1  ;;  %v1751_v13 = vpop.f32.mrb[33].mxu0 }
 0x138   :  { %v1752_v15 = vadd.f32 %v1751_v13, %v1750_v11  ;;  %v1815_v18 = vpop.f32.mrb[33].mxu1  ;;  %v1753_v20 = vpop.f32.mrb[34].mxu0 }
 0x139   :  { %v1816_v21 = vadd.f32 %v1815_v18, %v1814_v12  ;;  %v1817_v22 = vpop.f32.mrb[34].mxu1  ;;  %v1754_v23 = vpop.f32.mrb[35].mxu0 }
 0x13a   :  { %v1153_v24 = vadd.f32 %v1752_v15, %v2378_v14  ;;  %v1755_v25 = vadd.f32 %v1754_v23, %v1753_v20  ;;  %v1818_v26 = vpop.f32.mrb[35].mxu1 }
 0x13b   :  { %v1819_v27 = vadd.f32 %v1818_v26, %v1817_v22 }
 0x13c   :  { %v1250_v28 = vadd.f32 %v1816_v21, %v1153_v24  ;;  %v1156_v29 = vadd.f32 %v1755_v25, %v2381_v16 }
 0x13e   :  { %v1328_v2 = vmul.f32 1.442695, %v1250_v28  ;;  %v1253_v31 = vadd.f32 %v1819_v27, %v1156_v29  ;;  %v1756_v33 = vpop.f32.mrb[36].mxu0  ;;  %vm1312_vm0 = vcmp.gt.f32.partialorder %v1250_v28, 0.0 }
 0x13f   :  { %v1820_v34 = vpop.f32.mrb[36].mxu1  ;;  %v1757_v36 = vpop.f32.mrb[37].mxu0 }
 0x140   :  { %1926 = vpow2.f32 %v1328_v2  ;;  %v1330_v38 = vmul.f32 1.442695, %v1253_v31  ;;  %v1758_v39 = vadd.f32 %v1757_v36, %v1756_v33  ;;  %v1821_v40 = vpop.f32.mrb[37].mxu1  ;;  %v1759_v41 = vpop.f32.mrb[38].mxu0  ;;  %vm1313_vm1 = vcmp.gt.f32.partialorder %v1253_v31, 0.0 }
 0x141   :  { %v1822_v42 = vadd.f32 %v1821_v40, %v1820_v34  ;;  %v1823_v43 = vpop.f32.mrb[38].mxu1  ;;  %v1760_v44 = vpop.f32.mrb[39].mxu0 }
 0x142   :  { %1928 = vpow2.f32 %v1330_v38  ;;  %v1161_v14 = vadd.f32 %v1758_v39, %v2384_v30  ;;  %v1761_v45 = vadd.f32 %v1760_v44, %v1759_v41  ;;  %v1824_v47 = vpop.f32.mrb[39].mxu1 }
 0x143   :  { %v1825_v49 = vadd.f32 %v1824_v47, %v1823_v43 }
 0x144   :  { %v2428_v16 = vadd.f32 %v1822_v42, %v1161_v14  ;;  %v1164_v50 = vadd.f32 %v1761_v45, %v2387_v32 }
 0x146   :  { %v1332_v51 = vmul.f32 1.442695, %v2428_v16  ;;  %v2432_v52 = vadd.f32 %v1825_v49, %v1164_v50  ;;  %v1762_v54 = vpop.f32.mrb[40].mxu0  ;;  %vm1314_vm3 = vcmp.gt.f32.partialorder %v2428_v16, 0.0 }
 0x147   :  { %v1826_v56 = vpop.f32.mrb[40].mxu1  ;;  %v1763_v57 = vpop.f32.mrb[41].mxu0 }
 0x148   :  { %1930 = vpow2.f32 %v1332_v51  ;;  %v1334_v58 = vmul.f32 1.442695, %v2432_v52  ;;  %v1764_v59 = vadd.f32 %v1763_v57, %v1762_v54  ;;  %v1827_v60 = vpop.f32.mrb[41].mxu1  ;;  %v1765_v30 = vpop.f32.mrb[42].mxu0  ;;  %vm1315_vm4 = vcmp.gt.f32.partialorder %v2432_v52, 0.0 }
 0x149   :  { %v1828_v61 = vadd.f32 %v1827_v60, %v1826_v56  ;;  %v1829_v63 = vpop.f32.mrb[42].mxu1  ;;  %v1766_v1 = vpop.f32.mrb[43].mxu0 }
 0x14a   :  { %v1927_v3 = vpop.eup %1926  ;;  %1932 = vpow2.f32 %v1334_v58  ;;  %v1169_v32 = vadd.f32 %v1764_v59, %v2390_v46  ;;  %v1767_v4 = vadd.f32 %v1766_v1, %v1765_v30  ;;  %v1830_v5 = vpop.f32.mrb[43].mxu1  ;;  %v2447_v46 = vld [vmem:[%s2601_s4] ss:$0 sm:$0xff] }
 0x14b   :  { %v1588_v6 = vadd.f32 -1.0, %v1927_v3  ;;  %v1831_v9 = vadd.f32 %v1830_v5, %v1829_v63 }
 0x14c   :  { %v1929_v11 = vpop.eup %1928  ;;  %v2441_v12 = vadd.f32 %v1828_v61, %v1169_v32  ;;  %v1172_v13 = vadd.f32 %v1767_v4, %v2393_v48 }
 0x14d   :  { %v1376_v15 = vsel %vm1312_vm0, %v1250_v28, %v1588_v6  ;;  %v1589_v18 = vadd.f32 -1.0, %v1929_v11 }
 0x14e   :  { %v1399_v20 = vmul.f32 %v2439_v7, %v1376_v15  ;;  %v1336_v21 = vmul.f32 1.442695, %v2441_v12  ;;  %v2451_v22 = vadd.f32 %v1831_v9, %v1172_v13  ;;  %v1768_v23 = vpop.f32.mrb[44].mxu0  ;;  %vm1316_vm5 = vcmp.gt.f32.partialorder %v2441_v12, 0.0 }
 0x14f   :  { %v1377_v24 = vsel %vm1313_vm1, %v1253_v31, %v1589_v18  ;;  %v1832_v25 = vpop.f32.mrb[44].mxu1  ;;  %v1769_v26 = vpop.f32.mrb[45].mxu0 }
 0x150   :  { %v1422_v48 = vadd.f32 %v2447_v46, %v1399_v20  ;;  %v1400_v27 = vmul.f32 %v2439_v7, %v1377_v24  ;;  %1934 = vpow2.f32 %v1336_v21  ;;  %v1833_v28 = vpop.f32.mrb[45].mxu1  ;;  %v1771_v29 = vpop.f32.mrb[46].mxu0  ;;  %v1338_v2 = vmul.f32 1.442695, %v2451_v22 }
 0x151   :  { %v1770_v33 = vadd.f32 %v1769_v26, %v1768_v23  ;;  %v1834_v34 = vadd.f32 %v1833_v28, %v1832_v25  ;;  %v1835_v36 = vpop.f32.mrb[46].mxu1  ;;  %v1772_v38 = vpop.f32.mrb[47].mxu0  ;;  %vm1317_vm6 = vcmp.gt.f32.partialorder %v2451_v22, 0.0 }
 0x152   :  { %v1931_v39 = vpop.eup %1930  ;;  %1439 = vst.msk [vmem:[%s2602_s5] sm:$0xff] %vm1438_vm2, %v1422_v48  ;;  %v1423_v31 = vadd.f32 %v2447_v46, %v1400_v27  ;;  %v1773_v40 = vadd.f32 %v1772_v38, %v1771_v29  ;;  %v1836_v41 = vpop.f32.mrb[47].mxu1  ;;  %1936 = vpow2.f32 %v1338_v2 }
 0x153   :  { %v1590_v42 = vadd.f32 -1.0, %v1931_v39  ;;  %v1177_v43 = vadd.f32 %v1770_v33, %v2396_v62  ;;  %v1837_v44 = vadd.f32 %v1836_v41, %v1835_v36 }
 0x154   :  { %v1933_v14 = vpop.eup %1932  ;;  %1440 = vst.msk [vmem:[%s2602_s5 + $0x8] sm:$0xff] %vm1438_vm2, %v1423_v31  ;;  %v1180_v45 = vadd.f32 %v1773_v40, %v2399_v0 }
 0x155   :  { %v1378_v47 = vsel %vm1314_vm3, %v2428_v16, %v1590_v42  ;;  %v1591_v49 = vadd.f32 -1.0, %v1933_v14  ;;  %v2469_v50 = vadd.f32 %v1834_v34, %v1177_v43 }
 0x156   :  { %v1401_v51 = vmul.f32 %v2439_v7, %v1378_v47  ;;  %v2473_v62 = vadd.f32 %v1837_v44, %v1180_v45  ;;  %v1774_v54 = vpop.f32.mrb[48].mxu0 }
 0x157   :  { %v1379_v56 = vsel %vm1315_vm4, %v2432_v52, %v1591_v49  ;;  %v1340_v57 = vmul.f32 1.442695, %v2469_v50  ;;  %v1838_v58 = vpop.f32.mrb[48].mxu1  ;;  %v1775_v59 = vpop.f32.mrb[49].mxu0  ;;  %vm1318_vm7 = vcmp.gt.f32.partialorder %v2469_v50, 0.0 }
 0x158   :  { %v1424_v0 = vadd.f32 %v2447_v46, %v1401_v51  ;;  %v1402_v16 = vmul.f32 %v2439_v7, %v1379_v56  ;;  %v1342_v60 = vmul.f32 1.442695, %v2473_v62  ;;  %v1839_v30 = vpop.f32.mrb[49].mxu1  ;;  %v1777_v61 = vpop.f32.mrb[50].mxu0  ;;  %v1776_v63 = vadd.f32 %v1775_v59, %v1774_v54 }
 0x159   :  { %1938 = vpow2.f32 %v1340_v57  ;;  %v1840_v1 = vadd.f32 %v1839_v30, %v1838_v58  ;;  %v1841_v3 = vpop.f32.mrb[50].mxu1  ;;  %v1778_v32 = vpop.f32.mrb[51].mxu0  ;;  %vm1319_vm8 = vcmp.gt.f32.partialorder %v2473_v62, 0.0 }
 0x15a   :  { %v1935_v4 = vpop.eup %1934  ;;  %1441 = vst.msk [vmem:[%s2602_s5 + $0x10] sm:$0xff] %vm1438_vm2, %v1424_v0  ;;  %v1425_v52 = vadd.f32 %v2447_v46, %v1402_v16  ;;  %1940 = vpow2.f32 %v1342_v60  ;;  %v1779_v5 = vadd.f32 %v1778_v32, %v1777_v61  ;;  %v1842_v6 = vpop.f32.mrb[51].mxu1  ;;  %v1185_v11 = vadd.f32 %v1776_v63, %v2402_v17 }
 0x15b   :  { %v1592_v9 = vadd.f32 -1.0, %v1935_v4  ;;  %v1843_v13 = vadd.f32 %v1842_v6, %v1841_v3 }
 0x15c   :  { %1442 = vst.msk [vmem:[%s2602_s5 + $0x18] sm:$0xff] %vm1438_vm2, %v1425_v52  ;;  %v1188_v15 = vadd.f32 %v1779_v5, %v2405_v19  ;;  %v1937_v18 = vpop.eup %1936  ;;  %v2493_v21 = vadd.f32 %v1840_v1, %v1185_v11 }
 0x15d   :  { %v1380_v20 = vsel %vm1316_vm5, %v2441_v12, %v1592_v9  ;;  %v1593_v24 = vadd.f32 -1.0, %v1937_v18 }
 0x15e   :  { %v1403_v23 = vmul.f32 %v2439_v7, %v1380_v20  ;;  %v2496_v25 = vadd.f32 %v1843_v13, %v1188_v15  ;;  %v1780_v17 = vpop.f32.mrb[52].mxu0  ;;  %v1344_v26 = vmul.f32 1.442695, %v2493_v21  ;;  %vm1320_vm9 = vcmp.gt.f32.partialorder %v2493_v21, 0.0 }
 0x15f   :  { %v1844_v48 = vpop.f32.mrb[52].mxu1  ;;  %v1781_v27 = vpop.f32.mrb[53].mxu0  ;;  %v1381_v19 = vsel %vm1317_vm6, %v2451_v22, %v1593_v24 }
 0x160   :  { %v1426_v28 = vadd.f32 %v2447_v46, %v1403_v23  ;;  %v1346_v12 = vmul.f32 1.442695, %v2496_v25  ;;  %v1845_v29 = vpop.f32.mrb[53].mxu1  ;;  %v1783_v2 = vpop.f32.mrb[54].mxu0  ;;  %v1404_v33 = vmul.f32 %v2439_v7, %v1381_v19  ;;  %1942 = vpow2.f32 %v1344_v26 }
 0x161   :  { %v1782_v34 = vadd.f32 %v1781_v27, %v1780_v17  ;;  %v1846_v36 = vadd.f32 %v1845_v29, %v1844_v48  ;;  %v1847_v38 = vpop.f32.mrb[54].mxu1  ;;  %v1784_v39 = vpop.f32.mrb[55].mxu0  ;;  %vm1321_vm10 = vcmp.gt.f32.partialorder %v2496_v25, 0.0 }
 0x162   :  { %1443 = vst.msk [vmem:[%s2602_s5 + $0x20] sm:$0xff] %vm1438_vm2, %v1426_v28  ;;  %1944 = vpow2.f32 %v1346_v12  ;;  %v1785_v31 = vadd.f32 %v1784_v39, %v1783_v2  ;;  %v1848_v40 = vpop.f32.mrb[55].mxu1  ;;  %v1427_v41 = vadd.f32 %v2447_v46, %v1404_v33 }
 0x163   :  { %v1939_v22 = vpop.eup %1938  ;;  %v1193_v42 = vadd.f32 %v1782_v34, %v2408_v35  ;;  %v1849_v43 = vadd.f32 %v1848_v40, %v1847_v38 }
 0x164   :  { %v1941_v44 = vpop.eup %1940  ;;  %v1594_v14 = vadd.f32 -1.0, %v1939_v22  ;;  %v1196_v45 = vadd.f32 %v1785_v31, %v2411_v37  ;;  %1444 = vst.msk [vmem:[%s2602_s5 + $0x28] sm:$0xff] %vm1438_vm2, %v1427_v41 }
 0x165   :  { %v1595_v47 = vadd.f32 -1.0, %v1941_v44  ;;  %v2516_v49 = vadd.f32 %v1846_v36, %v1193_v42 }
 0x166   :  { %v1382_v51 = vsel %vm1318_vm7, %v2469_v50, %v1594_v14  ;;  %v2520_v35 = vadd.f32 %v1849_v43, %v1196_v45  ;;  %v1786_v54 = vpop.f32.mrb[56].mxu0 }
 0x167   :  { %v1405_v56 = vmul.f32 %v2439_v7, %v1382_v51  ;;  %v1383_v37 = vsel %vm1319_vm8, %v2473_v62, %v1595_v47  ;;  %v1348_v57 = vmul.f32 1.442695, %v2516_v49  ;;  %v1850_v58 = vpop.f32.mrb[56].mxu1  ;;  %v1787_v59 = vpop.f32.mrb[57].mxu0  ;;  %vm1322_vm11 = vcmp.gt.f32.partialorder %v2516_v49, 0.0 }
 0x168   :  { %v1406_v0 = vmul.f32 %v2439_v7, %v1383_v37  ;;  %v1350_v16 = vmul.f32 1.442695, %v2520_v35  ;;  %v1788_v60 = vadd.f32 %v1787_v59, %v1786_v54  ;;  %v1851_v30 = vpop.f32.mrb[57].mxu1  ;;  %v1789_v50 = vpop.f32.mrb[58].mxu0  ;;  %vm1323_vm12 = vcmp.gt.f32.partialorder %v2520_v35, 0.0 }
 0x169   :  { %v1428_v61 = vadd.f32 %v2447_v46, %v1405_v56  ;;  %1946 = vpow2.f32 %v1348_v57  ;;  %v1852_v63 = vadd.f32 %v1851_v30, %v1850_v58  ;;  %v1853_v1 = vpop.f32.mrb[58].mxu1  ;;  %v1790_v3 = vpop.f32.mrb[59].mxu0 }
 0x16a   :  { %v1429_v32 = vadd.f32 %v2447_v46, %v1406_v0  ;;  %1948 = vpow2.f32 %v1350_v16  ;;  %v1201_v62 = vadd.f32 %v1788_v60, %v2414_v53  ;;  %v1791_v4 = vadd.f32 %v1790_v3, %v1789_v50  ;;  %v1854_v52 = vpop.f32.mrb[59].mxu1  ;;  %v1943_v5 = vpop.eup %1942 }
 0x16b   :  { %1445 = vst.msk [vmem:[%s2602_s5 + $0x30] sm:$0xff] %vm1438_vm2, %v1428_v61  ;;  %v1855_v6 = vadd.f32 %v1854_v52, %v1853_v1  ;;  %v1596_v11 = vadd.f32 -1.0, %v1943_v5 }
 0x16c   :  { %v1945_v9 = vpop.eup %1944  ;;  %1446 = vst.msk [vmem:[%s2602_s5 + $0x38] sm:$0xff] %vm1438_vm2, %v1429_v32  ;;  %v1298_v13 = vadd.f32 %v1852_v63, %v1201_v62  ;;  %v1204_v15 = vadd.f32 %v1791_v4, %v2417_v55 }
 0x16d   :  { %v1597_v53 = vadd.f32 -1.0, %v1945_v9  ;;  %v1384_v18 = vsel %vm1320_vm9, %v2493_v21, %v1596_v11 }
 0x16e   :  { %v1352_v20 = vmul.f32 1.442695, %v1298_v13  ;;  %v1301_v23 = vadd.f32 %v1855_v6, %v1204_v15  ;;  %v1792_v24 = vpop.f32.mrb[60].mxu0  ;;  %v1407_v17 = vmul.f32 %v2439_v7, %v1384_v18  ;;  %vm1324_vm13 = vcmp.gt.f32.partialorder %v1298_v13, 0.0 }
 0x16f   :  { %v1385_v26 = vsel %vm1321_vm10, %v2496_v25, %v1597_v53  ;;  %v1856_v48 = vpop.f32.mrb[60].mxu1  ;;  %v1793_v27 = vpop.f32.mrb[61].mxu0 }
 0x170   :  { %v1408_v28 = vmul.f32 %v2439_v7, %v1385_v26  ;;  %1950 = vpow2.f32 %v1352_v20  ;;  %v1354_v55 = vmul.f32 1.442695, %v1301_v23  ;;  %v1857_v19 = vpop.f32.mrb[61].mxu1  ;;  %v1795_v12 = vpop.f32.mrb[62].mxu0  ;;  %v1430_v29 = vadd.f32 %v2447_v46, %v1407_v17 }
 0x171   :  { %v1794_v21 = vadd.f32 %v1793_v27, %v1792_v24  ;;  %v1858_v2 = vadd.f32 %v1857_v19, %v1856_v48  ;;  %v1859_v33 = vpop.f32.mrb[62].mxu1  ;;  %v1796_v34 = vpop.f32.mrb[63].mxu0  ;;  %vm1325_vm14 = vcmp.gt.f32.partialorder %v1301_v23, 0.0 }
 0x172   :  { %v1431_v36 = vadd.f32 %v2447_v46, %v1408_v28  ;;  %1952 = vpow2.f32 %v1354_v55  ;;  %v1797_v38 = vadd.f32 %v1796_v34, %v1795_v12  ;;  %v1860_v39 = vpop.f32.mrb[63].mxu1  ;;  %1447 = vst.msk [vmem:[%s2602_s5 + $0x40] sm:$0xff] %vm1438_vm2, %v1430_v29 }
 0x173   :  { %v1947_v25 = vpop.eup %1946  ;;  %v1209_v31 = vadd.f32 %v1794_v21, %v2420_v8  ;;  %v1861_v40 = vadd.f32 %v1860_v39, %v1859_v33 }
 0x174   :  { %v1949_v22 = vpop.eup %1948  ;;  %1448 = vst.msk [vmem:[%s2602_s5 + $0x48] sm:$0xff] %vm1438_vm2, %v1431_v36  ;;  %v1598_v41 = vadd.f32 -1.0, %v1947_v25  ;;  %v1212_v42 = vadd.f32 %v1797_v38, %v2423_v10 }
 0x175   :  { %v1599_v43 = vadd.f32 -1.0, %v1949_v22  ;;  %v1306_v44 = vadd.f32 %v1858_v2, %v1209_v31 }
 0x176   :  { %v1386_v14 = vsel %vm1322_vm11, %v2516_v49, %v1598_v41  ;;  %v1309_v45 = vadd.f32 %v1861_v40, %v1212_v42 }
 0x177   :  { %v1409_v8 = vmul.f32 %v2439_v7, %v1386_v14  ;;  %v1387_v47 = vsel %vm1323_vm12, %v2520_v35, %v1599_v43  ;;  %v1356_v51 = vmul.f32 1.442695, %v1306_v44  ;;  %vm1326_vm15 = vcmp.gt.f32.partialorder %v1306_v44, 0.0 }
 0x178   :  { %v1410_v54 = vmul.f32 %v2439_v7, %v1387_v47  ;;  %v1358_v56 = vmul.f32 1.442695, %v1309_v45  ;;  %vm1327_vm0 = vcmp.gt.f32.partialorder %v1309_v45, 0.0 }
 0x179   :  { %v1432_v37 = vadd.f32 %v2447_v46, %v1409_v8  ;;  %1954 = vpow2.f32 %v1356_v51 }
 0x17a   :  { %v1951_v10 = vpop.eup %1950  ;;  %v1433_v57 = vadd.f32 %v2447_v46, %v1410_v54  ;;  %1956 = vpow2.f32 %v1358_v56 }
 0x17b   :  { %1449 = vst.msk [vmem:[%s2602_s5 + $0x50] sm:$0xff] %vm1438_vm2, %v1432_v37  ;;  %v1600_v49 = vadd.f32 -1.0, %v1951_v10 }
 0x17c   :  { %v1953_v58 = vpop.eup %1952  ;;  %1450 = vst.msk [vmem:[%s2602_s5 + $0x58] sm:$0xff] %vm1438_vm2, %v1433_v57 }
 0x17d   :  { %v1388_v35 = vsel %vm1324_vm13, %v1298_v13, %v1600_v49  ;;  %v1601_v59 = vadd.f32 -1.0, %v1953_v58 }
 0x17e   :  { %v1411_v0 = vmul.f32 %v2439_v7, %v1388_v35 }
 0x17f   :  { %v1389_v16 = vsel %vm1325_vm14, %v1301_v23, %v1601_v59 }
 0x180   :  { %v1434_v60 = vadd.f32 %v2447_v46, %v1411_v0  ;;  %v1412_v30 = vmul.f32 %v2439_v7, %v1389_v16 }
 0x182   :  { %1451 = vst.msk [vmem:[%s2602_s5 + $0x60] sm:$0xff] %vm1438_vm2, %v1434_v60  ;;  %v1435_v50 = vadd.f32 %v2447_v46, %v1412_v30 }
 0x183   :  { %v1955_v61 = vpop.eup %1954 }
 0x184   :  { %v1957_v63 = vpop.eup %1956  ;;  %1452 = vst.msk [vmem:[%s2602_s5 + $0x68] sm:$0xff] %vm1438_vm2, %v1435_v50  ;;  %v1602_v1 = vadd.f32 -1.0, %v1955_v61 }
 0x185   :  { %v1603_v3 = vadd.f32 -1.0, %v1957_v63 }
 0x186   :  { %v1390_v32 = vsel %vm1326_vm15, %v1306_v44, %v1602_v1 }
 0x187   :  { %v1413_v62 = vmul.f32 %v2439_v7, %v1390_v32  ;;  %v1391_v4 = vsel %vm1327_vm0, %v1309_v45, %v1603_v3 }
 0x188   :  { %v1414_v52 = vmul.f32 %v2439_v7, %v1391_v4 }
 0x189   :  { %v1436_v5 = vadd.f32 %v2447_v46, %v1413_v62 }
 0x18a   :  { %v1437_v6 = vadd.f32 %v2447_v46, %v1414_v52 }
 0x18b   :  { %1453 = vst.msk [vmem:[%s2602_s5 + $0x70] sm:$0xff] %vm1438_vm2, %v1436_v5 }
 0x18c   :  { %1454 = vst.msk [vmem:[%s2602_s5 + $0x78] sm:$0xff] %vm1438_vm2, %v1437_v6 }

// kernel: cnn_forward.6
= control target key start
LH: loop header
LB: loop body
LE: loop exit
PB: predicated region body
PF: predicated region fallthrough
CT: control target
= control target key end

     0   :  { %vm753_vm1 = vcmask 523264   ;;  %s1243_s1 = inlined_call_operand.vmem [shape: bf16[1024,64], index: 1, kind: input, shape index: {}]   ;;  %s1244_s0 = inlined_call_operand.vmem [shape: bf16[8,1024], index: 0, kind: input, shape index: {}]   ;;  %s1245_s2 = inlined_call_operand.vmem [shape: f32[1,64], index: 2, kind: input, shape index: {}]   ;;  %s1246_s3 = inlined_call_operand.vmem [shape: f32[1,64], index: 3, kind: input, shape index: {}]   ;;  %s1247_s4 = inlined_call_operand.vmem [shape: f32[1,64], index: 4, kind: input, shape index: {}]   ;;  %s1248_s5 = inlined_call_operand.vmem [shape: f32[8,64], index: 5, kind: output, shape index: {}]  }
   0x1   :  { %v923_v0 = vld [vmem:[%s1243_s1 + $0x40] sm:$0xff]   ;;  %v927_v4 = vld [vmem:[%s1243_s1 + $0x48] sm:$0xff]   ;;  %v931_v8 = vld [vmem:[%s1243_s1 + $0x50] sm:$0xff]  }
   0x2   :  { %v924_v1 = vld [vmem:[%s1243_s1 + $0xc0] sm:$0xff]   ;;  %835 = vmatprep.subr.bf16.mxu0 %v923_v0  ;;  %v928_v5 = vld [vmem:[%s1243_s1 + $0xc8] sm:$0xff]   ;;  %v932_v9 = vld [vmem:[%s1243_s1 + $0xd0] sm:$0xff]  }
   0x3   :  { %v925_v2 = vld [vmem:[%s1243_s1] sm:$0xff]   ;;  %857 = vmatprep.subr.bf16.mxu1 %v924_v1  ;;  %v929_v6 = vld [vmem:[%s1243_s1 + $0x8] sm:$0xff]   ;;  %v933_v10 = vld [vmem:[%s1243_s1 + $0x10] sm:$0xff]  }
   0x4   :  { %v926_v3 = vld [vmem:[%s1243_s1 + $0x80] sm:$0xff]   ;;  %836 = vmatpush3.bf16.msra.mxu0 %v925_v2  ;;  %v930_v7 = vld [vmem:[%s1243_s1 + $0x88] sm:$0xff]   ;;  %v934_v11 = vld [vmem:[%s1243_s1 + $0x90] sm:$0xff]  }
   0x5   :  { %858 = vmatpush3.bf16.msra.mxu1 %v926_v3  ;;  %837 = vmatprep.subr.bf16.mxu0 %v927_v4  ;;  %v935_v12 = vld [vmem:[%s1243_s1 + $0x58] sm:$0xff]   ;;  %v939_v16 = vld [vmem:[%s1243_s1 + $0x60] sm:$0xff]   ;;  %v943_v20 = vld [vmem:[%s1243_s1 + $0x68] sm:$0xff]  }
   0x6   :  { %859 = vmatprep.subr.bf16.mxu1 %v928_v5  ;;  %v936_v13 = vld [vmem:[%s1243_s1 + $0xd8] sm:$0xff]   ;;  %v940_v17 = vld [vmem:[%s1243_s1 + $0xe0] sm:$0xff]   ;;  %v944_v21 = vld [vmem:[%s1243_s1 + $0xe8] sm:$0xff]  }
   0x7   :  { %v937_v14 = vld [vmem:[%s1243_s1 + $0x18] sm:$0xff]   ;;  %v941_v18 = vld [vmem:[%s1243_s1 + $0x20] sm:$0xff]   ;;  %v945_v22 = vld [vmem:[%s1243_s1 + $0x28] sm:$0xff]  }
   0x8   :  { %838 = vmatpush3.bf16.msra.mxu0 %v929_v6  ;;  %v938_v15 = vld [vmem:[%s1243_s1 + $0x98] sm:$0xff]   ;;  %v942_v19 = vld [vmem:[%s1243_s1 + $0xa0] sm:$0xff]   ;;  %v946_v23 = vld [vmem:[%s1243_s1 + $0xa8] sm:$0xff]  }
   0x9   :  { %860 = vmatpush3.bf16.msra.mxu1 %v930_v7  ;;  %839 = vmatprep.subr.bf16.mxu0 %v931_v8  ;;  %v947_v24 = vld [vmem:[%s1243_s1 + $0x70] sm:$0xff]   ;;  %v951_v28 = vld [vmem:[%s1243_s1 + $0x78] sm:$0xff]   ;;  %v21_v32 = vld [vmem:[%s1244_s0] sm:$0xff] }
   0xa   :  { %861 = vmatprep.subr.bf16.mxu1 %v932_v9  ;;  %v948_v25 = vld [vmem:[%s1243_s1 + $0xf0] sm:$0xff]   ;;  %v952_v29 = vld [vmem:[%s1243_s1 + $0xf8] sm:$0xff]   ;;  %v22_v33 = vld [vmem:[%s1244_s0 + $0x8] sm:$0xff]  ;;  %v760_v34 = vcombine.low %v21_v32, %v21_v32  ;;  %v761_v35 = vcombine.high %v21_v32, %v21_v32 }
   0xb   :  { %v949_v26 = vld [vmem:[%s1243_s1 + $0x30] sm:$0xff]   ;;  %v953_v30 = vld [vmem:[%s1243_s1 + $0x38] sm:$0xff]   ;;  %v762_v36 = vcombine.low %v22_v33, %v22_v33  ;;  %v763_v37 = vcombine.high %v22_v33, %v22_v33  ;;  %v959_v38 = vld [vmem:[%s1243_s1 + $0x140] sm:$0xff]  }
   0xc   :  { %840 = vmatpush3.bf16.msra.mxu0 %v933_v10  ;;  %v950_v27 = vld [vmem:[%s1243_s1 + $0xb0] sm:$0xff]   ;;  %v954_v31 = vld [vmem:[%s1243_s1 + $0xb8] sm:$0xff]   ;;  %v960_v39 = vld [vmem:[%s1243_s1 + $0x1c0] sm:$0xff]   ;;  %604 = vmatprep.mubr.bf16.mxu0 %v761_v35 }
   0xd   :  { %862 = vmatpush3.bf16.msra.mxu1 %v934_v11  ;;  %841 = vmatprep.subr.bf16.mxu0 %v935_v12  ;;  %v961_v40 = vld [vmem:[%s1243_s1 + $0x100] sm:$0xff]   ;;  %v963_v42 = vld [vmem:[%s1243_s1 + $0x148] sm:$0xff]   ;;  %v967_v46 = vld [vmem:[%s1243_s1 + $0x150] sm:$0xff]  }
   0xe   :  { %863 = vmatprep.subr.bf16.mxu1 %v936_v13  ;;  %644 = vmatprep.mubr.bf16.mxu1 %v763_v37  ;;  %v962_v41 = vld [vmem:[%s1243_s1 + $0x180] sm:$0xff]   ;;  %v964_v43 = vld [vmem:[%s1243_s1 + $0x1c8] sm:$0xff]   ;;  %v968_v47 = vld [vmem:[%s1243_s1 + $0x1d0] sm:$0xff]  }
   0xf   :  { %v965_v44 = vld [vmem:[%s1243_s1 + $0x108] sm:$0xff]   ;;  %v969_v48 = vld [vmem:[%s1243_s1 + $0x110] sm:$0xff]   ;;  %v971_v50 = vld [vmem:[%s1243_s1 + $0x158] sm:$0xff]  }
  0x10   :  { %842 = vmatpush3.bf16.msra.mxu0 %v937_v14  ;;  %v966_v45 = vld [vmem:[%s1243_s1 + $0x188] sm:$0xff]   ;;  %v970_v49 = vld [vmem:[%s1243_s1 + $0x190] sm:$0xff]   ;;  %v972_v51 = vld [vmem:[%s1243_s1 + $0x1d8] sm:$0xff]  }
  0x11   :  { %864 = vmatpush3.bf16.msra.mxu1 %v938_v15  ;;  %843 = vmatprep.subr.bf16.mxu0 %v939_v16  ;;  %v973_v52 = vld [vmem:[%s1243_s1 + $0x118] sm:$0xff]   ;;  %v975_v54 = vld [vmem:[%s1243_s1 + $0x160] sm:$0xff]   ;;  %v979_v58 = vld [vmem:[%s1243_s1 + $0x168] sm:$0xff]  }
  0x12   :  { %865 = vmatprep.subr.bf16.mxu1 %v940_v17  ;;  %v974_v53 = vld [vmem:[%s1243_s1 + $0x198] sm:$0xff]   ;;  %v976_v55 = vld [vmem:[%s1243_s1 + $0x1e0] sm:$0xff]   ;;  %v980_v59 = vld [vmem:[%s1243_s1 + $0x1e8] sm:$0xff]  }
  0x13   :  { %v977_v56 = vld [vmem:[%s1243_s1 + $0x120] sm:$0xff]   ;;  %v981_v60 = vld [vmem:[%s1243_s1 + $0x128] sm:$0xff]   ;;  %v983_v62 = vld [vmem:[%s1243_s1 + $0x170] sm:$0xff]  }
  0x14   :  { %844 = vmatpush3.bf16.msra.mxu0 %v941_v18  ;;  %v978_v57 = vld [vmem:[%s1243_s1 + $0x1a0] sm:$0xff]   ;;  %v982_v61 = vld [vmem:[%s1243_s1 + $0x1a8] sm:$0xff]   ;;  %v984_v63 = vld [vmem:[%s1243_s1 + $0x1f0] sm:$0xff]  }
  0x15   :  { %866 = vmatpush3.bf16.msra.mxu1 %v942_v19  ;;  %845 = vmatprep.subr.bf16.mxu0 %v943_v20  ;;  %v985_v0 = vld [vmem:[%s1243_s1 + $0x130] sm:$0xff]   ;;  %v987_v2 = vld [vmem:[%s1243_s1 + $0x178] sm:$0xff]   ;;  %v759_v14 = vld [vmem:[%s1245_s2] ss:$0 sm:$0xff] }
  0x16   :  { %867 = vmatprep.subr.bf16.mxu1 %v944_v21  ;;  %v986_v1 = vld [vmem:[%s1243_s1 + $0x1b0] sm:$0xff]   ;;  %v988_v3 = vld [vmem:[%s1243_s1 + $0x1f8] sm:$0xff]  }
  0x17   :  { %v989_v4 = vld [vmem:[%s1243_s1 + $0x138] sm:$0xff]   ;;  %v23_v6 = vld [vmem:[%s1244_s0 + $0x10] sm:$0xff] }
  0x18   :  { %846 = vmatpush3.bf16.msra.mxu0 %v945_v22  ;;  %v990_v5 = vld [vmem:[%s1243_s1 + $0x1b8] sm:$0xff]   ;;  %v764_v7 = vcombine.low %v23_v6, %v23_v6  ;;  %v765_v8 = vcombine.high %v23_v6, %v23_v6 }
  0x19   :  { %868 = vmatpush3.bf16.msra.mxu1 %v946_v23  ;;  %847 = vmatprep.subr.bf16.mxu0 %v947_v24  ;;  %v24_v9 = vld [vmem:[%s1244_s0 + $0x18] sm:$0xff] }
  0x1a   :  { %869 = vmatprep.subr.bf16.mxu1 %v948_v25  ;;  %v766_v10 = vcombine.low %v24_v9, %v24_v9  ;;  %v767_v11 = vcombine.high %v24_v9, %v24_v9 }
  0x1c   :  { %848 = vmatpush3.bf16.msra.mxu0 %v949_v26 }
  0x1d   :  { %870 = vmatpush3.bf16.msra.mxu1 %v950_v27  ;;  %849 = vmatprep.subr.bf16.mxu0 %v951_v28 }
  0x1e   :  { %871 = vmatprep.subr.bf16.mxu1 %v952_v29 }
  0x20   :  { %850 = vmatpush3.bf16.msra.mxu0 %v953_v30 }
  0x21   :  { %872 = vmatpush3.bf16.msra.mxu1 %v954_v31  ;;  %879 = vmatprep.subr.bf16.mxu0 %v959_v38 }
  0x22   :  { %901 = vmatprep.subr.bf16.mxu1 %v960_v39 }
  0x23   :  { %605 = vmatmul.mubr.bf16.vlgmr.msra.gmra.mrb[0].mxu0 %v760_v34 }
  0x24   :  { %645 = vmatmul.mubr.bf16.vlgmr.msra.gmra.mrb[0].mxu1 %v762_v36  ;;  %880 = vmatpush3.bf16.msra.mxu0 %v961_v40  ;;  %v833_v40 = vld [vmem:[%s1246_s3] ss:$0 sm:$0xff] }
  0x25   :  { %902 = vmatpush3.bf16.msra.mxu1 %v962_v41  ;;  %881 = vmatprep.subr.bf16.mxu0 %v963_v42  ;;  %v834_v42 = vld [vmem:[%s1247_s4] ss:$0 sm:$0xff] }
  0x26   :  { %903 = vmatprep.subr.bf16.mxu1 %v964_v43  ;;  %684 = vmatprep.mubr.bf16.mxu0 %v765_v8 }
  0x27   :  { %724 = vmatprep.mubr.bf16.mxu1 %v767_v11 }
  0x28   :  { %882 = vmatpush3.bf16.msra.mxu0 %v965_v44 }
  0x29   :  { %904 = vmatpush3.bf16.msra.mxu1 %v966_v45  ;;  %883 = vmatprep.subr.bf16.mxu0 %v967_v46 }
  0x2a   :  { %905 = vmatprep.subr.bf16.mxu1 %v968_v47 }
  0x2c   :  { %884 = vmatpush3.bf16.msra.mxu0 %v969_v48 }
  0x2d   :  { %906 = vmatpush3.bf16.msra.mxu1 %v970_v49  ;;  %885 = vmatprep.subr.bf16.mxu0 %v971_v50 }
  0x2e   :  { %907 = vmatprep.subr.bf16.mxu1 %v972_v51 }
  0x30   :  { %886 = vmatpush3.bf16.msra.mxu0 %v973_v52 }
  0x31   :  { %908 = vmatpush3.bf16.msra.mxu1 %v974_v53  ;;  %887 = vmatprep.subr.bf16.mxu0 %v975_v54 }
  0x32   :  { %909 = vmatprep.subr.bf16.mxu1 %v976_v55 }
  0x34   :  { %888 = vmatpush3.bf16.msra.mxu0 %v977_v56 }
  0x35   :  { %910 = vmatpush3.bf16.msra.mxu1 %v978_v57  ;;  %889 = vmatprep.subr.bf16.mxu0 %v979_v58 }
  0x36   :  { %911 = vmatprep.subr.bf16.mxu1 %v980_v59 }
  0x38   :  { %890 = vmatpush3.bf16.msra.mxu0 %v981_v60 }
  0x39   :  { %912 = vmatpush3.bf16.msra.mxu1 %v982_v61  ;;  %891 = vmatprep.subr.bf16.mxu0 %v983_v62 }
  0x3a   :  { %913 = vmatprep.subr.bf16.mxu1 %v984_v63 }
  0x3c   :  { %892 = vmatpush3.bf16.msra.mxu0 %v985_v0 }
  0x3d   :  { %914 = vmatpush3.bf16.msra.mxu1 %v986_v1  ;;  %893 = vmatprep.subr.bf16.mxu0 %v987_v2 }
  0x3e   :  { %915 = vmatprep.subr.bf16.mxu1 %v988_v3 }
  0x40   :  { %894 = vmatpush3.bf16.msra.mxu0 %v989_v4 }
  0x41   :  { %916 = vmatpush3.bf16.msra.mxu1 %v990_v5 }
  0x43   :  { %685 = vmatmul.mubr.bf16.vlgmr.msra.gmra.mrb[4].mxu0 %v764_v7 }
  0x44   :  { %725 = vmatmul.mubr.bf16.vlgmr.msra.gmra.mrb[4].mxu1 %v766_v10 }
  0xf6   :  { %v851_v12 = vpop.f32.mrb[0].mxu0 }
  0xf7   :  { %v873_v13 = vpop.f32.mrb[0].mxu1  ;;  %v852_v15 = vpop.f32.mrb[1].mxu0 }
  0xf8   :  { %v874_v16 = vpop.f32.mrb[1].mxu1  ;;  %v853_v17 = vadd.f32 %v852_v15, %v851_v12  ;;  %v854_v19 = vpop.f32.mrb[2].mxu0 }
  0xf9   :  { %v875_v18 = vadd.f32 %v874_v16, %v873_v13  ;;  %v876_v20 = vpop.f32.mrb[2].mxu1  ;;  %v855_v21 = vpop.f32.mrb[3].mxu0 }
  0xfa   :  { %v877_v22 = vpop.f32.mrb[3].mxu1  ;;  %v607_v23 = vadd.f32 %v853_v17, %v759_v14 }
  0xfc   :  { %v647_v24 = vadd.f32 %v875_v18, %v607_v23 }
 0x116   :  { %v895_v25 = vpop.f32.mrb[4].mxu0 }
 0x117   :  { %v917_v26 = vpop.f32.mrb[4].mxu1  ;;  %v896_v27 = vpop.f32.mrb[5].mxu0 }
 0x118   :  { %v918_v28 = vpop.f32.mrb[5].mxu1  ;;  %v897_v29 = vadd.f32 %v896_v27, %v895_v25  ;;  %v898_v31 = vpop.f32.mrb[6].mxu0 }
 0x119   :  { %v919_v30 = vadd.f32 %v918_v28, %v917_v26  ;;  %v920_v32 = vpop.f32.mrb[6].mxu1  ;;  %v899_v33 = vpop.f32.mrb[7].mxu0 }
 0x11a   :  { %v921_v34 = vpop.f32.mrb[7].mxu1  ;;  %v687_v35 = vadd.f32 %v897_v29, %v647_v24 }
 0x11c   :  { %v727_v36 = vadd.f32 %v919_v30, %v687_v35 }
 0x11e   :  { %v733_v37 = vmul.f32 1.442695, %v727_v36  ;;  %vm732_vm0 = vcmp.gt.f32.partialorder %v727_v36, 0.0 }
 0x120   :  { %995 = vpow2.f32 %v733_v37 }
 0x12a   :  { %v996_v38 = vpop.eup %995 }
 0x12b   :  { %v832_v39 = vadd.f32 -1.0, %v996_v38 }
 0x12d   :  { %v736_v41 = vsel %vm732_vm0, %v727_v36, %v832_v39 }
 0x12e   :  { %v744_v43 = vmul.f32 %v833_v40, %v736_v41 }
 0x130   :  { %v752_v44 = vadd.f32 %v834_v42, %v744_v43 }
 0x132   :  { %754 = vst.msk [vmem:[%s1248_s5] sm:$0xff] %vm753_vm1, %v752_v44 }

// kernel: cnn_forward.7
= control target key start
LH: loop header
LB: loop body
LE: loop exit
PB: predicated region body
PF: predicated region fallthrough
CT: control target
= control target key end

     0   :  { %v74_v9 = vlaneseq  ;;  %v478_v13 = vmov 1966171168   ;;  %s609_s0 = inlined_call_operand.vmem [shape: bf16[2,256], index: 0, kind: input, shape index: {}]   ;;  %s610_s1 = inlined_call_operand.vmem [shape: bf16[256,64], index: 1, kind: input, shape index: {}]   ;;  %s611_s2 = inlined_call_operand.vmem [shape: f32[1,64], index: 2, kind: input, shape index: {}]   ;;  %s612_s3 = inlined_call_operand.vmem [shape: f32[64,2], index: 3, kind: input, shape index: {}]   ;;  %s613_s4 = inlined_call_operand.vmem [shape: f32[1,2], index: 4, kind: input, shape index: {}]   ;;  %s614_s5 = inlined_call_operand.hbm [shape: f32[2,2], index: 5, kind: output, shape index: {}]  }
   0x1   :  { %v432_v0 = vld [vmem:[%s610_s1 + $0x40] sm:$0xff]   ;;  %v434_v2 = vld [vmem:[%s610_s1 + $0x48] sm:$0xff]   ;;  %v436_v4 = vld [vmem:[%s610_s1 + $0x50] sm:$0xff]   ;;  %v72_v14 = vunpack.c.l.s4 %v478_v13 }
   0x2   :  { %v433_v1 = vld [vmem:[%s610_s1] sm:$0xff]   ;;  %365 = vmatprep.subr.bf16.mxu0 %v432_v0  ;;  %v435_v3 = vld [vmem:[%s610_s1 + $0x8] sm:$0xff]   ;;  %v437_v5 = vld [vmem:[%s610_s1 + $0x10] sm:$0xff]   ;;  %v75_v15 = vshrl.u32 %v74_v9, 7 }
   0x3   :  { %366 = vmatpush3.bf16.msra.mxu0 %v433_v1  ;;  %v438_v6 = vld [vmem:[%s610_s1 + $0x58] sm:$0xff]   ;;  %v440_v8 = vld [vmem:[%s610_s1 + $0x60] sm:$0xff]   ;;  %v442_v11 = vld [vmem:[%s610_s1 + $0x68] sm:$0xff]  }
   0x4   :  { %367 = vmatprep.subr.bf16.mxu0 %v434_v2  ;;  %v439_v7 = vld [vmem:[%s610_s1 + $0x18] sm:$0xff]   ;;  %v441_v10 = vld [vmem:[%s610_s1 + $0x20] sm:$0xff]  }
   0x5   :  { %v345_v12 = vld.sshfl [vmem:[%s609_s0] sm:$0x11 pattern:$0x75316420] }
   0x7   :  { %368 = vmatpush3.bf16.msra.mxu0 %v435_v3 }
   0x8   :  { %369 = vmatprep.subr.bf16.mxu0 %v436_v4 }
   0xb   :  { %370 = vmatpush3.bf16.msra.mxu0 %v437_v5 }
   0xc   :  { %371 = vmatprep.subr.bf16.mxu0 %v438_v6 }
   0xf   :  { %372 = vmatpush3.bf16.msra.mxu0 %v439_v7 }
  0x10   :  { %373 = vmatprep.subr.bf16.mxu0 %v440_v8 }
  0x11   :  { %10 = vsyncpa [#allocation3], 0  ;;  %v443_v16 = vld [vmem:[%s610_s1 + $0x28] sm:$0xff]   ;;  %v70_v17 = vcombine.high %v345_v12, %v345_v12  ;;  %v73_v18 = vunpack.c.0.s8 %v72_v14  ;;  %v444_v19 = vld [vmem:[%s610_s1 + $0x70] sm:$0xff]   ;;  %v479_v29 = vmov 0.0|0.0   ;;  %vm480_vm0 = vmmov 0  }
  0x12   :  { %v445_v21 = vld [vmem:[%s610_s1 + $0x30] sm:$0xff]   ;;  %v446_v23 = vld [vmem:[%s610_s1 + $0x78] sm:$0xff]   ;;  %v228_v26 = vld [vmem:[%s612_s3] sm:$0xff]  ;;  %415 = vmatprep.subr.bf16.mxu1 %v479_v29  ;;  %v481_v35 = vmov 0.0   ;;  %vm243_vm1 = vcmask 523264   ;;  %vm317_vm3 = vcmask 9216  }
  0x13   :  { %374 = vmatpush3.bf16.msra.mxu0 %v441_v10  ;;  %v76_v20 = vsub.s32 %v73_v18, %v75_v15  ;;  %v447_v24 = vld [vmem:[%s610_s1 + $0x38] sm:$0xff]   ;;  %v229_v27 = vld [vmem:[%s612_s3 + $0x8] sm:$0xff]  ;;  %v230_v30 = vld [vmem:[%s612_s3 + $0x10] sm:$0xff]  ;;  %412 = vmatprep.mubr.msk.f32.mxu1 %vm480_vm0, %v481_v35 }
  0x14   :  { %375 = vmatprep.subr.bf16.mxu0 %v442_v11  ;;  %v416_v28 = vpack.c.bf16 %v229_v27, %v228_v26  ;;  %v231_v31 = vld [vmem:[%s612_s3 + $0x18] sm:$0xff]  ;;  %v232_v32 = vld [vmem:[%s612_s3 + $0x20] sm:$0xff]  ;;  %v233_v34 = vld [vmem:[%s612_s3 + $0x28] sm:$0xff] }
  0x15   :  { %v84_v22 = vrot.slane %v70_v17, %v76_v20  ;;  %v77_v25 = vrot.slane %v345_v12, %v76_v20  ;;  %v419_v33 = vpack.c.bf16 %v231_v31, %v230_v30  ;;  %v422_v36 = vpack.c.bf16 %v233_v34, %v232_v32  ;;  %v234_v37 = vld [vmem:[%s612_s3 + $0x30] sm:$0xff]  ;;  %v235_v38 = vld [vmem:[%s612_s3 + $0x38] sm:$0xff]  ;;  %v344_v41 = vld [vmem:[%s611_s2] ss:$0 sm:$0xff]  ;;  %s482_s2 = smov [#allocation2]  }
  0x16   :  { %417 = vmatpush3.bf16.msra.mxu1 %v416_v28  ;;  %v425_v39 = vpack.c.bf16 %v235_v38, %v234_v37  ;;  %v363_v51 = vld [vmem:[%s613_s4] ss:$0 sm:$0xff]  ;;  %s336_s19 = sshll.u32 %s482_s2, 4  ;;  %s337_s19 = int_to_ptr.vmem [resolvable:$true] %s336_s19 }
  0x17   :  { %376 = vmatpush3.bf16.msra.mxu0 %v443_v16  ;;  %215 = vmatprep.mubr.bf16.mxu0 %v84_v22  ;;  %s454_s4 = scalar_lea.vmem %s337_s19, 32  ;;  %p459_p1 = scmp.lt.s32.totalorder %s337_s19, %s337_s19 }
  0x18   :  { %377 = vmatprep.subr.bf16.mxu0 %v444_v19  ;;  %418 = vmatprep.subr.bf16.mxu1 %v479_v29  ;;  %p455_p0 = scmp.ne.s32.totalorder %s337_s19, %s454_s4  ;;  %p460_p2 = scmp.lt.s32.totalorder %s454_s4, %s454_s4 }
  0x1a   :  { %420 = vmatpush3.bf16.msra.mxu1 %v419_v33  ;;  %p461_p3 = por %p460_p2, %p459_p1 }
  0x1b   :  { %378 = vmatpush3.bf16.msra.mxu0 %v445_v21  ;;  %421 = vmatprep.subr.bf16.mxu1 %v479_v29 }
  0x1c   :  { %379 = vmatprep.subr.bf16.mxu0 %v446_v23  ;;  %p462_p4 = pnand %p461_p3, %p455_p0 }
  0x1e   :  { %423 = vmatpush3.bf16.msra.mxu1 %v422_v36 }
  0x1f   :  { %380 = vmatpush3.bf16.msra.mxu0 %v447_v24  ;;  %424 = vmatprep.subr.bf16.mxu1 %v479_v29 }
  0x22   :  { %216 = vmatmul.mubr.bf16.vlgmr.msra.gmra.mrb[0].mxu0 %v77_v25  ;;  %426 = vmatpush3.bf16.msra.mxu1 %v425_v39 }
  0xf5   :  { %v381_v40 = vpop.f32.mrb[0].mxu0 }
  0xf6   :  { %v382_v42 = vpop.f32.mrb[1].mxu0 }
  0xf7   :  { %v383_v43 = vadd.f32 %v382_v42, %v381_v40  ;;  %v384_v44 = vpop.f32.mrb[2].mxu0 }
  0xf8   :  { %v385_v45 = vpop.f32.mrb[3].mxu0 }
  0xf9   :  { %v218_v46 = vadd.f32 %v383_v43, %v344_v41 }
  0xfb   :  { %v224_v47 = vmul.f32 1.442695, %v218_v46  ;;  %vm223_vm2 = vcmp.gt.f32.partialorder %v218_v46, 0.0 }
  0xfd   :  { %448 = vpow2.f32 %v224_v47 }
 0x107   :  { %v449_v48 = vpop.eup %448 }
 0x108   :  { %v362_v49 = vadd.f32 -1.0, %v449_v48 }
 0x10a   :  { %v227_v50 = vsel %vm223_vm2, %v218_v46, %v362_v49 }
 0x10b   :  { %413 = vmatmul.mubr.msk.f32.vlgmr.msra.gmra.mrb[0].mxu1 %vm243_vm1, %v227_v50 }
 0x1de   :  { %v313_v52 = vpop.f32.mrb[0].mxu1 }
 0x1df   :  { %v314_v53 = vadd.f32 %v363_v51, %v313_v52  ;;  %v414_v54 = vpop.f32.mrb[1].mxu1 }
 0x1e1   :  { %v318_v55 = vsel %vm317_vm3, %v314_v53, -inf }
 0x1e2   :  { %319 = vmax.xlane.f32.xlu0 %v318_v55 }
 0x26f   :  { %v320_v56 = vpop.xlane.xlu0 %319 }
 0x270   :  { %v321_v57 = vsub.f32 %v314_v53, %v320_v56 }
 0x272   :  { %v322_v58 = vmul.f32 1.442695, %v321_v57 }
 0x274   :  { %450 = vpow2.f32 %v322_v58 }
 0x27e   :  { %v451_v59 = vpop.eup %450 }
 0x27f   :  { %v324_v60 = vsel %vm317_vm3, %v451_v59, 0.0 }
 0x280   :  { %325 = vadd.xlane.f32.xlu0 %v324_v60 }
 0x30d   :  { %v326_v61 = vpop.xlane.xlu0 %325 }
 0x30e   :  { %452 = vrcp.f32 %v326_v61 }
 0x318   :  { %v453_v62 = vpop.eup %452 }
 0x319   :  { %v328_v63 = vmul.f32 %v453_v62, %v451_v59 }
 0x31b   :  { %329 = vst.msk [vmem:[#allocation2] sm:$0x3] %vm317_vm3, %v328_v63 }
 0x31c   :  { %465 = shalt.err (!%p462_p4)
}
 0x31d   :  { %s466_s0 = scalar_lea.hbm %s614_s5, 32 }
 0x31e   :  { %p467_p5 = scmp.ne.s32.totalorder %s614_s5, %s466_s0  ;;  %p470_p6 = scmp.lt.u32.totalorder %s466_s0, %s614_s5 }
 0x320   :  { %p472_p7 = pnand %p470_p6, %p467_p5 }
 0x322   :  { %475 = shalt.err (!%p472_p7)
}
 0x323   :  { %339 = dma.vmem_to_hbm [thread:$0]  %s337_s19, 32, %s614_s5, [#allocation3]  }
 0x324   :  { %476 = dma.done.wait [#allocation3], 32  }
 0x325   :  { %477 = vsyncadd [#allocation3], 4294967264 }
 0x326   :  { %343 = vsyncpa [#allocation3], 1 }

</bundles_post_ra>
